<compile_context>
chip_gen: v7x
topology: tpu7x:2x2x1
jax: 0.10.0
libtpu: 0.0.40
codegen_flags: <defaults>
</compile_context>

<pallas_src>
import functools

import jax
import jax.numpy as jnp
from jax import lax
from jax.experimental import pallas as pl
from jax.experimental.pallas import tpu as pltpu

EPS = 1e-5


def _vmem_limit_bytes():
    """Generation-aware VMEM cap: ~100 MiB on 128-MiB-VMEM parts (v5e/v6e),
    48 MiB on 64-MiB parts (v7x); conservative fallback if the query fails."""
    try:
        cap = pltpu.get_tpu_info().vmem_capacity_bytes
        if cap >= 128 * 1024 * 1024:
            return 100 * 1024 * 1024
    except Exception:
        pass
    return 48 * 1024 * 1024


def _cparams(vmem_limit):
    return pltpu.CompilerParams(dimension_semantics=("parallel",),
                                vmem_limit_bytes=vmem_limit)


def _const_spec(shape):
    """Grid-constant operand (weights / BN scale/shift): constant index_map so
    it stays VMEM-resident, single-buffered (DMA'd only once)."""
    idx = lambda *args: (0,) * len(shape)
    try:
        return pl.BlockSpec(shape, idx, pipeline_mode=pl.Buffered(1))
    except Exception:           # older jax without pipeline_mode / Buffered
        return pl.BlockSpec(shape, idx)


def _tile_stats(y_f32):
    """Per-channel (sum, sum_sq) of an f32 tile -> (1, 2, C). Taken from the
    f32 accumulator BEFORE any bf16 down-cast so BN statistics keep f32
    precision even with bf16 inter-pass intermediates."""
    s = jnp.sum(y_f32, axis=0, keepdims=True)
    ss = jnp.sum(y_f32 * y_f32, axis=0, keepdims=True)
    return jnp.concatenate([s, ss], axis=0).reshape(1, 2, y_f32.shape[-1])


def _bn_scale_shift(partial_stats, count, gamma, beta):
    """Fold per-tile partial stats into BN scale/shift (tiny plain-JAX glue)."""
    s = jnp.sum(partial_stats[:, 0, :], axis=0)
    ss = jnp.sum(partial_stats[:, 1, :], axis=0)
    mean = s / count
    var = jnp.maximum(ss / count - mean * mean, 0.0)   # biased variance
    scale = gamma * lax.rsqrt(var + EPS)
    shift = beta - mean * scale
    c = gamma.shape[0]
    return (scale.reshape(1, c).astype(jnp.float32),
            shift.reshape(1, c).astype(jnp.float32))


# ---------------- pass 1: 1x1 conv + BN1 partial stats ----------------------
def _c1_kernel(x_ref, w1_ref, y1_ref, st_ref, *, cdt):
    y1 = jnp.dot(x_ref[...].astype(cdt), w1_ref[...],
                 preferred_element_type=jnp.float32)
    st_ref[...] = _tile_stats(y1)                 # stats from f32 accumulator
    y1_ref[...] = y1.astype(y1_ref.dtype)         # bf16 inter-pass store


# ----- pass 2: BN1-apply+ReLU, 3x3 conv as 9 accumulated dots, BN2 stats ----
def _c2_kernel(y1_ref, s1_ref, t1_ref, w2_ref, y2_ref, st_ref, pad_ref,
               *, H, W, cdt):
    F2 = y1_ref.shape[-1]
    F3 = y2_ref.shape[-1]
    HW = H * W

    # BN1 apply + ReLU in f32 (bf16 y1 * f32 scale promotes); cast exactly
    # once when writing into the compute-dtype padded scratch.
    a1 = jnp.maximum(y1_ref[0] * s1_ref[...] + t1_ref[...], 0.0)   # (HW, F2) f32

    # Zero only the 1-pixel border each step; the interior is fully
    # overwritten below. (Safe under "parallel" megacore sharding, unlike a
    # program_id == 0 guard.)
    pad_ref[pl.ds(0, 1), :, :] = jnp.zeros((1, W + 2, F2), cdt)
    pad_ref[pl.ds(H + 1, 1), :, :] = jnp.zeros((1, W + 2, F2), cdt)
    pad_ref[pl.ds(1, H), pl.ds(0, 1), :] = jnp.zeros((H, 1, F2), cdt)
    pad_ref[pl.ds(1, H), pl.ds(W + 1, 1), :] = jnp.zeros((H, 1, F2), cdt)
    pad_ref[pl.ds(1, H), pl.ds(1, W), :] = a1.reshape(H, W, F2).astype(cdt)

    # 3x3 conv = 9 accumulated K=F2 MXU dots reading shifted (H, W, F2) slices
    # of the padded scratch directly -- no (HW, 9*F2) im2col slab, no concat.
    acc = jnp.zeros((HW, F3), jnp.float32)
    for k in range(9):
        dy, dx = k // 3, k % 3
        tap = pad_ref[pl.ds(dy, H), pl.ds(dx, W), :].reshape(HW, F2)
        acc = acc + jnp.dot(tap, w2_ref[k], preferred_element_type=jnp.float32)

    st_ref[...] = _tile_stats(acc)                # stats from f32 accumulator
    y2_ref[0] = acc.astype(y2_ref.dtype)          # bf16 inter-pass store


# ---------- pass 3: BN2-apply+ReLU, 1x1 conv, BN3 partial stats -------------
def _c3_kernel(y2_ref, s2_ref, t2_ref, w3_ref, y3_ref, st_ref, *, cdt):
    a2 = jnp.maximum(y2_ref[...] * s2_ref[...] + t2_ref[...], 0.0)   # f32
    y3 = jnp.dot(a2.astype(cdt), w3_ref[...],
                 preferred_element_type=jnp.float32)
    st_ref[...] = _tile_stats(y3)                 # stats from f32 accumulator
    y3_ref[...] = y3.astype(y3_ref.dtype)         # bf16 inter-pass store


# ------------- pass 4: BN3-apply + residual add + final ReLU ----------------
def _out_kernel(y3_ref, s3_ref, t3_ref, x_ref, o_ref):
    out = y3_ref[...] * s3_ref[...] + t3_ref[...] + x_ref[...].astype(jnp.float32)
    o_ref[...] = jnp.maximum(out, 0.0).astype(o_ref.dtype)


def _pick_row_tile(nrows, target=1024):
    """Largest multiple of 8 dividing nrows, capped at `target`, preferring an
    even tile count >= 4 so double-buffering overlap and v7x megacore sharding
    both engage; larger tiles cut per-step overhead on single-TC v5e/v6e."""
    best_ge4 = None
    best_any = None
    cand = (min(target, nrows) // 8) * 8
    while cand >= 8:
        if nrows % cand == 0:
            nt = nrows // cand
            if nt >= 4 and nt % 2 == 0:
                return cand
            if nt >= 4 and best_ge4 is None:
                best_ge4 = cand
            if best_any is None:
                best_any = cand
        cand -= 8
    if best_ge4 is not None:
        return best_ge4
    if best_any is not None:
        return best_any
    # TODO(synk): for row counts not a multiple of 8, zero-pad NHW (zero rows
    # are BN-neutral for the 1x1 passes) or use a masked tail tile instead of
    # this whole-slab fallback.
    return nrows


@functools.partial(jax.jit, static_argnames=("compute_dtype",))
def bottleneck_block(x_nhwc, w1, w2, w3, g1, b1, g2, b2, g3, b3,
                     *, compute_dtype=jnp.bfloat16):
    """x_nhwc: (N,H,W,F1); w1:(F1,F2); w2:(3,3,F2,F3) HWIO; w3:(F3,F3)."""
    N, H, W, F1 = x_nhwc.shape
    F2 = w1.shape[1]
    F3 = w3.shape[1]
    NHW, HW = N * H * W, H * W
    assert F3 == F1, "identity residual requires F3 == F1"

    x_flat = x_nhwc.reshape(NHW, F1)
    w1c = w1.astype(compute_dtype)
    w2c = w2.reshape(9, F2, F3).astype(compute_dtype)   # tap-major (ky*3+kx)
    w3c = w3.astype(compute_dtype)

    vmem_limit = _vmem_limit_bytes()
    cparams = _cparams(vmem_limit)

    TR = _pick_row_tile(NHW)
    nt = NHW // TR
    row2d = lambda i: (i, 0)
    st3d = lambda i: (i, 0, 0)
    img3d = lambda n: (n, 0, 0)

    # ---- pass 1: y1 = x @ W1, BN1 partial stats ----
    y1, st1 = pl.pallas_call(
        functools.partial(_c1_kernel, cdt=compute_dtype),
        grid=(nt,),
        in_specs=[pl.BlockSpec((TR, F1), row2d),
                  _const_spec((F1, F2))],
        out_specs=[pl.BlockSpec((TR, F2), row2d),
                   pl.BlockSpec((1, 2, F2), st3d)],
        out_shape=(jax.ShapeDtypeStruct((NHW, F2), compute_dtype),
                   jax.ShapeDtypeStruct((nt, 2, F2), jnp.float32)),
        compiler_params=cparams,
    )(x_flat, w1c)
    s1, t1 = _bn_scale_shift(st1, NHW, g1, b1)

    # ---- pass 2: a1 = relu(bn1(y1)); y2 = conv3x3(a1); BN2 partial stats ----
    # TODO(synk): for large H*W on v7x, tile pass 2 over sub-image row bands
    # with a 1-row halo (2-D grid (N, H/band)) instead of whole-image blocks.
    y2, st2 = pl.pallas_call(
        functools.partial(_c2_kernel, H=H, W=W, cdt=compute_dtype),
        grid=(N,),
        in_specs=[pl.BlockSpec((1, HW, F2), img3d),
                  _const_spec((1, F2)),
                  _const_spec((1, F2)),
                  _const_spec((9, F2, F3))],
        out_specs=[pl.BlockSpec((1, HW, F3), img3d),
                   pl.BlockSpec((1, 2, F3), st3d)],
        out_shape=(jax.ShapeDtypeStruct((N, HW, F3), compute_dtype),
                   jax.ShapeDtypeStruct((N, 2, F3), jnp.float32)),
        scratch_shapes=[pltpu.VMEM((H + 2, W + 2, F2), compute_dtype)],
        compiler_params=cparams,
    )(y1.reshape(N, HW, F2), s1, t1, w2c)
    s2, t2 = _bn_scale_shift(st2, NHW, g2, b2)

    # ---- pass 3: a2 = relu(bn2(y2)); y3 = a2 @ W3; BN3 partial stats ----
    y3, st3 = pl.pallas_call(
        functools.partial(_c3_kernel, cdt=compute_dtype),
        grid=(nt,),
        in_specs=[pl.BlockSpec((TR, F3), row2d),
                  _const_spec((1, F3)),
                  _const_spec((1, F3)),
                  _const_spec((F3, F3))],
        out_specs=[pl.BlockSpec((TR, F3), row2d),
                   pl.BlockSpec((1, 2, F3), st3d)],
        out_shape=(jax.ShapeDtypeStruct((NHW, F3), compute_dtype),
                   jax.ShapeDtypeStruct((nt, 2, F3), jnp.float32)),
        compiler_params=cparams,
    )(y2.reshape(NHW, F3), s2, t2, w3c)
    s3, t3 = _bn_scale_shift(st3, NHW, g3, b3)

    # ---- pass 4: out = relu(bn3(y3) + x) ----
    out_flat = pl.pallas_call(
        _out_kernel,
        grid=(nt,),
        in_specs=[pl.BlockSpec((TR, F3), row2d),
                  _const_spec((1, F3)),
                  _const_spec((1, F3)),
                  pl.BlockSpec((TR, F1), row2d)],
        out_specs=pl.BlockSpec((TR, F3), row2d),
        out_shape=jax.ShapeDtypeStruct((NHW, F3), x_nhwc.dtype),
        compiler_params=cparams,
    )(y3, s3, t3, x_flat)

    return out_flat.reshape(N, H, W, F3)


def reference(x_nhwc, w1, w2, w3, g1, b1, g2, b2, g3, b3):
    def bn(y, g, b):
        mean = jnp.mean(y, axis=(0, 1, 2), keepdims=True)
        var = jnp.mean((y - mean) ** 2, axis=(0, 1, 2), keepdims=True)
        return (y - mean) * lax.rsqrt(var + EPS) * g + b

    dn = ("NHWC", "HWIO", "NHWC")
    y = lax.conv_general_dilated(x_nhwc, w1[None, None], (1, 1), "VALID",
                                 dimension_numbers=dn)
    y = jnp.maximum(bn(y, g1, b1), 0.0)
    y = lax.conv_general_dilated(y, w2, (1, 1), "SAME", dimension_numbers=dn)
    y = jnp.maximum(bn(y, g2, b2), 0.0)
    y = lax.conv_general_dilated(y, w3[None, None], (1, 1), "VALID",
                                 dimension_numbers=dn)
    y = bn(y, g3, b3)
    return jnp.maximum(y + x_nhwc, 0.0)


if __name__ == "__main__":
    key = jax.random.PRNGKey(0)
    N, H, W = 2, 16, 16
    F1, F2, F3 = 128, 64, 128     # identity residual requires F3 == F1;
                                  # F2 >= 64 keeps the mid slab reasonably
                                  # lane-dense, F3 = 128 keeps stores lane-dense

    ks = jax.random.split(key, 10)
    x_nchw = jax.random.normal(ks[0], (N, F1, H, W), jnp.float32)  # PyTorch NCHW
    w1 = jax.random.normal(ks[1], (F1, F2), jnp.float32) * 0.1
    w2 = jax.random.normal(ks[2], (3, 3, F2, F3), jnp.float32) * 0.1
    w3 = jax.random.normal(ks[3], (F3, F3), jnp.float32) * 0.1
    g1 = 1.0 + 0.1 * jax.random.normal(ks[4], (F2,), jnp.float32)
    b1 = 0.1 * jax.random.normal(ks[5], (F2,), jnp.float32)
    g2 = 1.0 + 0.1 * jax.random.normal(ks[6], (F3,), jnp.float32)
    b2 = 0.1 * jax.random.normal(ks[7], (F3,), jnp.float32)
    g3 = 1.0 + 0.1 * jax.random.normal(ks[8], (F3,), jnp.float32)
    b3 = 0.1 * jax.random.normal(ks[9], (F3,), jnp.float32)

    x_nhwc = jnp.transpose(x_nchw, (0, 2, 3, 1))   # NCHW -> NHWC for the kernel

    args = (x_nhwc, w1, w2, w3, g1, b1, g2, b2, g3, b3)
    ref = reference(*args)

    # Perf path: bf16 MXU operands and bf16 inter-pass intermediates
    # (f32 accumulation / BN statistics). bf16 rounding through three
    # BN-normalized conv stages -> loose tolerance.
    out = jax.block_until_ready(
        bottleneck_block(*args, compute_dtype=jnp.bfloat16))
    assert out.shape == (N, H, W, F3)
    assert jnp.allclose(out, ref, atol=1e-1, rtol=1e-1), float(
        jnp.max(jnp.abs(out - ref)))

    # Numerics check: f32 operands/intermediates must match XLA tightly.
    out32 = jax.block_until_ready(
        bottleneck_block(*args, compute_dtype=jnp.float32))
    assert jnp.allclose(out32, ref, atol=2e-3, rtol=2e-3), float(
        jnp.max(jnp.abs(out32 - ref)))

    print("KERNEL_OK")
</pallas_src>

<mosaic_0001>
module attributes {stable_mosaic.version = 11 : i64} {
  func.func @_c1_kernel(%arg0: i32, %arg1: memref<128x128xf32, #tpu.memory_space<vmem>>, %arg2: memref<128x64xbf16, #tpu.memory_space<vmem>>, %arg3: memref<128x64xbf16, #tpu.memory_space<vmem>>, %arg4: memref<1x2x64xf32, #tpu.memory_space<vmem>>) attributes {dimension_semantics = [#tpu.dimension_semantics<parallel>], iteration_bounds = array<i64: 4>, scalar_prefetch = 0 : i64, scratch_operands = 0 : i64, tpu.core_type = #tpu.core_type<tc>, window_params = [{transform_indices = @transform_0, window_bounds = array<i64: 128, 128>}, {pipeline_mode = #tpu.pipeline_mode<synchronous>, transform_indices = @transform_1, window_bounds = array<i64: 128, 64>}, {transform_indices = @transform_2, window_bounds = array<i64: 128, 64>}, {transform_indices = @transform_3, window_bounds = array<i64: 1, 2, 64>}]} {
    %c0 = arith.constant 0 : index
    %c0_0 = arith.constant 0 : index
    %0 = vector.load %arg1[%c0, %c0_0] : memref<128x128xf32, #tpu.memory_space<vmem>>, vector<128x128xf32>
    %1 = arith.truncf %0 : vector<128x128xf32> to vector<128x128xbf16>
    %c0_1 = arith.constant 0 : index
    %c0_2 = arith.constant 0 : index
    %2 = vector.load %arg2[%c0_1, %c0_2] : memref<128x64xbf16, #tpu.memory_space<vmem>>, vector<128x64xbf16>
    %cst = arith.constant dense<0.000000e+00> : vector<128x64xf32>
    %3 = tpu.matmul %1, %2, %cst {dimension_numbers = #tpu.dot_dimension_numbers<[1], [0], [0], [1], [0, 0, 1, 1], [], []>} : vector<128x128xbf16>, vector<128x64xbf16>, vector<128x64xf32> -> vector<128x64xf32>
    %cst_3 = arith.constant dense<0.000000e+00> : vector<64xf32>
    %4 = vector.multi_reduction <add>, %3, %cst_3 [0] : vector<128x64xf32> to vector<64xf32>
    %5 = vector.shape_cast %4 : vector<64xf32> to vector<1x64xf32>
    %6 = arith.mulf %3, %3 : vector<128x64xf32>
    %cst_4 = arith.constant dense<0.000000e+00> : vector<64xf32>
    %7 = vector.multi_reduction <add>, %6, %cst_4 [0] : vector<128x64xf32> to vector<64xf32>
    %8 = vector.shape_cast %7 : vector<64xf32> to vector<1x64xf32>
    %9 = tpu.concatenate %5, %8 in 0 : vector<1x64xf32>, vector<1x64xf32> -> vector<2x64xf32>
    %10 = vector.shape_cast %9 : vector<2x64xf32> to vector<1x2x64xf32>
    %c0_5 = arith.constant 0 : index
    %c0_6 = arith.constant 0 : index
    %c0_7 = arith.constant 0 : index
    %11 = vector.load %arg4[%c0_5, %c0_6, %c0_7] : memref<1x2x64xf32, #tpu.memory_space<vmem>>, vector<1x2x64xf32>
    tpu.vector_store %arg4[%c0_5, %c0_6, %c0_7], %10 {strides = array<i32>} : memref<1x2x64xf32, #tpu.memory_space<vmem>>, vector<1x2x64xf32>,
    %12 = arith.truncf %3 : vector<128x64xf32> to vector<128x64xbf16>
    %c0_8 = arith.constant 0 : index
    %c0_9 = arith.constant 0 : index
    %13 = vector.load %arg3[%c0_8, %c0_9] : memref<128x64xbf16, #tpu.memory_space<vmem>>, vector<128x64xbf16>
    tpu.vector_store %arg3[%c0_8, %c0_9], %12 {strides = array<i32>} : memref<128x64xbf16, #tpu.memory_space<vmem>>, vector<128x64xbf16>,
    return
  }
  func.func @transform_0(%arg0: i32) -> (i32, i32) {
    %c0_i32 = arith.constant 0 : i32
    %c0_i32_0 = arith.constant 0 : i32
    return %arg0, %c0_i32 : i32, i32
  }
  func.func @transform_1(%arg0: i32) -> (i32, i32) {
    %c0_i32 = arith.constant 0 : i32
    %c0_i32_0 = arith.constant 0 : i32
    %c0_i32_1 = arith.constant 0 : i32
    return %c0_i32, %c0_i32_0 : i32, i32
  }
  func.func @transform_2(%arg0: i32) -> (i32, i32) {
    %c0_i32 = arith.constant 0 : i32
    %c0_i32_0 = arith.constant 0 : i32
    return %arg0, %c0_i32 : i32, i32
  }
  func.func @transform_3(%arg0: i32) -> (i32, i32, i32) {
    %c0_i32 = arith.constant 0 : i32
    %c0_i32_0 = arith.constant 0 : i32
    %c0_i32_1 = arith.constant 0 : i32
    return %arg0, %c0_i32, %c0_i32_0 : i32, i32, i32
  }
}

module attributes {stable_mosaic.version = 11 : i64} {
  func.func @_c2_kernel(%arg0: i32, %arg1: memref<1x256x64xbf16, #tpu.memory_space<vmem>>, %arg2: memref<1x64xf32, #tpu.memory_space<vmem>>, %arg3: memref<1x64xf32, #tpu.memory_space<vmem>>, %arg4: memref<9x64x128xbf16, #tpu.memory_space<vmem>>, %arg5: memref<1x256x128xbf16, #tpu.memory_space<vmem>>, %arg6: memref<1x2x128xf32, #tpu.memory_space<vmem>>, %arg7: memref<18x18x64xbf16, #tpu.memory_space<vmem>>) attributes {dimension_semantics = [#tpu.dimension_semantics<parallel>], iteration_bounds = array<i64: 2>, scalar_prefetch = 0 : i64, scratch_operands = 1 : i64, tpu.core_type = #tpu.core_type<tc>, window_params = [{transform_indices = @transform_0, window_bounds = array<i64: 1, 256, 64>}, {pipeline_mode = #tpu.pipeline_mode<synchronous>, transform_indices = @transform_1, window_bounds = array<i64: 1, 64>}, {pipeline_mode = #tpu.pipeline_mode<synchronous>, transform_indices = @transform_2, window_bounds = array<i64: 1, 64>}, {pipeline_mode = #tpu.pipeline_mode<synchronous>, transform_indices = @transform_3, window_bounds = array<i64: 9, 64, 128>}, {transform_indices = @transform_4, window_bounds = array<i64: 1, 256, 128>}, {transform_indices = @transform_5, window_bounds = array<i64: 1, 2, 128>}]} {
    %c0 = arith.constant 0 : index
    %c0_0 = arith.constant 0 : index
    %c0_1 = arith.constant 0 : index
    %0 = vector.load %arg1[%c0, %c0_0, %c0_1] : memref<1x256x64xbf16, #tpu.memory_space<vmem>>, vector<1x256x64xbf16>
    %1 = vector.shape_cast %0 : vector<1x256x64xbf16> to vector<256x64xbf16>
    %c0_2 = arith.constant 0 : index
    %c0_3 = arith.constant 0 : index
    %2 = vector.load %arg2[%c0_2, %c0_3] : memref<1x64xf32, #tpu.memory_space<vmem>>, vector<1x64xf32>
    %3 = arith.extf %1 : vector<256x64xbf16> to vector<256x64xf32>
    %4 = vector.broadcast %2 : vector<1x64xf32> to vector<256x64xf32>
    %5 = arith.mulf %3, %4 : vector<256x64xf32>
    %c0_4 = arith.constant 0 : index
    %c0_5 = arith.constant 0 : index
    %6 = vector.load %arg3[%c0_4, %c0_5] : memref<1x64xf32, #tpu.memory_space<vmem>>, vector<1x64xf32>
    %7 = vector.broadcast %6 : vector<1x64xf32> to vector<256x64xf32>
    %8 = arith.addf %5, %7 : vector<256x64xf32>
    %cst = arith.constant 0.000000e+00 : f32
    %9 = vector.broadcast %cst : f32 to vector<256x64xf32>
    %10 = arith.maximumf %8, %9 : vector<256x64xf32>
    %cst_6 = arith.constant 0.000000e+00 : bf16
    %11 = vector.broadcast %cst_6 : bf16 to vector<1x18x64xbf16>
    %c0_7 = arith.constant 0 : index
    %c0_8 = arith.constant 0 : index
    %c0_9 = arith.constant 0 : index
    %12 = vector.load %arg7[%c0_7, %c0_8, %c0_9] : memref<18x18x64xbf16, #tpu.memory_space<vmem>>, vector<1x18x64xbf16>
    tpu.vector_store %arg7[%c0_7, %c0_8, %c0_9], %11 {strides = array<i32>} : memref<18x18x64xbf16, #tpu.memory_space<vmem>>, vector<1x18x64xbf16>,
    %cst_10 = arith.constant 0.000000e+00 : bf16
    %13 = vector.broadcast %cst_10 : bf16 to vector<1x18x64xbf16>
    %c17 = arith.constant 17 : index
    %c0_11 = arith.constant 0 : index
    %c0_12 = arith.constant 0 : index
    %14 = vector.load %arg7[%c17, %c0_11, %c0_12] : memref<18x18x64xbf16, #tpu.memory_space<vmem>>, vector<1x18x64xbf16>
    tpu.vector_store %arg7[%c17, %c0_11, %c0_12], %13 {strides = array<i32>} : memref<18x18x64xbf16, #tpu.memory_space<vmem>>, vector<1x18x64xbf16>,
    %cst_13 = arith.constant 0.000000e+00 : bf16
    %15 = vector.broadcast %cst_13 : bf16 to vector<16x1x64xbf16>
    %c1 = arith.constant 1 : index
    %c0_14 = arith.constant 0 : index
    %c0_15 = arith.constant 0 : index
    %16 = vector.load %arg7[%c1, %c0_14, %c0_15] : memref<18x18x64xbf16, #tpu.memory_space<vmem>>, vector<16x1x64xbf16>
    tpu.vector_store %arg7[%c1, %c0_14, %c0_15], %15 {strides = array<i32>} : memref<18x18x64xbf16, #tpu.memory_space<vmem>>, vector<16x1x64xbf16>,
    %cst_16 = arith.constant 0.000000e+00 : bf16
    %17 = vector.broadcast %cst_16 : bf16 to vector<16x1x64xbf16>
    %c1_17 = arith.constant 1 : index
    %c17_18 = arith.constant 17 : index
    %c0_19 = arith.constant 0 : index
    %18 = vector.load %arg7[%c1_17, %c17_18, %c0_19] : memref<18x18x64xbf16, #tpu.memory_space<vmem>>, vector<16x1x64xbf16>
    tpu.vector_store %arg7[%c1_17, %c17_18, %c0_19], %17 {strides = array<i32>} : memref<18x18x64xbf16, #tpu.memory_space<vmem>>, vector<16x1x64xbf16>,
    %19 = vector.shape_cast %10 : vector<256x64xf32> to vector<16x16x64xf32>
    %20 = arith.truncf %19 : vector<16x16x64xf32> to vector<16x16x64xbf16>
    %c1_20 = arith.constant 1 : index
    %c1_21 = arith.constant 1 : index
    %c0_22 = arith.constant 0 : index
    %21 = vector.load %arg7[%c1_20, %c1_21, %c0_22] : memref<18x18x64xbf16, #tpu.memory_space<vmem>>, vector<16x16x64xbf16>
    tpu.vector_store %arg7[%c1_20, %c1_21, %c0_22], %20 {strides = array<i32>} : memref<18x18x64xbf16, #tpu.memory_space<vmem>>, vector<16x16x64xbf16>,
    %cst_23 = arith.constant 0.000000e+00 : f32
    %22 = vector.broadcast %cst_23 : f32 to vector<256x128xf32>
    %c0_24 = arith.constant 0 : index
    %c0_25 = arith.constant 0 : index
    %c0_26 = arith.constant 0 : index
    %23 = vector.load %arg7[%c0_24, %c0_25, %c0_26] : memref<18x18x64xbf16, #tpu.memory_space<vmem>>, vector<16x16x64xbf16>
    %24 = vector.shape_cast %23 : vector<16x16x64xbf16> to vector<256x64xbf16>
    %c0_27 = arith.constant 0 : index
    %c0_28 = arith.constant 0 : index
    %c0_29 = arith.constant 0 : index
    %25 = vector.load %arg4[%c0_27, %c0_28, %c0_29] : memref<9x64x128xbf16, #tpu.memory_space<vmem>>, vector<1x64x128xbf16>
    %26 = vector.shape_cast %25 : vector<1x64x128xbf16> to vector<64x128xbf16>
    %cst_30 = arith.constant dense<0.000000e+00> : vector<256x128xf32>
    %27 = tpu.matmul %24, %26, %cst_30 {dimension_numbers = #tpu.dot_dimension_numbers<[1], [0], [0], [1], [0, 0, 1, 1], [], []>} : vector<256x64xbf16>, vector<64x128xbf16>, vector<256x128xf32> -> vector<256x128xf32>
    %28 = arith.addf %22, %27 : vector<256x128xf32>
    %c0_31 = arith.constant 0 : index
    %c1_32 = arith.constant 1 : index
    %c0_33 = arith.constant 0 : index
    %29 = vector.load %arg7[%c0_31, %c1_32, %c0_33] : memref<18x18x64xbf16, #tpu.memory_space<vmem>>, vector<16x16x64xbf16>
    %30 = vector.shape_cast %29 : vector<16x16x64xbf16> to vector<256x64xbf16>
    %c1_34 = arith.constant 1 : index
    %c0_35 = arith.constant 0 : index
    %c0_36 = arith.constant 0 : index
    %31 = vector.load %arg4[%c1_34, %c0_35, %c0_36] : memref<9x64x128xbf16, #tpu.memory_space<vmem>>, vector<1x64x128xbf16>
    %32 = vector.shape_cast %31 : vector<1x64x128xbf16> to vector<64x128xbf16>
    %cst_37 = arith.constant dense<0.000000e+00> : vector<256x128xf32>
    %33 = tpu.matmul %30, %32, %cst_37 {dimension_numbers = #tpu.dot_dimension_numbers<[1], [0], [0], [1], [0, 0, 1, 1], [], []>} : vector<256x64xbf16>, vector<64x128xbf16>, vector<256x128xf32> -> vector<256x128xf32>
    %34 = arith.addf %28, %33 : vector<256x128xf32>
    %c0_38 = arith.constant 0 : index
    %c2 = arith.constant 2 : index
    %c0_39 = arith.constant 0 : index
    %35 = vector.load %arg7[%c0_38, %c2, %c0_39] : memref<18x18x64xbf16, #tpu.memory_space<vmem>>, vector<16x16x64xbf16>
    %36 = vector.shape_cast %35 : vector<16x16x64xbf16> to vector<256x64xbf16>
    %c2_40 = arith.constant 2 : index
    %c0_41 = arith.constant 0 : index
    %c0_42 = arith.constant 0 : index
    %37 = vector.load %arg4[%c2_40, %c0_41, %c0_42] : memref<9x64x128xbf16, #tpu.memory_space<vmem>>, vector<1x64x128xbf16>
    %38 = vector.shape_cast %37 : vector<1x64x128xbf16> to vector<64x128xbf16>
    %cst_43 = arith.constant dense<0.000000e+00> : vector<256x128xf32>
    %39 = tpu.matmul %36, %38, %cst_43 {dimension_numbers = #tpu.dot_dimension_numbers<[1], [0], [0], [1], [0, 0, 1, 1], [], []>} : vector<256x64xbf16>, vector<64x128xbf16>, vector<256x128xf32> -> vector<256x128xf32>
    %40 = arith.addf %34, %39 : vector<256x128xf32>
    %c1_44 = arith.constant 1 : index
    %c0_45 = arith.constant 0 : index
    %c0_46 = arith.constant 0 : index
    %41 = vector.load %arg7[%c1_44, %c0_45, %c0_46] : memref<18x18x64xbf16, #tpu.memory_space<vmem>>, vector<16x16x64xbf16>
    %42 = vector.shape_cast %41 : vector<16x16x64xbf16> to vector<256x64xbf16>
    %c3 = arith.constant 3 : index
    %c0_47 = arith.constant 0 : index
    %c0_48 = arith.constant 0 : index
    %43 = vector.load %arg4[%c3, %c0_47, %c0_48] : memref<9x64x128xbf16, #tpu.memory_space<vmem>>, vector<1x64x128xbf16>
    %44 = vector.shape_cast %43 : vector<1x64x128xbf16> to vector<64x128xbf16>
    %cst_49 = arith.constant dense<0.000000e+00> : vector<256x128xf32>
    %45 = tpu.matmul %42, %44, %cst_49 {dimension_numbers = #tpu.dot_dimension_numbers<[1], [0], [0], [1], [0, 0, 1, 1], [], []>} : vector<256x64xbf16>, vector<64x128xbf16>, vector<256x128xf32> -> vector<256x128xf32>
    %46 = arith.addf %40, %45 : vector<256x128xf32>
    %c1_50 = arith.constant 1 : index
    %c1_51 = arith.constant 1 : index
    %c0_52 = arith.constant 0 : index
    %47 = vector.load %arg7[%c1_50, %c1_51, %c0_52] : memref<18x18x64xbf16, #tpu.memory_space<vmem>>, vector<16x16x64xbf16>
    %48 = vector.shape_cast %47 : vector<16x16x64xbf16> to vector<256x64xbf16>
    %c4 = arith.constant 4 : index
    %c0_53 = arith.constant 0 : index
    %c0_54 = arith.constant 0 : index
    %49 = vector.load %arg4[%c4, %c0_53, %c0_54] : memref<9x64x128xbf16, #tpu.memory_space<vmem>>, vector<1x64x128xbf16>
    %50 = vector.shape_cast %49 : vector<1x64x128xbf16> to vector<64x128xbf16>
    %cst_55 = arith.constant dense<0.000000e+00> : vector<256x128xf32>
    %51 = tpu.matmul %48, %50, %cst_55 {dimension_numbers = #tpu.dot_dimension_numbers<[1], [0], [0], [1], [0, 0, 1, 1], [], []>} : vector<256x64xbf16>, vector<64x128xbf16>, vector<256x128xf32> -> vector<256x128xf32>
    %52 = arith.addf %46, %51 : vector<256x128xf32>
    %c1_56 = arith.constant 1 : index
    %c2_57 = arith.constant 2 : index
    %c0_58 = arith.constant 0 : index
    %53 = vector.load %arg7[%c1_56, %c2_57, %c0_58] : memref<18x18x64xbf16, #tpu.memory_space<vmem>>, vector<16x16x64xbf16>
    %54 = vector.shape_cast %53 : vector<16x16x64xbf16> to vector<256x64xbf16>
    %c5 = arith.constant 5 : index
    %c0_59 = arith.constant 0 : index
    %c0_60 = arith.constant 0 : index
    %55 = vector.load %arg4[%c5, %c0_59, %c0_60] : memref<9x64x128xbf16, #tpu.memory_space<vmem>>, vector<1x64x128xbf16>
    %56 = vector.shape_cast %55 : vector<1x64x128xbf16> to vector<64x128xbf16>
    %cst_61 = arith.constant dense<0.000000e+00> : vector<256x128xf32>
    %57 = tpu.matmul %54, %56, %cst_61 {dimension_numbers = #tpu.dot_dimension_numbers<[1], [0], [0], [1], [0, 0, 1, 1], [], []>} : vector<256x64xbf16>, vector<64x128xbf16>, vector<256x128xf32> -> vector<256x128xf32>
    %58 = arith.addf %52, %57 : vector<256x128xf32>
    %c2_62 = arith.constant 2 : index
    %c0_63 = arith.constant 0 : index
    %c0_64 = arith.constant 0 : index
    %59 = vector.load %arg7[%c2_62, %c0_63, %c0_64] : memref<18x18x64xbf16, #tpu.memory_space<vmem>>, vector<16x16x64xbf16>
    %60 = vector.shape_cast %59 : vector<16x16x64xbf16> to vector<256x64xbf16>
    %c6 = arith.constant 6 : index
    %c0_65 = arith.constant 0 : index
    %c0_66 = arith.constant 0 : index
    %61 = vector.load %arg4[%c6, %c0_65, %c0_66] : memref<9x64x128xbf16, #tpu.memory_space<vmem>>, vector<1x64x128xbf16>
    %62 = vector.shape_cast %61 : vector<1x64x128xbf16> to vector<64x128xbf16>
    %cst_67 = arith.constant dense<0.000000e+00> : vector<256x128xf32>
    %63 = tpu.matmul %60, %62, %cst_67 {dimension_numbers = #tpu.dot_dimension_numbers<[1], [0], [0], [1], [0, 0, 1, 1], [], []>} : vector<256x64xbf16>, vector<64x128xbf16>, vector<256x128xf32> -> vector<256x128xf32>
    %64 = arith.addf %58, %63 : vector<256x128xf32>
    %c2_68 = arith.constant 2 : index
    %c1_69 = arith.constant 1 : index
    %c0_70 = arith.constant 0 : index
    %65 = vector.load %arg7[%c2_68, %c1_69, %c0_70] : memref<18x18x64xbf16, #tpu.memory_space<vmem>>, vector<16x16x64xbf16>
    %66 = vector.shape_cast %65 : vector<16x16x64xbf16> to vector<256x64xbf16>
    %c7 = arith.constant 7 : index
    %c0_71 = arith.constant 0 : index
    %c0_72 = arith.constant 0 : index
    %67 = vector.load %arg4[%c7, %c0_71, %c0_72] : memref<9x64x128xbf16, #tpu.memory_space<vmem>>, vector<1x64x128xbf16>
    %68 = vector.shape_cast %67 : vector<1x64x128xbf16> to vector<64x128xbf16>
    %cst_73 = arith.constant dense<0.000000e+00> : vector<256x128xf32>
    %69 = tpu.matmul %66, %68, %cst_73 {dimension_numbers = #tpu.dot_dimension_numbers<[1], [0], [0], [1], [0, 0, 1, 1], [], []>} : vector<256x64xbf16>, vector<64x128xbf16>, vector<256x128xf32> -> vector<256x128xf32>
    %70 = arith.addf %64, %69 : vector<256x128xf32>
    %c2_74 = arith.constant 2 : index
    %c2_75 = arith.constant 2 : index
    %c0_76 = arith.constant 0 : index
    %71 = vector.load %arg7[%c2_74, %c2_75, %c0_76] : memref<18x18x64xbf16, #tpu.memory_space<vmem>>, vector<16x16x64xbf16>
    %72 = vector.shape_cast %71 : vector<16x16x64xbf16> to vector<256x64xbf16>
    %c8 = arith.constant 8 : index
    %c0_77 = arith.constant 0 : index
    %c0_78 = arith.constant 0 : index
    %73 = vector.load %arg4[%c8, %c0_77, %c0_78] : memref<9x64x128xbf16, #tpu.memory_space<vmem>>, vector<1x64x128xbf16>
    %74 = vector.shape_cast %73 : vector<1x64x128xbf16> to vector<64x128xbf16>
    %cst_79 = arith.constant dense<0.000000e+00> : vector<256x128xf32>
    %75 = tpu.matmul %72, %74, %cst_79 {dimension_numbers = #tpu.dot_dimension_numbers<[1], [0], [0], [1], [0, 0, 1, 1], [], []>} : vector<256x64xbf16>, vector<64x128xbf16>, vector<256x128xf32> -> vector<256x128xf32>
    %76 = arith.addf %70, %75 : vector<256x128xf32>
    %cst_80 = arith.constant dense<0.000000e+00> : vector<128xf32>
    %77 = vector.multi_reduction <add>, %76, %cst_80 [0] : vector<256x128xf32> to vector<128xf32>
    %78 = vector.shape_cast %77 : vector<128xf32> to vector<1x128xf32>
    %79 = arith.mulf %76, %76 : vector<256x128xf32>
    %cst_81 = arith.constant dense<0.000000e+00> : vector<128xf32>
    %80 = vector.multi_reduction <add>, %79, %cst_81 [0] : vector<256x128xf32> to vector<128xf32>
    %81 = vector.shape_cast %80 : vector<128xf32> to vector<1x128xf32>
    %82 = tpu.concatenate %78, %81 in 0 : vector<1x128xf32>, vector<1x128xf32> -> vector<2x128xf32>
    %83 = vector.shape_cast %82 : vector<2x128xf32> to vector<1x2x128xf32>
    %c0_82 = arith.constant 0 : index
    %c0_83 = arith.constant 0 : index
    %c0_84 = arith.constant 0 : index
    %84 = vector.load %arg6[%c0_82, %c0_83, %c0_84] : memref<1x2x128xf32, #tpu.memory_space<vmem>>, vector<1x2x128xf32>
    tpu.vector_store %arg6[%c0_82, %c0_83, %c0_84], %83 {strides = array<i32>} : memref<1x2x128xf32, #tpu.memory_space<vmem>>, vector<1x2x128xf32>,
    %85 = arith.truncf %76 : vector<256x128xf32> to vector<256x128xbf16>
    %c0_85 = arith.constant 0 : index
    %c0_86 = arith.constant 0 : index
    %c0_87 = arith.constant 0 : index
    %86 = vector.load %arg5[%c0_85, %c0_86, %c0_87] : memref<1x256x128xbf16, #tpu.memory_space<vmem>>, vector<1x256x128xbf16>
    %87 = vector.shape_cast %86 : vector<1x256x128xbf16> to vector<256x128xbf16>
    %88 = vector.shape_cast %85 : vector<256x128xbf16> to vector<1x256x128xbf16>
    tpu.vector_store %arg5[%c0_85, %c0_86, %c0_87], %88 {strides = array<i32>} : memref<1x256x128xbf16, #tpu.memory_space<vmem>>, vector<1x256x128xbf16>,
    return
  }
  func.func @transform_0(%arg0: i32) -> (i32, i32, i32) {
    %c0_i32 = arith.constant 0 : i32
    %c0_i32_0 = arith.constant 0 : i32
    %c0_i32_1 = arith.constant 0 : i32
    return %arg0, %c0_i32, %c0_i32_0 : i32, i32, i32
  }
  func.func @transform_1(%arg0: i32) -> (i32, i32) {
    %c0_i32 = arith.constant 0 : i32
    %c0_i32_0 = arith.constant 0 : i32
    %c0_i32_1 = arith.constant 0 : i32
    return %c0_i32, %c0_i32_0 : i32, i32
  }
  func.func @transform_2(%arg0: i32) -> (i32, i32) {
    %c0_i32 = arith.constant 0 : i32
    %c0_i32_0 = arith.constant 0 : i32
    %c0_i32_1 = arith.constant 0 : i32
    return %c0_i32, %c0_i32_0 : i32, i32
  }
  func.func @transform_3(%arg0: i32) -> (i32, i32, i32) {
    %c0_i32 = arith.constant 0 : i32
    %c0_i32_0 = arith.constant 0 : i32
    %c0_i32_1 = arith.constant 0 : i32
    %c0_i32_2 = arith.constant 0 : i32
    return %c0_i32, %c0_i32_0, %c0_i32_1 : i32, i32, i32
  }
  func.func @transform_4(%arg0: i32) -> (i32, i32, i32) {
    %c0_i32 = arith.constant 0 : i32
    %c0_i32_0 = arith.constant 0 : i32
    %c0_i32_1 = arith.constant 0 : i32
    return %arg0, %c0_i32, %c0_i32_0 : i32, i32, i32
  }
  func.func @transform_5(%arg0: i32) -> (i32, i32, i32) {
    %c0_i32 = arith.constant 0 : i32
    %c0_i32_0 = arith.constant 0 : i32
    %c0_i32_1 = arith.constant 0 : i32
    return %arg0, %c0_i32, %c0_i32_0 : i32, i32, i32
  }
}

module attributes {stable_mosaic.version = 11 : i64} {
  func.func @_c3_kernel(%arg0: i32, %arg1: memref<128x128xbf16, #tpu.memory_space<vmem>>, %arg2: memref<1x128xf32, #tpu.memory_space<vmem>>, %arg3: memref<1x128xf32, #tpu.memory_space<vmem>>, %arg4: memref<128x128xbf16, #tpu.memory_space<vmem>>, %arg5: memref<128x128xbf16, #tpu.memory_space<vmem>>, %arg6: memref<1x2x128xf32, #tpu.memory_space<vmem>>) attributes {dimension_semantics = [#tpu.dimension_semantics<parallel>], iteration_bounds = array<i64: 4>, scalar_prefetch = 0 : i64, scratch_operands = 0 : i64, tpu.core_type = #tpu.core_type<tc>, window_params = [{transform_indices = @transform_0, window_bounds = array<i64: 128, 128>}, {pipeline_mode = #tpu.pipeline_mode<synchronous>, transform_indices = @transform_1, window_bounds = array<i64: 1, 128>}, {pipeline_mode = #tpu.pipeline_mode<synchronous>, transform_indices = @transform_2, window_bounds = array<i64: 1, 128>}, {pipeline_mode = #tpu.pipeline_mode<synchronous>, transform_indices = @transform_3, window_bounds = array<i64: 128, 128>}, {transform_indices = @transform_4, window_bounds = array<i64: 128, 128>}, {transform_indices = @transform_5, window_bounds = array<i64: 1, 2, 128>}]} {
    %c0 = arith.constant 0 : index
    %c0_0 = arith.constant 0 : index
    %0 = vector.load %arg1[%c0, %c0_0] : memref<128x128xbf16, #tpu.memory_space<vmem>>, vector<128x128xbf16>
    %c0_1 = arith.constant 0 : index
    %c0_2 = arith.constant 0 : index
    %1 = vector.load %arg2[%c0_1, %c0_2] : memref<1x128xf32, #tpu.memory_space<vmem>>, vector<1x128xf32>
    %2 = arith.extf %0 : vector<128x128xbf16> to vector<128x128xf32>
    %3 = vector.broadcast %1 : vector<1x128xf32> to vector<128x128xf32>
    %4 = arith.mulf %2, %3 : vector<128x128xf32>
    %c0_3 = arith.constant 0 : index
    %c0_4 = arith.constant 0 : index
    %5 = vector.load %arg3[%c0_3, %c0_4] : memref<1x128xf32, #tpu.memory_space<vmem>>, vector<1x128xf32>
    %6 = vector.broadcast %5 : vector<1x128xf32> to vector<128x128xf32>
    %7 = arith.addf %4, %6 : vector<128x128xf32>
    %cst = arith.constant 0.000000e+00 : f32
    %8 = vector.broadcast %cst : f32 to vector<128x128xf32>
    %9 = arith.maximumf %7, %8 : vector<128x128xf32>
    %10 = arith.truncf %9 : vector<128x128xf32> to vector<128x128xbf16>
    %c0_5 = arith.constant 0 : index
    %c0_6 = arith.constant 0 : index
    %11 = vector.load %arg4[%c0_5, %c0_6] : memref<128x128xbf16, #tpu.memory_space<vmem>>, vector<128x128xbf16>
    %cst_7 = arith.constant dense<0.000000e+00> : vector<128x128xf32>
    %12 = tpu.matmul %10, %11, %cst_7 {dimension_numbers = #tpu.dot_dimension_numbers<[1], [0], [0], [1], [0, 0, 1, 1], [], []>} : vector<128x128xbf16>, vector<128x128xbf16>, vector<128x128xf32> -> vector<128x128xf32>
    %cst_8 = arith.constant dense<0.000000e+00> : vector<128xf32>
    %13 = vector.multi_reduction <add>, %12, %cst_8 [0] : vector<128x128xf32> to vector<128xf32>
    %14 = vector.shape_cast %13 : vector<128xf32> to vector<1x128xf32>
    %15 = arith.mulf %12, %12 : vector<128x128xf32>
    %cst_9 = arith.constant dense<0.000000e+00> : vector<128xf32>
    %16 = vector.multi_reduction <add>, %15, %cst_9 [0] : vector<128x128xf32> to vector<128xf32>
    %17 = vector.shape_cast %16 : vector<128xf32> to vector<1x128xf32>
    %18 = tpu.concatenate %14, %17 in 0 : vector<1x128xf32>, vector<1x128xf32> -> vector<2x128xf32>
    %19 = vector.shape_cast %18 : vector<2x128xf32> to vector<1x2x128xf32>
    %c0_10 = arith.constant 0 : index
    %c0_11 = arith.constant 0 : index
    %c0_12 = arith.constant 0 : index
    %20 = vector.load %arg6[%c0_10, %c0_11, %c0_12] : memref<1x2x128xf32, #tpu.memory_space<vmem>>, vector<1x2x128xf32>
    tpu.vector_store %arg6[%c0_10, %c0_11, %c0_12], %19 {strides = array<i32>} : memref<1x2x128xf32, #tpu.memory_space<vmem>>, vector<1x2x128xf32>,
    %21 = arith.truncf %12 : vector<128x128xf32> to vector<128x128xbf16>
    %c0_13 = arith.constant 0 : index
    %c0_14 = arith.constant 0 : index
    %22 = vector.load %arg5[%c0_13, %c0_14] : memref<128x128xbf16, #tpu.memory_space<vmem>>, vector<128x128xbf16>
    tpu.vector_store %arg5[%c0_13, %c0_14], %21 {strides = array<i32>} : memref<128x128xbf16, #tpu.memory_space<vmem>>, vector<128x128xbf16>,
    return
  }
  func.func @transform_0(%arg0: i32) -> (i32, i32) {
    %c0_i32 = arith.constant 0 : i32
    %c0_i32_0 = arith.constant 0 : i32
    return %arg0, %c0_i32 : i32, i32
  }
  func.func @transform_1(%arg0: i32) -> (i32, i32) {
    %c0_i32 = arith.constant 0 : i32
    %c0_i32_0 = arith.constant 0 : i32
    %c0_i32_1 = arith.constant 0 : i32
    return %c0_i32, %c0_i32_0 : i32, i32
  }
  func.func @transform_2(%arg0: i32) -> (i32, i32) {
    %c0_i32 = arith.constant 0 : i32
    %c0_i32_0 = arith.constant 0 : i32
    %c0_i32_1 = arith.constant 0 : i32
    return %c0_i32, %c0_i32_0 : i32, i32
  }
  func.func @transform_3(%arg0: i32) -> (i32, i32) {
    %c0_i32 = arith.constant 0 : i32
    %c0_i32_0 = arith.constant 0 : i32
    %c0_i32_1 = arith.constant 0 : i32
    return %c0_i32, %c0_i32_0 : i32, i32
  }
  func.func @transform_4(%arg0: i32) -> (i32, i32) {
    %c0_i32 = arith.constant 0 : i32
    %c0_i32_0 = arith.constant 0 : i32
    return %arg0, %c0_i32 : i32, i32
  }
  func.func @transform_5(%arg0: i32) -> (i32, i32, i32) {
    %c0_i32 = arith.constant 0 : i32
    %c0_i32_0 = arith.constant 0 : i32
    %c0_i32_1 = arith.constant 0 : i32
    return %arg0, %c0_i32, %c0_i32_0 : i32, i32, i32
  }
}

module attributes {stable_mosaic.version = 11 : i64} {
  func.func @_out_kernel(%arg0: i32, %arg1: memref<128x128xbf16, #tpu.memory_space<vmem>>, %arg2: memref<1x128xf32, #tpu.memory_space<vmem>>, %arg3: memref<1x128xf32, #tpu.memory_space<vmem>>, %arg4: memref<128x128xf32, #tpu.memory_space<vmem>>, %arg5: memref<128x128xf32, #tpu.memory_space<vmem>>) attributes {dimension_semantics = [#tpu.dimension_semantics<parallel>], iteration_bounds = array<i64: 4>, scalar_prefetch = 0 : i64, scratch_operands = 0 : i64, tpu.core_type = #tpu.core_type<tc>, window_params = [{transform_indices = @transform_0, window_bounds = array<i64: 128, 128>}, {pipeline_mode = #tpu.pipeline_mode<synchronous>, transform_indices = @transform_1, window_bounds = array<i64: 1, 128>}, {pipeline_mode = #tpu.pipeline_mode<synchronous>, transform_indices = @transform_2, window_bounds = array<i64: 1, 128>}, {transform_indices = @transform_3, window_bounds = array<i64: 128, 128>}, {transform_indices = @transform_4, window_bounds = array<i64: 128, 128>}]} {
    %c0 = arith.constant 0 : index
    %c0_0 = arith.constant 0 : index
    %0 = vector.load %arg1[%c0, %c0_0] : memref<128x128xbf16, #tpu.memory_space<vmem>>, vector<128x128xbf16>
    %c0_1 = arith.constant 0 : index
    %c0_2 = arith.constant 0 : index
    %1 = vector.load %arg2[%c0_1, %c0_2] : memref<1x128xf32, #tpu.memory_space<vmem>>, vector<1x128xf32>
    %2 = arith.extf %0 : vector<128x128xbf16> to vector<128x128xf32>
    %3 = vector.broadcast %1 : vector<1x128xf32> to vector<128x128xf32>
    %4 = arith.mulf %2, %3 : vector<128x128xf32>
    %c0_3 = arith.constant 0 : index
    %c0_4 = arith.constant 0 : index
    %5 = vector.load %arg3[%c0_3, %c0_4] : memref<1x128xf32, #tpu.memory_space<vmem>>, vector<1x128xf32>
    %6 = vector.broadcast %5 : vector<1x128xf32> to vector<128x128xf32>
    %7 = arith.addf %4, %6 : vector<128x128xf32>
    %c0_5 = arith.constant 0 : index
    %c0_6 = arith.constant 0 : index
    %8 = vector.load %arg4[%c0_5, %c0_6] : memref<128x128xf32, #tpu.memory_space<vmem>>, vector<128x128xf32>
    %9 = arith.addf %7, %8 : vector<128x128xf32>
    %cst = arith.constant 0.000000e+00 : f32
    %10 = vector.broadcast %cst : f32 to vector<128x128xf32>
    %11 = arith.maximumf %9, %10 : vector<128x128xf32>
    %c0_7 = arith.constant 0 : index
    %c0_8 = arith.constant 0 : index
    %12 = vector.load %arg5[%c0_7, %c0_8] : memref<128x128xf32, #tpu.memory_space<vmem>>, vector<128x128xf32>
    tpu.vector_store %arg5[%c0_7, %c0_8], %11 {strides = array<i32>} : memref<128x128xf32, #tpu.memory_space<vmem>>, vector<128x128xf32>,
    return
  }
  func.func @transform_0(%arg0: i32) -> (i32, i32) {
    %c0_i32 = arith.constant 0 : i32
    %c0_i32_0 = arith.constant 0 : i32
    return %arg0, %c0_i32 : i32, i32
  }
  func.func @transform_1(%arg0: i32) -> (i32, i32) {
    %c0_i32 = arith.constant 0 : i32
    %c0_i32_0 = arith.constant 0 : i32
    %c0_i32_1 = arith.constant 0 : i32
    return %c0_i32, %c0_i32_0 : i32, i32
  }
  func.func @transform_2(%arg0: i32) -> (i32, i32) {
    %c0_i32 = arith.constant 0 : i32
    %c0_i32_0 = arith.constant 0 : i32
    %c0_i32_1 = arith.constant 0 : i32
    return %c0_i32, %c0_i32_0 : i32, i32
  }
  func.func @transform_3(%arg0: i32) -> (i32, i32) {
    %c0_i32 = arith.constant 0 : i32
    %c0_i32_0 = arith.constant 0 : i32
    return %arg0, %c0_i32 : i32, i32
  }
  func.func @transform_4(%arg0: i32) -> (i32, i32) {
    %c0_i32 = arith.constant 0 : i32
    %c0_i32_0 = arith.constant 0 : i32
    return %arg0, %c0_i32 : i32, i32
  }
}

</mosaic_0001>

<bundles_post_ra>
// kernel: bottleneck_block.4
= control target key start
LH: loop header
LB: loop body
LE: loop exit
PB: predicated region body
PF: predicated region fallthrough
CT: control target
= control target key end

     0   :  { %9 = vsyncpa [#allocation3], 0  ;;  %s1183_s0 = inlined_call_operand.hbm [shape: f32[512,128], index: 0, kind: input, shape index: {}]   ;;  %s1184_s1 = inlined_call_operand.vmem [shape: bf16[128,64], index: 1, kind: input, shape index: {}]   ;;  %s1185_s2 = inlined_call_operand.vmem [shape: bf16[512,64], index: 2, kind: output, shape index: {0}]   ;;  %s1186_s3 = inlined_call_operand.vmem [shape: f32[4,2,64], index: 3, kind: output, shape index: {1}]  }
   0x1   :  { %11 = vsyncpa [#allocation3 + $0x1], 0  ;;  %s921_s12 = smov 0   ;;  %s923_s13 = smov 0  }
   0x2   :  { %s925_s14 = smov 0   ;;  %s927_s15 = smov 0  }
   0x3 LB: > { %s940_s16 = sadd.s32 4294967295, %s896_s15   ;;  %s943_s17 = sadd.s32 1, %s896_s15   ;;  %s896_s15 = sphi %s927_s15, %s1193_s15   ;;  %s892_s14 = sphi %s925_s14, %s1192_s14   ;;  %s888_s13 = sphi %s923_s13, %s1191_s13   ;;  %s884_s12 = sphi %s921_s12, %s1190_s12  }
   0x4   : > { %s21_s18 = ssub.s32 %s896_s15, %s943_s17  ;;  %s24_s19 = sadd.s32 1, %s892_s14 }
   0x5   : > { %p22_p0 = scmp.eq.s32.totalorder %s21_s18, 0  ;;  %p31_p1 = scmp.ne.s32.totalorder %s892_s14, %s888_s13 }
   0x6   : > { %p32_p2 = scmp.eq.s32.totalorder %s896_s15, 0  ;;  %p37_p3 = scmp.ne.s32.totalorder %s888_s13, %s884_s12 }
   0x7   : > { %s953_s20 = scalar_select %p22_p0, %s892_s14, %s24_s19  }
   0x8   : > { %p33_p4 = por %p32_p2, %p31_p1  ;;  %p38_p5 = scmp.eq.s32.totalorder %s940_s16, 0 }
   0x9   : > { %p789_p6 = scmp.lt.s32.totalorder %s896_s15, 4  ;;  %s137_s22 = sand.u32 1, %s892_s14  }
   0xa   : > { %p957_p7 = por %p38_p5, %p37_p3  ;;  %s668_s23 = sshll.u32 %s137_s22, 7 }
   0xb   : > { %s702_s24 = sshll.u32 %s896_s15, 11  ;;  %s141_s28 = scalar_lea.vmem [#allocation2], %s668_s23 }
   0xc   : > { %s966_s27 = scalar_lea.hbm %s1183_s0, %s702_s24  ;;  %s148_s29 = sshll.u32 %s141_s28, 4  ;;  %s968_s29 = int_to_ptr.vmem [resolvable:$true] %s148_s29 }
   0xd   : > { %p970_p8 = pnand %p789_p6, %p33_p4  ;;  %s975_s4 = scalar_lea.sflag [#allocation3], %s137_s22 }
   0xe   : > { %s832_s5 = scalar_lea.hbm %s966_s27, 2048  ;;  %s837_s8 = scalar_lea.hbm %s1183_s0, 8192 }
   0xf   : > { %p833_p10 = scmp.ne.s32.totalorder %s966_s27, %s832_s5  ;;  %p834_p11 = pneg %p970_p8 }
  0x10   : > { %p838_p0 = scmp.lt.u32.totalorder %s966_s27, %s1183_s0  ;;  %p839_p1 = scmp.lt.u32.totalorder %s837_s8, %s832_s5 }
  0x11   : > { %p835_p12 = pnand %p834_p11, %p833_p10  ;;  %p841_p3 = scmp.lt.u32.totalorder %s832_s5, %s966_s27 }
  0x12   : > { %p840_p2 = por %p839_p1, %p838_p0 }
  0x13   : > { %p836_p13 = pneg %p835_p12 }
  0x14   : > { %p842_p4 = por %p841_p3, %p840_p2 }
  0x16   : > { %p843_p5 = pnand %p842_p4, %p836_p13 }
  0x18   : > { %846 = shalt.err (!%p843_p5)
}
  0x19   : > { %s847_s11 = scalar_lea.vmem %s968_s29, 2048  ;;  %s898_s12 = smov [#allocation2]  }
  0x1a   : > { %p848_p6 = scmp.ne.s32.totalorder %s968_s29, %s847_s11  ;;  %s852_s18 = sshll.u32 %s898_s12, 4  ;;  %s853_s18 = int_to_ptr.vmem [resolvable:$false] %s852_s18 }
  0x1b   : > { %s854_s19 = scalar_lea.vmem %s853_s18, 4096  ;;  %p855_p9 = scmp.lt.s32.totalorder %s968_s29, %s853_s18 }
  0x1c   : > { %p850_p10 = pnand %p848_p6, %p834_p11  ;;  %p856_p0 = scmp.lt.s32.totalorder %s854_s19, %s847_s11 }
  0x1e   : > { %p851_p12 = pneg %p850_p10  ;;  %p857_p1 = por %p856_p0, %p855_p9 }
  0x20   : > { %p858_p2 = pnand %p857_p1, %p851_p12 }
  0x22   : > { %861 = shalt.err (!%p858_p2)
}
  0x23   : > { %s899_s22 = smov 128   ;;  %s900_s23 = smov 8  }
  0x24   : > { %788 = dma.hbm_to_vmem [thread:$0]  (!%p970_p8), %s966_s27, 2048, %s968_s29, %s975_s4, %s899_s22, %s899_s22, %s900_s23  }
  0x25   : > { %p156_p11 = scmp.lt.s32.totalorder %s896_s15, 5  ;;  %p1189_p13 = scmp.ge.s32.totalorder %s896_s15, 1 }
  0x27   : > { %p157_p3 = pnand %p1189_p13, %p156_p11 }
  0x28   : > { %s162_s24 = sand.u32 (!%p157_p3), 1, %s888_s13  }
  0x29   : > { %160 = sbr.rel (%p157_p3) target bundleno = 344 (0x158), region = 28  ;;  %s672_s25 = sshll.u32 (!%p157_p3), %s162_s24, 7 }
  0x2a   : > { %s163_s26 = scalar_lea.sflag (!%p157_p3), [#allocation3], %s162_s24  ;;  %s1007_s28 = scalar_lea.vmem (!%p157_p3), [#allocation2], %s672_s25 }
  0x30   : > { %879 = dma.done.wait (%p957_p7), %s163_s26, 2048  }
  0x31   : > { %881 = vsyncadd (%p957_p7), %s163_s26, 4294965248  ;;  %v824_v0 = vld [vmem:[%s1184_s1] sm:$0xff]   ;;  %v825_v1 = vld [vmem:[%s1184_s1 + $0x8] sm:$0xff]   ;;  %s673_s22 = sshll.u32 %s940_s16, 4  ;;  %vm549_vm0 = vcmask 519168   ;;  %vm390_vm1 = vcmask 523264  }
  0x32   : > { %735 = vmatprep.subr.bf16.mxu0 %v824_v0  ;;  %767 = vmatprep.subr.bf16.mxu1 %v824_v0  ;;  %v826_v2 = vld [vmem:[%s1184_s1 + $0x10] sm:$0xff]   ;;  %v827_v3 = vld [vmem:[%s1184_s1 + $0x18] sm:$0xff]   ;;  %v205_v4 = vld [vmem:[%s1007_s28] sm:$0xff]  ;;  %p195_p7 = scmp.lt.s32.totalorder %s673_s22, 63  ;;  %p200_p8 = scmp.lt.s32.totalorder %s940_s16, 3  ;;  %vm481_vm2 = vcmask 1040384  }
  0x33   : > { %736 = vmatpush3.bf16.msra.mxu0 %v824_v0  ;;  %775 = vmatpush3.bf16.msra.mxu1 %v824_v0  ;;  %v206_v5 = vld [vmem:[%s1007_s28 + $0x8] sm:$0xff]  ;;  %v213_v7 = vld [vmem:[%s1007_s28 + $0x40] sm:$0xff]  ;;  %v830_v12 = vld [vmem:[%s1184_s1 + $0x30] sm:$0xff]   ;;  %vm483_vm3 = vcmask 517120  }
  0x34   : > { %737 = vmatprep.subr.bf16.mxu0 %v825_v1  ;;  %768 = vmatprep.subr.bf16.mxu1 %v825_v1  ;;  %v221_v6 = vpack.c.bf16 %v206_v5, %v205_v4  ;;  %v214_v8 = vld [vmem:[%s1007_s28 + $0x48] sm:$0xff]  ;;  %v828_v9 = vld [vmem:[%s1184_s1 + $0x20] sm:$0xff]   ;;  %v831_v13 = vld [vmem:[%s1184_s1 + $0x38] sm:$0xff]   ;;  %s1195_s22 = smov (!%p195_p7, %s673_s22), 63  ;;  %s1197_s16 = smov (!%p200_p8, %s940_s16), 3 }
  0x35   : > { %v225_v10 = vpack.c.bf16 %v214_v8, %v213_v7  ;;  %v829_v11 = vld [vmem:[%s1184_s1 + $0x28] sm:$0xff]   ;;  %v207_v14 = vld [vmem:[%s1007_s28 + $0x10] sm:$0xff]  ;;  %v208_v15 = vld [vmem:[%s1007_s28 + $0x18] sm:$0xff]  ;;  %s674_s23 = sshll.u32 %s1195_s22, 2 }
  0x36   : > { %751 = vmatprep.mubr.bf16.mxu0 %v221_v6  ;;  %v209_v16 = vld [vmem:[%s1007_s28 + $0x20] sm:$0xff]  ;;  %v215_v17 = vld [vmem:[%s1007_s28 + $0x50] sm:$0xff]  ;;  %v216_v18 = vld [vmem:[%s1007_s28 + $0x58] sm:$0xff]  ;;  %v222_v22 = vpack.c.bf16 %v208_v15, %v207_v14  ;;  %s1057_s26 = scalar_lea.vmem %s1185_s2, %s674_s23 }
  0x37   : > { %738 = vmatpush3.bf16.msra.mxu0 %v825_v1  ;;  %776 = vmatpush3.bf16.msra.mxu1 %v825_v1  ;;  %v210_v19 = vld [vmem:[%s1007_s28 + $0x28] sm:$0xff]  ;;  %v217_v20 = vld [vmem:[%s1007_s28 + $0x60] sm:$0xff]  ;;  %v226_v23 = vpack.c.bf16 %v216_v18, %v215_v17  ;;  %v211_v26 = vld [vmem:[%s1007_s28 + $0x30] sm:$0xff] }
  0x38   : > { %739 = vmatprep.subr.bf16.mxu0 %v826_v2  ;;  %769 = vmatprep.subr.bf16.mxu1 %v826_v2  ;;  %v218_v21 = vld [vmem:[%s1007_s28 + $0x68] sm:$0xff]  ;;  %v223_v24 = vpack.c.bf16 %v210_v19, %v209_v16  ;;  %v212_v27 = vld [vmem:[%s1007_s28 + $0x38] sm:$0xff]  ;;  %v219_v28 = vld [vmem:[%s1007_s28 + $0x70] sm:$0xff] }
  0x39   : > { %759 = vmatprep.mubr.bf16.mxu1 %v225_v10  ;;  %v227_v25 = vpack.c.bf16 %v218_v21, %v217_v20  ;;  %v220_v29 = vld [vmem:[%s1007_s28 + $0x78] sm:$0xff]  ;;  %v224_v30 = vpack.c.bf16 %v212_v27, %v211_v26  ;;  %s675_s28 = sshll.u32 %s1197_s16, 1 }
  0x3a   : > { %v228_v31 = vpack.c.bf16 %v220_v29, %v219_v28  ;;  %s203_s15 = scalar_lea.vmem %s1186_s3, %s675_s28 }
  0x3b   : > { %740 = vmatpush3.bf16.msra.mxu0 %v826_v2  ;;  %777 = vmatpush3.bf16.msra.mxu1 %v826_v2 }
  0x3c   : > { %741 = vmatprep.subr.bf16.mxu0 %v827_v3  ;;  %770 = vmatprep.subr.bf16.mxu1 %v827_v3 }
  0x3f   : > { %742 = vmatpush3.bf16.msra.mxu0 %v827_v3  ;;  %778 = vmatpush3.bf16.msra.mxu1 %v827_v3 }
  0x40   : > { %743 = vmatprep.subr.bf16.mxu0 %v828_v9  ;;  %771 = vmatprep.subr.bf16.mxu1 %v828_v9 }
  0x43   : > { %744 = vmatpush3.bf16.msra.mxu0 %v828_v9  ;;  %779 = vmatpush3.bf16.msra.mxu1 %v828_v9 }
  0x44   : > { %745 = vmatprep.subr.bf16.mxu0 %v829_v11  ;;  %772 = vmatprep.subr.bf16.mxu1 %v829_v11 }
  0x47   : > { %746 = vmatpush3.bf16.msra.mxu0 %v829_v11  ;;  %780 = vmatpush3.bf16.msra.mxu1 %v829_v11 }
  0x48   : > { %747 = vmatprep.subr.bf16.mxu0 %v830_v12  ;;  %773 = vmatprep.subr.bf16.mxu1 %v830_v12 }
  0x4b   : > { %748 = vmatpush3.bf16.msra.mxu0 %v830_v12  ;;  %781 = vmatpush3.bf16.msra.mxu1 %v830_v12 }
  0x4c   : > { %749 = vmatprep.subr.bf16.mxu0 %v831_v13  ;;  %774 = vmatprep.subr.bf16.mxu1 %v831_v13 }
  0x4f   : > { %750 = vmatpush3.bf16.msra.mxu0 %v831_v13  ;;  %782 = vmatpush3.bf16.msra.mxu1 %v831_v13 }
  0x52   : > { %752 = vmatmul.mubr.bf16.vlgmr.msra.gmra.mrb[0].mxu0 %v222_v22  ;;  %760 = vmatmul.mubr.bf16.vlgmr.msra.gmra.mrb[0].mxu1 %v226_v23 }
  0x53   : > { %755 = vmatprep.mubr.bf16.mxu0 %v223_v24  ;;  %763 = vmatprep.mubr.bf16.mxu1 %v227_v25 }
  0x5a   : > { %756 = vmatmul.mubr.bf16.gmra.mrb[4].mxu0 %v224_v30  ;;  %764 = vmatmul.mubr.bf16.gmra.mrb[4].mxu1 %v228_v31 }
 0x125   : > { %v753_v32 = vpop.f32.mrb[0].mxu0  ;;  %v1059_v33 = vpop.f32.mrb[0].mxu1 }
 0x126   : > { %v705_v34 = vpack.c.bf16 %v753_v32, %v753_v32  ;;  %v327_v35 = vpop.f32.mrb[1].mxu0  ;;  %v1061_v36 = vpop.f32.mrb[1].mxu1  ;;  %v430_v41 = vmul.f32 %v753_v32, %v753_v32  ;;  %v713_v51 = vpack.c.bf16 %v1059_v33, %v1059_v33  ;;  %v394_v52 = vsel %vm390_vm1, %v753_v32, 0.0 }
 0x127   : > { %v428_v37 = vmul.f32 %v327_v35, %v327_v35  ;;  %v703_v38 = vpack.c.bf16 %v327_v35, %v327_v35  ;;  %v754_v39 = vpop.f32.mrb[2].mxu0  ;;  %v1063_v40 = vpop.f32.mrb[2].mxu1  ;;  %v391_v45 = vsel %vm390_vm1, %v327_v35, 0.0  ;;  %v711_v55 = vpack.c.bf16 %v1061_v36, %v1061_v36 }
 0x128   : > { %552 = vst.msk [vmem:[%s1057_s26 + $0x8] sm:$0xf] %vm549_vm0, %v705_v34  ;;  %v706_v42 = vpack.c.bf16 %v754_v39, %v754_v39  ;;  %v330_v43 = vpop.f32.mrb[3].mxu0  ;;  %v1067_v44 = vpop.f32.mrb[3].mxu1  ;;  %v431_v49 = vmul.f32 %v754_v39, %v754_v39  ;;  %560 = vst.msk [vmem:[%s1057_s26 + $0x28] sm:$0xf] %vm549_vm0, %v713_v51  ;;  %v714_v60 = vpack.c.bf16 %v1063_v40, %v1063_v40 }
 0x129   : > { %550 = vst.msk [vmem:[%s1057_s26] sm:$0xf] %vm549_vm0, %v703_v38  ;;  %v392_v46 = vsel %vm390_vm1, %v330_v43, 0.0  ;;  %v429_v47 = vmul.f32 %v330_v43, %v330_v43  ;;  %v704_v48 = vpack.c.bf16 %v330_v43, %v330_v43  ;;  %v444_v53 = vsel %vm390_vm1, %v428_v37, 0.0  ;;  %558 = vst.msk [vmem:[%s1057_s26 + $0x20] sm:$0xf] %vm549_vm0, %v711_v55 }
 0x12a   : > { %553 = vst.msk [vmem:[%s1057_s26 + $0xc] sm:$0xf] %vm549_vm0, %v706_v42  ;;  %v393_v50 = vadd.f32 %v392_v46, %v391_v45  ;;  %v447_v58 = vsel %vm390_vm1, %v430_v41, 0.0  ;;  %v396_v62 = vsel %vm390_vm1, %v754_v39, 0.0  ;;  %v449_v63 = vsel %vm390_vm1, %v431_v49, 0.0 }
 0x12b   : > { %v445_v54 = vsel %vm390_vm1, %v429_v47, 0.0  ;;  %551 = vst.msk [vmem:[%s1057_s26 + $0x4] sm:$0xf] %vm549_vm0, %v704_v48  ;;  %561 = vst.msk [vmem:[%s1057_s26 + $0x2c] sm:$0xf] %vm549_vm0, %v714_v60  ;;  %v436_v22 = vmul.f32 %v1061_v36, %v1061_v36  ;;  %v712_v23 = vpack.c.bf16 %v1067_v44, %v1067_v44  ;;  %v406_v32 = vsel %vm390_vm1, %v1061_v36, 0.0 }
 0x12c   : > { %v395_v56 = vadd.f32 %v394_v52, %v393_v50  ;;  %v446_v57 = vadd.f32 %v445_v54, %v444_v53  ;;  %v437_v42 = vmul.f32 %v1067_v44, %v1067_v44  ;;  %v438_v46 = vmul.f32 %v1059_v33, %v1059_v33 }
 0x12d   : > { %v757_v59 = vpop.f32.mrb[4].mxu0  ;;  %v1091_v61 = vpop.f32.mrb[4].mxu1  ;;  %559 = vst.msk [vmem:[%s1057_s26 + $0x24] sm:$0xf] %vm549_vm0, %v712_v23  ;;  %v459_v41 = vsel %vm390_vm1, %v436_v22, 0.0  ;;  %v408_v47 = vsel %vm390_vm1, %v1067_v44, 0.0  ;;  %v439_v51 = vmul.f32 %v1063_v40, %v1063_v40 }
 0x12e   : > { %v448_v0 = vadd.f32 %v447_v58, %v446_v57  ;;  %v709_v1 = vpack.c.bf16 %v757_v59, %v757_v59  ;;  %v343_v2 = vpop.f32.mrb[5].mxu0  ;;  %v375_v3 = vpop.f32.mrb[5].mxu1  ;;  %v397_v4 = vadd.f32 %v396_v62, %v395_v56  ;;  %v434_v17 = vmul.f32 %v757_v59, %v757_v59 }
 0x12f   : > { %v398_v5 = vsel %vm390_vm1, %v343_v2, 0.0  ;;  %v432_v6 = vmul.f32 %v343_v2, %v343_v2  ;;  %v707_v7 = vpack.c.bf16 %v343_v2, %v343_v2  ;;  %v758_v8 = vpop.f32.mrb[6].mxu0  ;;  %v1098_v9 = vpop.f32.mrb[6].mxu1  ;;  %v402_v24 = vsel %vm390_vm1, %v757_v59, 0.0 }
 0x130   : > { %556 = vst.msk [vmem:[%s1057_s26 + $0x18] sm:$0xf] %vm549_vm0, %v709_v1  ;;  %v450_v10 = vadd.f32 %v449_v63, %v448_v0  ;;  %v346_v11 = vpop.f32.mrb[7].mxu0  ;;  %v378_v12 = vpop.f32.mrb[7].mxu1  ;;  %v399_v13 = vadd.f32 %v398_v5, %v397_v4  ;;  %v710_v15 = vpack.c.bf16 %v758_v8, %v758_v8  ;;  %v435_v25 = vmul.f32 %v758_v8, %v758_v8 }
 0x131   : > { %v451_v14 = vsel %vm390_vm1, %v432_v6, 0.0  ;;  %554 = vst.msk [vmem:[%s1057_s26 + $0x10] sm:$0xf] %vm549_vm0, %v707_v7  ;;  %v400_v16 = vsel %vm390_vm1, %v346_v11, 0.0  ;;  %v433_v19 = vmul.f32 %v346_v11, %v346_v11  ;;  %v708_v20 = vpack.c.bf16 %v346_v11, %v346_v11 }
 0x132   : > { %v452_v18 = vadd.f32 %v451_v14, %v450_v10  ;;  %557 = vst.msk [vmem:[%s1057_s26 + $0x1c] sm:$0xf] %vm549_vm0, %v710_v15  ;;  %v401_v21 = vadd.f32 %v400_v16, %v399_v13  ;;  %v717_v27 = vpack.c.bf16 %v1091_v61, %v1091_v61  ;;  %v455_v30 = vsel %vm390_vm1, %v434_v17, 0.0 }
 0x133   : > { %v453_v26 = vsel %vm390_vm1, %v433_v19, 0.0  ;;  %555 = vst.msk [vmem:[%s1057_s26 + $0x14] sm:$0xf] %vm549_vm0, %v708_v20  ;;  %v404_v31 = vsel %vm390_vm1, %v758_v8, 0.0  ;;  %v715_v34 = vpack.c.bf16 %v375_v3, %v375_v3  ;;  %v718_v38 = vpack.c.bf16 %v1098_v9, %v1098_v9 }
 0x134   : > { %v403_v28 = vadd.f32 %v402_v24, %v401_v21  ;;  %v454_v29 = vadd.f32 %v453_v26, %v452_v18  ;;  %564 = vst.msk [vmem:[%s1057_s26 + $0x38] sm:$0xf] %vm549_vm0, %v717_v27  ;;  %v457_v39 = vsel %vm390_vm1, %v435_v25, 0.0  ;;  %v716_v43 = vpack.c.bf16 %v378_v12, %v378_v12 }
 0x135   : > { %562 = vst.msk [vmem:[%s1057_s26 + $0x30] sm:$0xf] %vm549_vm0, %v715_v34  ;;  %565 = vst.msk [vmem:[%s1057_s26 + $0x3c] sm:$0xf] %vm549_vm0, %v718_v38  ;;  %v410_v50 = vsel %vm390_vm1, %v1059_v33, 0.0  ;;  %v461_v52 = vsel %vm390_vm1, %v437_v42, 0.0  ;;  %v440_v53 = vmul.f32 %v375_v3, %v375_v3  ;;  %v441_v62 = vmul.f32 %v378_v12, %v378_v12 }
 0x136   : > { %v456_v35 = vadd.f32 %v455_v30, %v454_v29  ;;  %v405_v37 = vadd.f32 %v404_v31, %v403_v28  ;;  %563 = vst.msk [vmem:[%s1057_s26 + $0x34] sm:$0xf] %vm549_vm0, %v716_v43  ;;  %v463_v56 = vsel %vm390_vm1, %v438_v46, 0.0  ;;  %v412_v44 = vsel %vm390_vm1, %v1063_v40, 0.0 }
 0x137   : > { %v414_v57 = vsel %vm390_vm1, %v375_v3, 0.0  ;;  %v465_v60 = vsel %vm390_vm1, %v439_v51, 0.0  ;;  %v467_v33 = vsel %vm390_vm1, %v440_v53, 0.0  ;;  %v442_v1 = vmul.f32 %v1091_v61, %v1091_v61 }
 0x138   : > { %v407_v36 = vadd.f32 %v406_v32, %v405_v37  ;;  %v458_v45 = vadd.f32 %v457_v39, %v456_v35  ;;  %v416_v2 = vsel %vm390_vm1, %v378_v12, 0.0  ;;  %v418_v40 = vsel %vm390_vm1, %v1091_v61, 0.0 }
 0x139   : > { %v443_v3 = vmul.f32 %v1098_v9, %v1098_v9  ;;  %v469_v6 = vsel %vm390_vm1, %v441_v62, 0.0  ;;  %v471_v10 = vsel %vm390_vm1, %v442_v1, 0.0  ;;  %v420_v11 = vsel %vm390_vm1, %v1098_v9, 0.0 }
 0x13a   : > { %v460_v48 = vadd.f32 %v459_v41, %v458_v45  ;;  %v409_v49 = vadd.f32 %v408_v47, %v407_v36 }
 0x13b   : > { %v473_v14 = vsel %vm390_vm1, %v443_v3, 0.0 }
 0x13c   : > { %v411_v54 = vadd.f32 %v410_v50, %v409_v49  ;;  %v462_v55 = vadd.f32 %v461_v52, %v460_v48 }
 0x13e   : > { %v464_v58 = vadd.f32 %v463_v56, %v462_v55  ;;  %v413_v59 = vadd.f32 %v412_v44, %v411_v54 }
 0x140   : > { %v415_v63 = vadd.f32 %v414_v57, %v413_v59  ;;  %v466_v0 = vadd.f32 %v465_v60, %v464_v58 }
 0x142   : > { %v468_v4 = vadd.f32 %v467_v33, %v466_v0  ;;  %v417_v5 = vadd.f32 %v416_v2, %v415_v63 }
 0x144   : > { %v419_v7 = vadd.f32 %v418_v40, %v417_v5  ;;  %v470_v8 = vadd.f32 %v469_v6, %v468_v4 }
 0x146   : > { %v421_v13 = vadd.f32 %v420_v11, %v419_v7  ;;  %v472_v12 = vadd.f32 %v471_v10, %v470_v8 }
 0x148   : > { %v422_v15 = vrot.slane %v421_v13, 4  ;;  %v474_v16 = vadd.f32 %v473_v14, %v472_v12 }
 0x14a   : > { %v423_v61 = vadd.f32 %v422_v15, %v421_v13  ;;  %v475_v17 = vrot.slane %v474_v16, 4 }
 0x14c   : > { %v424_v18 = vrot.slane %v423_v61, 2  ;;  %v476_v19 = vadd.f32 %v475_v17, %v474_v16 }
 0x14e   : > { %v425_v20 = vadd.f32 %v424_v18, %v423_v61  ;;  %v477_v21 = vrot.slane %v476_v19, 2 }
 0x150   : > { %v426_v22 = vrot.slane %v425_v20, 1  ;;  %v478_v23 = vadd.f32 %v477_v21, %v476_v19 }
 0x152   : > { %v479_v24 = vrot.slane %v478_v23, 1  ;;  %v427_v9 = vadd.f32 %v426_v22, %v425_v20 }
 0x154   : > { %v480_v25 = vadd.f32 %v479_v24, %v478_v23 }
 0x156   : > { %v482_v26 = vsel %vm481_vm2, %v427_v9, %v480_v25 }
 0x157   : > { %484 = vst.msk [vmem:[%s203_s15] sm:$0x3] %vm483_vm3, %v482_v26 }
 0x158 PF: > { %p14_p9 = scmp.ge.s32.totalorder %s943_s17, 6   ;;  %s1190_s12 = smov %s888_s13 }
 0x159   : > { %s1191_s13 = smov %s892_s14  ;;  %s1192_s14 = smov %s953_s20 }
 0x15a   : > { %s1193_s15 = smov %s943_s17  ;;  %16 = sbr.rel (!%p14_p9) target bundleno = 3 (0x3), region = 80 }
 0x161   :  { %602 = vsyncpa [#allocation3], 1 }
 0x162   :  { %604 = vsyncpa [#allocation3 + $0x1], 1 }

// kernel: bottleneck_block.7
= control target key start
LH: loop header
LB: loop body
LE: loop exit
PB: predicated region body
PF: predicated region fallthrough
CT: control target
= control target key end

     0   :  { %9 = vsyncpa [#allocation3], 0  ;;  %s841_s0 = inlined_call_operand.vmem [shape: bf16[512,128], index: 0, kind: input, shape index: {}]   ;;  %s842_s1 = inlined_call_operand.vmem [shape: f32[1,128], index: 1, kind: input, shape index: {}]   ;;  %s843_s2 = inlined_call_operand.vmem [shape: f32[1,128], index: 2, kind: input, shape index: {}]   ;;  %s844_s3 = inlined_call_operand.vmem [shape: f32[512,128], index: 3, kind: input, shape index: {}]   ;;  %s845_s4 = inlined_call_operand.hbm [shape: f32[512,128], index: 4, kind: output, shape index: {}]  }
   0x1   :  { %11 = vsyncpa [#allocation3 + $0x1], 0  ;;  %s640_s15 = smov 0   ;;  %s642_s16 = smov 0  }
   0x2   :  { %s644_s17 = smov 0   ;;  %s646_s18 = smov 0  }
   0x3 LB: > { %s661_s19 = sadd.s32 4294967295, %s610_s18   ;;  %s451_s20 = sadd.s32 4294967294, %s610_s18   ;;  %s610_s18 = sphi %s646_s18, %s851_s18   ;;  %s606_s17 = sphi %s644_s17, %s850_s17   ;;  %s602_s16 = sphi %s642_s16, %s849_s16   ;;  %s598_s15 = sphi %s640_s15, %s848_s15  }
   0x4   : > { %s665_s21 = sadd.s32 1, %s610_s18   ;;  %s118_s22 = sadd.s32 1, %s606_s17 }
   0x5   : > { %s115_s23 = ssub.s32 %s610_s18, %s665_s21  ;;  %p128_p0 = scmp.ne.s32.totalorder %s606_s17, %s602_s16 }
   0x6   : > { %p116_p1 = scmp.eq.s32.totalorder %s115_s23, 0  ;;  %p129_p2 = scmp.eq.s32.totalorder %s661_s19, 3 }
   0x7   : > { %p134_p3 = scmp.ne.s32.totalorder %s602_s16, %s598_s15  ;;  %p135_p4 = scmp.eq.s32.totalorder %s451_s20, 3 }
   0x8   : > { %s676_s24 = scalar_select %p116_p1, %s606_s17, %s118_s22  }
   0x9   : > { %p678_p5 = por %p129_p2, %p128_p0  ;;  %p682_p6 = por %p135_p4, %p134_p3 }
   0xa   : > { %p454_p7 = scmp.ge.s32.totalorder %s610_s18, 1  ;;  %p177_p8 = scmp.lt.s32.totalorder %s610_s18, 5 }
   0xc   : > { %p178_p9 = pnand %p454_p7, %p177_p8 }
   0xd   : > { %s456_s27 = sshll.u32 (!%p178_p9), %s661_s19, 4  ;;  %v698_v1 = vld [vmem:[%s842_s1] ss:$0 sm:$0xff] (!%p178_p9)  ;;  %s205_s12 = sand.u32 (!%p178_p9), 1, %s602_s16  }
   0xe   : > { %181 = sbr.rel (%p178_p9) target bundleno = 63 (0x3f), region = 36  ;;  %p209_p10 = scmp.lt.s32.totalorder (!%p178_p9), %s456_s27, 63  ;;  %v710_v5 = vld [vmem:[%s843_s2] ss:$0 sm:$0xff] (!%p178_p9) }
   0xf   : > { %s722_s20 = sshll.u32 (!%p178_p9), %s205_s12, 7  ;;  %s467_s23 = sshll.u32 (!%p178_p9), %s661_s19, 11 }
  0x10   : > { %s746_s22 = scalar_lea.vmem (!%p178_p9), [#allocation2], %s722_s20  ;;  %s800_s30 = scalar_lea.sflag (!%p178_p9), [#allocation3], %s205_s12 }
  0x15   : > { %s853_s27 = smov (!%p209_p10, %s456_s27), 63 }
  0x16   : > { %s457_s28 = sshll.u32 %s853_s27, 2  ;;  %s459_s29 = sshll.u32 %s853_s27, 3 }
  0x17   : > { %s692_s6 = scalar_lea.vmem %s841_s0, %s457_s28  ;;  %s703_s11 = scalar_lea.vmem %s844_s3, %s459_s29 }
  0x18   : > { %v469_v0 = vld [vmem:[%s692_s6] sm:$0xff]   ;;  %v500_v4 = vld [vmem:[%s692_s6 + $0x8] sm:$0xff]   ;;  %v501_v8 = vld [vmem:[%s692_s6 + $0x10] sm:$0xff]   ;;  %s377_s27 = sshll.u32 %s746_s22, 4  ;;  %s788_s29 = scalar_lea.hbm %s845_s4, %s467_s23  ;;  %s790_s27 = int_to_ptr.vmem [resolvable:$true] %s377_s27 }
  0x19   : > { %v470_v2 = vunpack.c.l.bf16 %v469_v0  ;;  %v471_v3 = vunpack.c.h.bf16 %v469_v0  ;;  %v474_v6 = vunpack.c.l.bf16 %v500_v4  ;;  %v475_v7 = vunpack.c.h.bf16 %v500_v4  ;;  %v502_v13 = vld [vmem:[%s692_s6 + $0x18] sm:$0xff]   ;;  %v299_v14 = vld [vmem:[%s703_s11] sm:$0xff]  ;;  %v300_v15 = vld [vmem:[%s703_s11 + $0x8] sm:$0xff]  ;;  %s548_s5 = scalar_lea.vmem %s790_s27, 2048 }
  0x1a   : > { %v478_v11 = vunpack.c.l.bf16 %v501_v8  ;;  %v479_v12 = vunpack.c.h.bf16 %v501_v8  ;;  %v482_v18 = vunpack.c.l.bf16 %v502_v13  ;;  %v483_v19 = vunpack.c.h.bf16 %v502_v13  ;;  %v301_v22 = vld [vmem:[%s703_s11 + $0x10] sm:$0xff]  ;;  %v302_v23 = vld [vmem:[%s703_s11 + $0x18] sm:$0xff]  ;;  %v303_v28 = vld [vmem:[%s703_s11 + $0x20] sm:$0xff]  ;;  %p549_p11 = scmp.ne.s32.totalorder %s790_s27, %s548_s5 }
  0x1b   : > { %v260_v9 = vmul.f32 %v470_v2, %v698_v1  ;;  %v261_v10 = vmul.f32 %v471_v3, %v698_v1  ;;  %v262_v16 = vmul.f32 %v474_v6, %v698_v1  ;;  %v263_v17 = vmul.f32 %v475_v7, %v698_v1  ;;  %v304_v29 = vld [vmem:[%s703_s11 + $0x28] sm:$0xff]  ;;  %v305_v36 = vld [vmem:[%s703_s11 + $0x30] sm:$0xff]  ;;  %v306_v37 = vld [vmem:[%s703_s11 + $0x38] sm:$0xff] }
  0x1c   : > { %v264_v24 = vmul.f32 %v478_v11, %v698_v1  ;;  %v265_v25 = vmul.f32 %v479_v12, %v698_v1  ;;  %v266_v30 = vmul.f32 %v482_v18, %v698_v1  ;;  %v267_v31 = vmul.f32 %v483_v19, %v698_v1  ;;  %v503_v42 = vld [vmem:[%s692_s6 + $0x20] sm:$0xff]   ;;  %v504_v47 = vld [vmem:[%s692_s6 + $0x28] sm:$0xff]   ;;  %v505_v52 = vld [vmem:[%s692_s6 + $0x30] sm:$0xff]   ;;  %p550_p12 = pnand %p549_p11, %p678_p5 }
  0x1d   : > { %v283_v20 = vadd.f32 %v710_v5, %v260_v9  ;;  %v284_v21 = vadd.f32 %v710_v5, %v261_v10  ;;  %v285_v26 = vadd.f32 %v710_v5, %v262_v16  ;;  %v286_v27 = vadd.f32 %v710_v5, %v263_v17  ;;  %v506_v57 = vld [vmem:[%s692_s6 + $0x38] sm:$0xff]   ;;  %v307_v3 = vld [vmem:[%s703_s11 + $0x40] sm:$0xff]  ;;  %v308_v4 = vld [vmem:[%s703_s11 + $0x48] sm:$0xff]  ;;  %s612_s6 = smov [#allocation2]  }
  0x1e   : > { %v287_v34 = vadd.f32 %v710_v5, %v264_v24  ;;  %v288_v35 = vadd.f32 %v710_v5, %v265_v25  ;;  %v289_v40 = vadd.f32 %v710_v5, %v266_v30  ;;  %v290_v41 = vadd.f32 %v710_v5, %v267_v31  ;;  %v309_v12 = vld [vmem:[%s703_s11 + $0x50] sm:$0xff]  ;;  %v310_v13 = vld [vmem:[%s703_s11 + $0x58] sm:$0xff]  ;;  %v311_v18 = vld [vmem:[%s703_s11 + $0x60] sm:$0xff]  ;;  %p551_p13 = pneg %p550_p12  ;;  %s552_s7 = sshll.u32 %s612_s6, 4  ;;  %s553_s7 = int_to_ptr.vmem [resolvable:$false] %s552_s7 }
  0x1f   : > { %v315_v32 = vadd.f32 %v299_v14, %v283_v20  ;;  %v316_v33 = vadd.f32 %v300_v15, %v284_v21  ;;  %v317_v38 = vadd.f32 %v301_v22, %v285_v26  ;;  %v318_v39 = vadd.f32 %v302_v23, %v286_v27  ;;  %v312_v19 = vld [vmem:[%s703_s11 + $0x68] sm:$0xff]  ;;  %v313_v26 = vld [vmem:[%s703_s11 + $0x70] sm:$0xff]  ;;  %v314_v27 = vld [vmem:[%s703_s11 + $0x78] sm:$0xff]  ;;  %s554_s8 = scalar_lea.vmem %s553_s7, 4096  ;;  %p555_p0 = scmp.lt.s32.totalorder %s790_s27, %s553_s7 }
  0x20   : > { %v319_v45 = vadd.f32 %v303_v28, %v287_v34  ;;  %v320_v46 = vadd.f32 %v304_v29, %v288_v35  ;;  %v321_v50 = vadd.f32 %v305_v36, %v289_v40  ;;  %v322_v51 = vadd.f32 %v306_v37, %v290_v41  ;;  %p556_p1 = scmp.lt.s32.totalorder %s554_s8, %s548_s5 }
  0x21   : > { %v331_v43 = vmax.f32 %v315_v32, 0.0  ;;  %v332_v44 = vmax.f32 %v316_v33, 0.0  ;;  %v333_v48 = vmax.f32 %v317_v38, 0.0  ;;  %v334_v49 = vmax.f32 %v318_v39, 0.0 }
  0x22   : > { %v335_v53 = vmax.f32 %v319_v45, 0.0  ;;  %v336_v54 = vmax.f32 %v320_v46, 0.0  ;;  %v486_v55 = vunpack.c.l.bf16 %v503_v42  ;;  %v487_v56 = vunpack.c.h.bf16 %v503_v42  ;;  %p557_p2 = por %p556_p1, %p555_p0 }
  0x23   : > { %347 = vst [vmem:[%s746_s22] sm:$0xff] %v331_v43  ;;  %348 = vst [vmem:[%s746_s22 + $0x8] sm:$0xff] %v332_v44  ;;  %v337_v58 = vmax.f32 %v321_v50, 0.0  ;;  %v338_v59 = vmax.f32 %v322_v51, 0.0  ;;  %v490_v60 = vunpack.c.l.bf16 %v504_v47  ;;  %v491_v61 = vunpack.c.h.bf16 %v504_v47 }
  0x24   : > { %349 = vst [vmem:[%s746_s22 + $0x10] sm:$0xff] %v333_v48  ;;  %350 = vst [vmem:[%s746_s22 + $0x18] sm:$0xff] %v334_v49  ;;  %v268_v62 = vmul.f32 %v486_v55, %v698_v1  ;;  %v269_v63 = vmul.f32 %v487_v56, %v698_v1  ;;  %v494_v0 = vunpack.c.l.bf16 %v505_v52  ;;  %v495_v2 = vunpack.c.h.bf16 %v505_v52  ;;  %p558_p3 = pnand %p557_p2, %p551_p13 }
  0x25   : > { %351 = vst [vmem:[%s746_s22 + $0x20] sm:$0xff] %v335_v53  ;;  %352 = vst [vmem:[%s746_s22 + $0x28] sm:$0xff] %v336_v54  ;;  %v270_v6 = vmul.f32 %v490_v60, %v698_v1  ;;  %v271_v7 = vmul.f32 %v491_v61, %v698_v1  ;;  %v498_v8 = vunpack.c.l.bf16 %v506_v57  ;;  %v499_v9 = vunpack.c.h.bf16 %v506_v57 }
  0x26   : > { %353 = vst [vmem:[%s746_s22 + $0x30] sm:$0xff] %v337_v58  ;;  %354 = vst [vmem:[%s746_s22 + $0x38] sm:$0xff] %v338_v59  ;;  %v291_v10 = vadd.f32 %v710_v5, %v268_v62  ;;  %v292_v11 = vadd.f32 %v710_v5, %v269_v63  ;;  %v272_v14 = vmul.f32 %v494_v0, %v698_v1 }
  0x27   : > { %v273_v15 = vmul.f32 %v495_v2, %v698_v1  ;;  %v293_v16 = vadd.f32 %v710_v5, %v270_v6  ;;  %v294_v17 = vadd.f32 %v710_v5, %v271_v7  ;;  %v274_v20 = vmul.f32 %v498_v8, %v698_v1 }
  0x28   : > { %v275_v21 = vmul.f32 %v499_v9, %v698_v1  ;;  %v323_v22 = vadd.f32 %v307_v3, %v291_v10  ;;  %v324_v23 = vadd.f32 %v308_v4, %v292_v11  ;;  %v295_v24 = vadd.f32 %v710_v5, %v272_v14 }
  0x29   : > { %v296_v25 = vadd.f32 %v710_v5, %v273_v15  ;;  %v325_v28 = vadd.f32 %v309_v12, %v293_v16  ;;  %v326_v29 = vadd.f32 %v310_v13, %v294_v17  ;;  %v297_v30 = vadd.f32 %v710_v5, %v274_v20 }
  0x2a   : > { %v298_v31 = vadd.f32 %v710_v5, %v275_v21  ;;  %v339_v1 = vmax.f32 %v323_v22, 0.0  ;;  %v340_v32 = vmax.f32 %v324_v23, 0.0  ;;  %v327_v33 = vadd.f32 %v311_v18, %v295_v24 }
  0x2b   : > { %v328_v34 = vadd.f32 %v312_v19, %v296_v25  ;;  %v341_v35 = vmax.f32 %v325_v28, 0.0  ;;  %v342_v36 = vmax.f32 %v326_v29, 0.0  ;;  %v329_v37 = vadd.f32 %v313_v26, %v297_v30 }
  0x2c   : > { %v330_v38 = vadd.f32 %v314_v27, %v298_v31  ;;  %355 = vst [vmem:[%s746_s22 + $0x40] sm:$0xff] %v339_v1  ;;  %356 = vst [vmem:[%s746_s22 + $0x48] sm:$0xff] %v340_v32  ;;  %v343_v5 = vmax.f32 %v327_v33, 0.0 }
  0x2d   : > { %v344_v39 = vmax.f32 %v328_v34, 0.0  ;;  %357 = vst [vmem:[%s746_s22 + $0x50] sm:$0xff] %v341_v35  ;;  %358 = vst [vmem:[%s746_s22 + $0x58] sm:$0xff] %v342_v36  ;;  %v345_v40 = vmax.f32 %v329_v37, 0.0 }
  0x2e   : > { %v346_v41 = vmax.f32 %v330_v38, 0.0  ;;  %359 = vst [vmem:[%s746_s22 + $0x60] sm:$0xff] %v343_v5 }
  0x2f   : > { %360 = vst [vmem:[%s746_s22 + $0x68] sm:$0xff] %v344_v39  ;;  %361 = vst [vmem:[%s746_s22 + $0x70] sm:$0xff] %v345_v40 }
  0x30   : > { %362 = vst [vmem:[%s746_s22 + $0x78] sm:$0xff] %v346_v41 }
  0x31   : > { %561 = shalt.err (!%p558_p3)
}
  0x32   : > { %s562_s9 = scalar_lea.hbm %s788_s29, 2048  ;;  %s566_s12 = scalar_lea.hbm %s845_s4, 8192 }
  0x33   : > { %p563_p4 = scmp.ne.s32.totalorder %s788_s29, %s562_s9  ;;  %p567_p9 = scmp.lt.u32.totalorder %s788_s29, %s845_s4 }
  0x34   : > { %p568_p10 = scmp.lt.u32.totalorder %s566_s12, %s562_s9  ;;  %p570_p12 = scmp.lt.u32.totalorder %s562_s9, %s788_s29 }
  0x35   : > { %p564_p7 = pnand %p563_p4, %p678_p5 }
  0x36   : > { %p569_p11 = por %p568_p10, %p567_p9 }
  0x37   : > { %p565_p8 = pneg %p564_p7 }
  0x38   : > { %p571_p13 = por %p570_p12, %p569_p11 }
  0x3a   : > { %p572_p0 = pnand %p571_p13, %p565_p8 }
  0x3c   : > { %575 = shalt.err (!%p572_p0)
}
  0x3d   : > { %s613_s20 = smov 128   ;;  %s614_s22 = smov 8  }
  0x3e   : > { %507 = dma.vmem_to_hbm [thread:$0]  (%p678_p5), %s790_s27, 2048, %s788_s29, %s800_s30, %s613_s20, %s613_s20, %s614_s22  }
  0x3f PF: > { %p513_p1 = scmp.ge.s32.totalorder %s610_s18, 2  ;;  %s392_s23 = sand.u32 1, %s598_s15  }
  0x40   : > { %s393_s19 = scalar_lea.sflag [#allocation3], %s392_s23 }
  0x41   : > { %p510_p2 = pnand %p513_p1, %p682_p6 }
  0x43   : > { %593 = dma.done.wait (!%p510_p2), %s393_s19, 2048  }
  0x44   : > { %595 = vsyncadd (!%p510_p2), %s393_s19, 4294965248  ;;  %p14_p3 = scmp.ge.s32.totalorder %s665_s21, 6   ;;  %s848_s15 = smov %s602_s16 }
  0x45   : > { %s849_s16 = smov %s606_s17  ;;  %s850_s17 = smov %s676_s24 }
  0x46   : > { %s851_s18 = smov %s665_s21  ;;  %16 = sbr.rel (!%p14_p3) target bundleno = 3 (0x3), region = 74 }
  0x4d   :  { %398 = vsyncpa [#allocation3], 1 }
  0x4e   :  { %400 = vsyncpa [#allocation3 + $0x1], 1 }

// kernel: bottleneck_block.6
= control target key start
LH: loop header
LB: loop body
LE: loop exit
PB: predicated region body
PF: predicated region fallthrough
CT: control target
= control target key end

     0   :  { %s989_s18 = smov 0   ;;  %s1107_s0 = inlined_call_operand.vmem [shape: bf16[512,128], index: 0, kind: input, shape index: {}]   ;;  %s1108_s1 = inlined_call_operand.vmem [shape: f32[1,128], index: 1, kind: input, shape index: {}]   ;;  %s1109_s2 = inlined_call_operand.vmem [shape: f32[1,128], index: 2, kind: input, shape index: {}]   ;;  %s1110_s3 = inlined_call_operand.vmem [shape: bf16[128,128], index: 3, kind: input, shape index: {}]   ;;  %s1111_s4 = inlined_call_operand.vmem [shape: bf16[512,128], index: 4, kind: output, shape index: {0}]   ;;  %s1112_s5 = inlined_call_operand.vmem [shape: f32[4,2,128], index: 5, kind: output, shape index: {1}]  }
   0x1 LB: > { %s995_s19 = sadd.s32 4294967295, %s957_s18   ;;  %p735_p0 = scmp.ge.s32.totalorder %s957_s18, 1  ;;  %s957_s18 = sphi %s989_s18, %s16_s18  }
   0x2   : > { %p191_p1 = scmp.lt.s32.totalorder %s957_s18, 5 }
   0x4   : > { %p192_p2 = pnand %p735_p0, %p191_p1 }
   0x5   : > { %v943_v0 = vld [vmem:[%s1110_s3] sm:$0xff] (!%p192_p2)   ;;  %s736_s22 = sshll.u32 (!%p192_p2), %s995_s19, 4  ;;  %v944_v1 = vld [vmem:[%s1110_s3 + $0x8] sm:$0xff] (!%p192_p2)   ;;  %v945_v2 = vld [vmem:[%s1110_s3 + $0x10] sm:$0xff] (!%p192_p2)   ;;  %p235_p4 = scmp.lt.s32.totalorder (!%p192_p2), %s995_s19, 3  ;;  %vm561_vm0 = vcmask (!%p192_p2), 1040384  }
   0x6   : > { %195 = sbr.rel (%p192_p2) target bundleno = 299 (0x12b), region = 36  ;;  %p224_p3 = scmp.lt.s32.totalorder (!%p192_p2), %s736_s22, 63  ;;  %887 = vmatprep.subr.bf16.mxu0 (!%p192_p2), %v943_v0  ;;  %919 = vmatprep.subr.bf16.mxu1 (!%p192_p2), %v943_v0  ;;  %v946_v3 = vld [vmem:[%s1110_s3 + $0x18] sm:$0xff] (!%p192_p2)   ;;  %v1026_v5 = vld [vmem:[%s1108_s1] ss:$0 sm:$0xff] (!%p192_p2)  ;;  %v948_v28 = vld [vmem:[%s1110_s3 + $0x28] sm:$0xff] (!%p192_p2)  }
   0x7   : > { %888 = vmatpush3.bf16.msra.mxu0 (!%p192_p2), %v943_v0  ;;  %927 = vmatpush3.bf16.msra.mxu1 (!%p192_p2), %v943_v0  ;;  %v1033_v10 = vld [vmem:[%s1109_s2] ss:$0 sm:$0xff] (!%p192_p2)  ;;  %v949_v44 = vld [vmem:[%s1110_s3 + $0x30] sm:$0xff] (!%p192_p2)   ;;  %v950_v61 = vld [vmem:[%s1110_s3 + $0x38] sm:$0xff] (!%p192_p2)  }
   0x8   : > { %889 = vmatprep.subr.bf16.mxu0 (!%p192_p2), %v944_v1  ;;  %920 = vmatprep.subr.bf16.mxu1 (!%p192_p2), %v944_v1  ;;  %v947_v16 = vld [vmem:[%s1110_s3 + $0x20] sm:$0xff] (!%p192_p2)  }
   0xb   : > { %890 = vmatpush3.bf16.msra.mxu0 (!%p192_p2), %v944_v1  ;;  %928 = vmatpush3.bf16.msra.mxu1 (!%p192_p2), %v944_v1 }
   0xc   : > { %891 = vmatprep.subr.bf16.mxu0 (!%p192_p2), %v945_v2  ;;  %921 = vmatprep.subr.bf16.mxu1 (!%p192_p2), %v945_v2 }
   0xd   : > { %s1114_s22 = smov (!%p224_p3, %s736_s22), 63  ;;  %s1116_s19 = smov (!%p235_p4, %s995_s19), 3 }
   0xe   : > { %s737_s27 = sshll.u32 %s1114_s22, 2  ;;  %s740_s22 = sshll.u32 %s1116_s19, 1 }
   0xf   : > { %s1017_s30 = scalar_lea.vmem %s1107_s0, %s737_s27  ;;  %892 = vmatpush3.bf16.msra.mxu0 %v945_v2  ;;  %929 = vmatpush3.bf16.msra.mxu1 %v945_v2  ;;  %s1089_s25 = scalar_lea.vmem %s1111_s4, %s737_s27 }
  0x10   : > { %v786_v4 = vld [vmem:[%s1017_s30] sm:$0xff]   ;;  %v857_v8 = vld [vmem:[%s1017_s30 + $0x8] sm:$0xff]   ;;  %v858_v9 = vld [vmem:[%s1017_s30 + $0x10] sm:$0xff]   ;;  %893 = vmatprep.subr.bf16.mxu0 %v946_v3  ;;  %922 = vmatprep.subr.bf16.mxu1 %v946_v3  ;;  %s238_s28 = scalar_lea.vmem %s1112_s5, %s740_s22 }
  0x11   : > { %v787_v6 = vunpack.c.l.bf16 %v786_v4  ;;  %v788_v7 = vunpack.c.h.bf16 %v786_v4  ;;  %v791_v11 = vunpack.c.l.bf16 %v857_v8  ;;  %v792_v14 = vunpack.c.h.bf16 %v857_v8  ;;  %v860_v15 = vld [vmem:[%s1017_s30 + $0x20] sm:$0xff]   ;;  %v859_v22 = vld [vmem:[%s1017_s30 + $0x18] sm:$0xff]   ;;  %v861_v27 = vld [vmem:[%s1017_s30 + $0x28] sm:$0xff]  }
  0x12   : > { %v795_v17 = vunpack.c.l.bf16 %v858_v9  ;;  %v796_v21 = vunpack.c.h.bf16 %v858_v9  ;;  %v803_v23 = vunpack.c.l.bf16 %v860_v15  ;;  %v862_v30 = vld [vmem:[%s1017_s30 + $0x30] sm:$0xff]   ;;  %v799_v32 = vunpack.c.l.bf16 %v859_v22  ;;  %v863_v39 = vld [vmem:[%s1017_s30 + $0x38] sm:$0xff]  }
  0x13   : > { %v279_v12 = vmul.f32 %v787_v6, %v1026_v5  ;;  %v280_v13 = vmul.f32 %v788_v7, %v1026_v5  ;;  %v281_v20 = vmul.f32 %v791_v11, %v1026_v5  ;;  %894 = vmatpush3.bf16.msra.mxu0 %v946_v3  ;;  %930 = vmatpush3.bf16.msra.mxu1 %v946_v3  ;;  %v800_v33 = vunpack.c.h.bf16 %v859_v22 }
  0x14   : > { %v282_v26 = vmul.f32 %v792_v14, %v1026_v5  ;;  %895 = vmatprep.subr.bf16.mxu0 %v947_v16  ;;  %923 = vmatprep.subr.bf16.mxu1 %v947_v16  ;;  %v283_v29 = vmul.f32 %v795_v17, %v1026_v5  ;;  %v804_v34 = vunpack.c.h.bf16 %v860_v15  ;;  %v284_v36 = vmul.f32 %v796_v21, %v1026_v5 }
  0x15   : > { %v302_v18 = vadd.f32 %v1033_v10, %v279_v12  ;;  %v303_v19 = vadd.f32 %v1033_v10, %v280_v13  ;;  %v304_v35 = vadd.f32 %v1033_v10, %v281_v20  ;;  %v287_v37 = vmul.f32 %v803_v23, %v1026_v5 }
  0x16   : > { %v807_v38 = vunpack.c.l.bf16 %v861_v27  ;;  %v305_v40 = vadd.f32 %v1033_v10, %v282_v26  ;;  %v288_v41 = vmul.f32 %v804_v34, %v1026_v5  ;;  %v808_v42 = vunpack.c.h.bf16 %v861_v27 }
  0x17   : > { %v318_v24 = vmax.f32 %v302_v18, 0.0  ;;  %v319_v25 = vmax.f32 %v303_v19, 0.0  ;;  %896 = vmatpush3.bf16.msra.mxu0 %v947_v16  ;;  %931 = vmatpush3.bf16.msra.mxu1 %v947_v16  ;;  %v811_v43 = vunpack.c.l.bf16 %v862_v30  ;;  %v306_v45 = vadd.f32 %v1033_v10, %v283_v29 }
  0x18   : > { %897 = vmatprep.subr.bf16.mxu0 %v948_v28  ;;  %v310_v46 = vadd.f32 %v1033_v10, %v287_v37  ;;  %v289_v47 = vmul.f32 %v807_v38, %v1026_v5  ;;  %v812_v48 = vunpack.c.h.bf16 %v862_v30  ;;  %924 = vmatprep.subr.bf16.mxu1 %v948_v28  ;;  %v311_v49 = vadd.f32 %v1033_v10, %v288_v41 }
  0x19   : > { %v334_v31 = vpack.c.bf16 %v319_v25, %v318_v24  ;;  %v290_v50 = vmul.f32 %v808_v42, %v1026_v5  ;;  %v291_v51 = vmul.f32 %v811_v43, %v1026_v5  ;;  %v815_v52 = vunpack.c.l.bf16 %v863_v39 }
  0x1a   : > { %v326_v53 = vmax.f32 %v310_v46, 0.0  ;;  %v312_v54 = vadd.f32 %v1033_v10, %v289_v47  ;;  %v292_v55 = vmul.f32 %v812_v48, %v1026_v5  ;;  %v816_v56 = vunpack.c.h.bf16 %v863_v39 }
  0x1b   : > { %903 = vmatprep.mubr.bf16.mxu0 %v334_v31  ;;  %898 = vmatpush3.bf16.msra.mxu0 %v948_v28  ;;  %v307_v57 = vadd.f32 %v1033_v10, %v284_v36  ;;  %v327_v58 = vmax.f32 %v311_v49, 0.0  ;;  %v313_v59 = vadd.f32 %v1033_v10, %v290_v50  ;;  %v314_v60 = vadd.f32 %v1033_v10, %v291_v51 }
  0x1c   : > { %932 = vmatpush3.bf16.msra.mxu1 %v948_v28  ;;  %899 = vmatprep.subr.bf16.mxu0 %v949_v44  ;;  %v285_v62 = vmul.f32 %v799_v32, %v1026_v5  ;;  %v315_v63 = vadd.f32 %v1033_v10, %v292_v55  ;;  %v320_v0 = vmax.f32 %v304_v35, 0.0  ;;  %v321_v1 = vmax.f32 %v305_v40, 0.0 }
  0x1d   : > { %925 = vmatprep.subr.bf16.mxu1 %v949_v44  ;;  %v286_v2 = vmul.f32 %v800_v33, %v1026_v5  ;;  %v338_v3 = vpack.c.bf16 %v327_v58, %v326_v53  ;;  %v328_v4 = vmax.f32 %v312_v54, 0.0  ;;  %v329_v6 = vmax.f32 %v313_v59, 0.0 }
  0x1e   : > { %v293_v7 = vmul.f32 %v815_v52, %v1026_v5  ;;  %v294_v8 = vmul.f32 %v816_v56, %v1026_v5  ;;  %v322_v9 = vmax.f32 %v306_v45, 0.0  ;;  %v323_v11 = vmax.f32 %v307_v57, 0.0 }
  0x1f   : > { %900 = vmatpush3.bf16.msra.mxu0 %v949_v44  ;;  %v330_v12 = vmax.f32 %v314_v60, 0.0  ;;  %v331_v13 = vmax.f32 %v315_v63, 0.0  ;;  %v308_v14 = vadd.f32 %v1033_v10, %v285_v62  ;;  %v309_v15 = vadd.f32 %v1033_v10, %v286_v2  ;;  %911 = vmatprep.mubr.bf16.mxu1 %v338_v3 }
  0x20   : > { %933 = vmatpush3.bf16.msra.mxu1 %v949_v44  ;;  %901 = vmatprep.subr.bf16.mxu0 %v950_v61  ;;  %v335_v16 = vpack.c.bf16 %v321_v1, %v320_v0  ;;  %v339_v17 = vpack.c.bf16 %v329_v6, %v328_v4  ;;  %v316_v18 = vadd.f32 %v1033_v10, %v293_v7 }
  0x21   : > { %926 = vmatprep.subr.bf16.mxu1 %v950_v61  ;;  %v317_v19 = vadd.f32 %v1033_v10, %v294_v8  ;;  %v336_v5 = vpack.c.bf16 %v323_v11, %v322_v9  ;;  %v340_v20 = vpack.c.bf16 %v331_v13, %v330_v12  ;;  %v324_v21 = vmax.f32 %v308_v14, 0.0 }
  0x22   : > { %v325_v22 = vmax.f32 %v309_v15, 0.0  ;;  %v332_v23 = vmax.f32 %v316_v18, 0.0 }
  0x23   : > { %902 = vmatpush3.bf16.msra.mxu0 %v950_v61  ;;  %v333_v24 = vmax.f32 %v317_v19, 0.0 }
  0x24   : > { %934 = vmatpush3.bf16.msra.mxu1 %v950_v61  ;;  %v337_v25 = vpack.c.bf16 %v325_v22, %v324_v21 }
  0x25   : > { %v341_v26 = vpack.c.bf16 %v333_v24, %v332_v23 }
  0x26   : > { %904 = vmatmul.mubr.bf16.vlgmr.msra.gmra.mrb[0].mxu0 %v335_v16 }
  0x27   : > { %912 = vmatmul.mubr.bf16.vlgmr.msra.gmra.mrb[0].mxu1 %v339_v17  ;;  %907 = vmatprep.mubr.bf16.mxu0 %v336_v5 }
  0x28   : > { %915 = vmatprep.mubr.bf16.mxu1 %v340_v20 }
  0x2e   : > { %908 = vmatmul.mubr.bf16.gmra.mrb[4].mxu0 %v337_v25 }
  0x2f   : > { %916 = vmatmul.mubr.bf16.gmra.mrb[4].mxu1 %v341_v26 }
  0xf9   : > { %v905_v27 = vpop.f32.mrb[0].mxu0 }
  0xfa   : > { %v913_v28 = vpop.f32.mrb[0].mxu1  ;;  %v440_v10 = vpop.f32.mrb[1].mxu0  ;;  %v526_v41 = vmul.f32 %v905_v27, %v905_v27 }
  0xfb   : > { %v472_v29 = vpop.f32.mrb[1].mxu1  ;;  %v906_v30 = vpop.f32.mrb[2].mxu0  ;;  %v524_v36 = vmul.f32 %v440_v10, %v440_v10  ;;  %v534_v15 = vmul.f32 %v913_v28, %v913_v28 }
  0xfc   : > { %v914_v31 = vpop.f32.mrb[2].mxu1  ;;  %v825_v32 = vpack.c.bf16 %v906_v30, %v905_v27  ;;  %v443_v33 = vpop.f32.mrb[3].mxu0  ;;  %v527_v44 = vmul.f32 %v906_v30, %v906_v30  ;;  %v532_v8 = vmul.f32 %v472_v29, %v472_v29 }
  0xfd   : > { %v845_v34 = vpack.c.bf16 %v914_v31, %v913_v28  ;;  %v475_v35 = vpop.f32.mrb[3].mxu1  ;;  %v503_v37 = vadd.f32 %v443_v33, %v440_v10  ;;  %v525_v38 = vmul.f32 %v443_v33, %v443_v33  ;;  %v820_v39 = vpack.c.bf16 %v443_v33, %v440_v10 }
  0xfe   : > { %864 = vst [vmem:[%s1089_s25 + $0x8] sm:$0xff] %v825_v32   ;;  %v840_v40 = vpack.c.bf16 %v475_v35, %v472_v29  ;;  %v533_v14 = vmul.f32 %v475_v35, %v475_v35  ;;  %v535_v18 = vmul.f32 %v914_v31, %v914_v31 }
  0xff   : > { %868 = vst [vmem:[%s1089_s25 + $0x28] sm:$0xff] %v845_v34   ;;  %v504_v42 = vadd.f32 %v905_v27, %v503_v37  ;;  %v540_v43 = vadd.f32 %v525_v38, %v524_v36  ;;  %821 = vst [vmem:[%s1089_s25] sm:$0xff] %v820_v39  }
 0x100   : > { %867 = vst [vmem:[%s1089_s25 + $0x20] sm:$0xff] %v840_v40  }
 0x101   : > { %v541_v45 = vadd.f32 %v540_v43, %v526_v41  ;;  %v909_v46 = vpop.f32.mrb[4].mxu0  ;;  %v505_v47 = vadd.f32 %v906_v30, %v504_v42 }
 0x102   : > { %v917_v48 = vpop.f32.mrb[4].mxu1  ;;  %v456_v49 = vpop.f32.mrb[5].mxu0  ;;  %v530_v1 = vmul.f32 %v909_v46, %v909_v46 }
 0x103   : > { %v488_v50 = vpop.f32.mrb[5].mxu1  ;;  %v506_v51 = vadd.f32 %v505_v47, %v456_v49  ;;  %v528_v52 = vmul.f32 %v456_v49, %v456_v49  ;;  %v542_v53 = vadd.f32 %v541_v45, %v527_v44  ;;  %v910_v54 = vpop.f32.mrb[6].mxu0  ;;  %v538_v26 = vmul.f32 %v917_v48, %v917_v48 }
 0x104   : > { %v918_v55 = vpop.f32.mrb[6].mxu1  ;;  %v835_v56 = vpack.c.bf16 %v910_v54, %v909_v46  ;;  %v459_v57 = vpop.f32.mrb[7].mxu0  ;;  %v531_v4 = vmul.f32 %v910_v54, %v910_v54  ;;  %v536_v20 = vmul.f32 %v488_v50, %v488_v50 }
 0x105   : > { %v855_v58 = vpack.c.bf16 %v918_v55, %v917_v48  ;;  %v491_v59 = vpop.f32.mrb[7].mxu1  ;;  %v543_v60 = vadd.f32 %v542_v53, %v528_v52  ;;  %v507_v61 = vadd.f32 %v506_v51, %v459_v57  ;;  %v529_v62 = vmul.f32 %v459_v57, %v459_v57 }
 0x106   : > { %v830_v63 = vpack.c.bf16 %v459_v57, %v456_v49  ;;  %866 = vst [vmem:[%s1089_s25 + $0x18] sm:$0xff] %v835_v56   ;;  %v850_v0 = vpack.c.bf16 %v491_v59, %v488_v50  ;;  %v537_v25 = vmul.f32 %v491_v59, %v491_v59 }
 0x107   : > { %870 = vst [vmem:[%s1089_s25 + $0x38] sm:$0xff] %v855_v58   ;;  %v508_v2 = vadd.f32 %v909_v46, %v507_v61  ;;  %v544_v3 = vadd.f32 %v543_v60, %v529_v62 }
 0x108   : > { %865 = vst [vmem:[%s1089_s25 + $0x10] sm:$0xff] %v830_v63   ;;  %869 = vst [vmem:[%s1089_s25 + $0x30] sm:$0xff] %v850_v0  }
 0x109   : > { %v545_v6 = vadd.f32 %v544_v3, %v530_v1  ;;  %v509_v7 = vadd.f32 %v910_v54, %v508_v2 }
 0x10b   : > { %v510_v9 = vadd.f32 %v509_v7, %v472_v29  ;;  %v546_v11 = vadd.f32 %v545_v6, %v531_v4  ;;  %v539_v29 = vmul.f32 %v918_v55, %v918_v55 }
 0x10d   : > { %v547_v12 = vadd.f32 %v546_v11, %v532_v8  ;;  %v511_v13 = vadd.f32 %v510_v9, %v475_v35 }
 0x10f   : > { %v512_v16 = vadd.f32 %v913_v28, %v511_v13  ;;  %v548_v17 = vadd.f32 %v547_v12, %v533_v14 }
 0x111   : > { %v549_v19 = vadd.f32 %v548_v17, %v534_v15  ;;  %v513_v5 = vadd.f32 %v914_v31, %v512_v16 }
 0x113   : > { %v514_v21 = vadd.f32 %v513_v5, %v488_v50  ;;  %v550_v22 = vadd.f32 %v549_v19, %v535_v18 }
 0x115   : > { %v551_v23 = vadd.f32 %v550_v22, %v536_v20  ;;  %v515_v24 = vadd.f32 %v514_v21, %v491_v59 }
 0x117   : > { %v516_v27 = vadd.f32 %v917_v48, %v515_v24  ;;  %v552_v10 = vadd.f32 %v551_v23, %v537_v25 }
 0x119   : > { %v517_v30 = vadd.f32 %v918_v55, %v516_v27  ;;  %v553_v32 = vadd.f32 %v552_v10, %v538_v26 }
 0x11b   : > { %v518_v33 = vrot.slane %v517_v30, 4  ;;  %v554_v28 = vadd.f32 %v553_v32, %v539_v29 }
 0x11d   : > { %v519_v34 = vadd.f32 %v518_v33, %v517_v30  ;;  %v555_v35 = vrot.slane %v554_v28, 4 }
 0x11f   : > { %v520_v36 = vrot.slane %v519_v34, 2  ;;  %v556_v31 = vadd.f32 %v555_v35, %v554_v28 }
 0x121   : > { %v521_v37 = vadd.f32 %v520_v36, %v519_v34  ;;  %v557_v38 = vrot.slane %v556_v31, 2 }
 0x123   : > { %v522_v39 = vrot.slane %v521_v37, 1  ;;  %v558_v40 = vadd.f32 %v557_v38, %v556_v31 }
 0x125   : > { %v559_v41 = vrot.slane %v558_v40, 1  ;;  %v523_v42 = vadd.f32 %v522_v39, %v521_v37 }
 0x127   : > { %v560_v43 = vadd.f32 %v559_v41, %v558_v40 }
 0x129   : > { %v562_v44 = vsel %vm561_vm0, %v523_v42, %v560_v43 }
 0x12a   : > { %563 = vst [vmem:[%s238_s28] sm:$0x3] %v562_v44 }
 0x12b PF: > { %s16_s18 = sadd.s32 1, %s957_s18  }
 0x12c   : > { %p13_p5 = scmp.ge.s32.totalorder %s16_s18, 6  }
 0x12e   :  { %15 = sbr.rel (!%p13_p5) target bundleno = 1 (0x1), region = 78 }

// kernel: bottleneck_block.5
= control target key start
LH: loop header
LB: loop body
LE: loop exit
PB: predicated region body
PF: predicated region fallthrough
CT: control target
= control target key end

     0   :  { %s7969_s18 = smov 0   ;;  %s9932_s0 = inlined_call_operand.vmem [shape: bf16[2,256,64], index: 0, kind: input, shape index: {}]   ;;  %s9933_s1 = inlined_call_operand.vmem [shape: f32[1,64], index: 1, kind: input, shape index: {}]   ;;  %s9934_s2 = inlined_call_operand.vmem [shape: f32[1,64], index: 2, kind: input, shape index: {}]   ;;  %s9935_s3 = inlined_call_operand.vmem [shape: bf16[9,64,128], index: 3, kind: input, shape index: {}]   ;;  %s9936_s4 = inlined_call_operand.vmem [shape: bf16[2,256,128], index: 4, kind: output, shape index: {0}]   ;;  %s9937_s5 = inlined_call_operand.vmem [shape: f32[2,2,128], index: 5, kind: output, shape index: {1}]  }
   0x1 LB: > { %s6218_s19 = sadd.s32 4294967295, %s7936_s18   ;;  %p6222_p0 = scmp.ge.s32.totalorder %s7936_s18, 1  ;;  %s7936_s18 = sphi %s7969_s18, %s16_s18  }
   0x2   : > { %p190_p1 = scmp.lt.s32.totalorder %s7936_s18, 3 }
   0x4   : > { %p191_p2 = pnand %p6222_p0, %p190_p1 }
   0x6   : > { %194 = sbr.rel (%p191_p2) target bundleno = 710 (0x2c6), region = 36 }
   0xd   : > { %v7785_v0 = vld [vmem:[%s9935_s3 + $0x20] sm:$0xff]   ;;  %vm411_vm0 = vcmask 519168   ;;  %v7787_v2 = vld [vmem:[%s9935_s3 + $0x28] sm:$0xff]   ;;  %v7938_v3 = vmov 0   ;;  %vm414_vm1 = vcmask 516096   ;;  %v7789_v5 = vld [vmem:[%s9935_s3 + $0x30] sm:$0xff]  }
   0xe   : > { %v7786_v1 = vld [vmem:[%s9935_s3 + $0x80] sm:$0xff]   ;;  %7152 = vmatprep.subr.bf16.mxu1 %v7785_v0  ;;  %412 = vst.msk [vmem:[#allocation2] sm:$0xf] %vm411_vm0, %v7938_v3  ;;  %413 = vst.msk [vmem:[#allocation2 + $0x4] sm:$0xf] %vm411_vm0, %v7938_v3  ;;  %v7788_v4 = vld [vmem:[%s9935_s3 + $0x88] sm:$0xff]  }
   0xf   : > { %417 = vst.msk [vmem:[#allocation2 + $0xcc] sm:$0xf] %vm411_vm0, %v7938_v3  ;;  %418 = vst.msk [vmem:[#allocation2 + $0xd0] sm:$0xf] %vm411_vm0, %v7938_v3  ;;  %7312 = vmatprep.subr.bf16.mxu0 %v7786_v1  ;;  %7153 = vmatpush3.bf16.msra.mxu1 %v7785_v0  ;;  %p222_p3 = scmp.lt.s32.totalorder %s6218_s19, 1  ;;  %v7790_v6 = vld [vmem:[%s9935_s3 + $0x90] sm:$0xff]  }
  0x10   : > { %415 = vst.msk [vmem:[#allocation2 + $0x8] sm:$0x1] %vm414_vm1, %v7938_v3  ;;  %419 = vst.msk [vmem:[#allocation2 + $0xd4] sm:$0x1] %vm414_vm1, %v7938_v3  ;;  %7313 = vmatpush3.bf16.msra.mxu0 %v7786_v1  ;;  %7154 = vmatprep.subr.bf16.mxu1 %v7787_v2  ;;  %v7791_v7 = vld [vmem:[%s9935_s3 + $0x38] sm:$0xff]   ;;  %v8037_v24 = vld [vmem:[%s9935_s3] sm:$0xff]  }
  0x11   : > { %7314 = vmatprep.subr.bf16.mxu0 %v7788_v4  ;;  %s10009_s19 = smov (!%p222_p3, %s6218_s19), 1  ;;  %v7792_v8 = vld [vmem:[%s9935_s3 + $0x98] sm:$0xff]   ;;  %vm422_vm2 = vsmask.f32 256  ;;  %vm472_vm3 = vsmask.f32 7938 }
  0x12   : > { %vm1110_vm4 = vsmask.f32 3328  ;;  %vm8011_vm5 = vmand %vm414_vm1, %vm422_vm2  ;;  %vm1111_vm6 = vsmask.f32 7440  ;;  %s6732_s11 = sshll.u32 %s10009_s19, 7  ;;  %v8061_v41 = vld [vmem:[%s9935_s3 + $0xa0] sm:$0xff]  }
  0x13   : > { %7155 = vmatpush3.bf16.msra.mxu1 %v7787_v2  ;;  %v8019_v18 = vld [vmem:[%s9933_s1] ss:$0 sm:$0xff]  ;;  %vm8023_vm7 = vmand %vm414_vm1, %vm472_vm3  ;;  %s8032_s16 = scalar_lea.vmem %s9932_s0, %s6732_s11  ;;  %v424_v27 = vld [vmem:[#allocation2 + $0xc] sm:$0x1]  ;;  %vm618_vm9 = vsmask.f32 4368  ;;  %s9903_s10 = scalar_lea.vmem %s9936_s4, %s6732_s11 }
  0x14   : > { %7315 = vmatpush3.bf16.msra.mxu0 %v7788_v4  ;;  %7156 = vmatprep.subr.bf16.mxu1 %v7789_v5  ;;  %v6799_v26 = vld [vmem:[%s8032_s16] sm:$0xff]   ;;  %v474_v28 = vld [vmem:[#allocation2 + $0x14] sm:$0x1]  ;;  %vm8042_vm8 = vmor %vm1110_vm4, %vm1111_vm6  ;;  %v425_v35 = vsel %vm8011_vm5, 0, %v424_v27  ;;  %vm1578_vm10 = vcmask 523264   ;;  %vm2149_vm13 = vcmask 1042432  }
  0x15   : > { %7316 = vmatprep.subr.bf16.mxu0 %v7790_v6  ;;  %v1054_v9 = vld [vmem:[#allocation2] sm:$0xf]  ;;  %v1055_v10 = vld [vmem:[#allocation2 + $0x4] sm:$0xf]  ;;  %v6800_v31 = vunpack.c.l.bf16 %v6799_v26  ;;  %v6801_v32 = vunpack.c.h.bf16 %v6799_v26  ;;  %v475_v36 = vsel %vm8023_vm7, 0, %v474_v28  ;;  %v6942_v42 = vld [vmem:[%s8032_s16 + $0x8] sm:$0xff]  }
  0x16   : > { %v1114_v12 = vshrl.u32 %v1054_v9, 16  ;;  %v1117_v13 = vshll.u32 %v1054_v9, 16  ;;  %v1123_v14 = vshll.u32 %v1055_v10, 16  ;;  %v1127_v15 = vshrl.u32 %v1055_v10, 16  ;;  %v8049_v34 = vld [vmem:[%s9934_s2] ss:$0 sm:$0xff]  ;;  %vm8092_vm11 = vmand %vm411_vm0, %vm472_vm3 }
  0x17   : > { %v1094_v11 = vld [vmem:[#allocation2 + $0x8] sm:$0x1]  ;;  %7157 = vmatpush3.bf16.msra.mxu1 %v7789_v5  ;;  %v308_v39 = vmul.f32 %v6800_v31, %v8019_v18  ;;  %v309_v40 = vmul.f32 %v6801_v32, %v8019_v18  ;;  %426 = vst [vmem:[#allocation2 + $0xc] sm:$0x1] %v425_v35  ;;  %476 = vst [vmem:[#allocation2 + $0x14] sm:$0x1] %v475_v36  ;;  %v6804_v43 = vunpack.c.l.bf16 %v6942_v42  ;;  %v6805_v44 = vunpack.c.h.bf16 %v6942_v42 }
  0x18   : > { %v1133_v17 = vshll.u32 %v1094_v11, 16  ;;  %7317 = vmatpush3.bf16.msra.mxu0 %v7790_v6  ;;  %7158 = vmatprep.subr.bf16.mxu1 %v7791_v7  ;;  %v1116_v20 = vrot.slane %v1114_v12, 4  ;;  %v1119_v21 = vrot.slane %v1117_v13, 5  ;;  %v1125_v22 = vrot.slane %v1123_v14, 5  ;;  %v427_v45 = vld [vmem:[#allocation2 + $0x18] sm:$0x1]  ;;  %vm8099_vm12 = vmor %vm422_vm2, %vm618_vm9 }
  0x19   : > { %v1129_v23 = vrot.slane %v1127_v15, 4  ;;  %7318 = vmatprep.subr.bf16.mxu0 %v7792_v8  ;;  %v477_v46 = vld [vmem:[#allocation2 + $0x20] sm:$0x1]  ;;  %v6943_v47 = vld [vmem:[%s8032_s16 + $0x10] sm:$0xff]   ;;  %v347_v50 = vadd.f32 %v8049_v34, %v308_v39  ;;  %v348_v51 = vadd.f32 %v8049_v34, %v309_v40  ;;  %v430_v52 = vld [vmem:[#allocation2 + $0x24] sm:$0x1]  ;;  %v310_v54 = vmul.f32 %v6804_v43, %v8019_v18 }
  0x1a   : > { %v1135_v25 = vrot.slane %v1133_v17, 5  ;;  %v1120_v29 = vor.u32 %v1119_v21, %v1116_v20  ;;  %v311_v55 = vmul.f32 %v6805_v44, %v8019_v18  ;;  %v428_v56 = vsel %vm8011_vm5, 0, %v427_v45  ;;  %v480_v57 = vld [vmem:[#allocation2 + $0x2c] sm:$0x1]  ;;  %v6944_v62 = vld [vmem:[%s8032_s16 + $0x18] sm:$0xff]   ;;  %s6227_s11 = sshll.u32 %s10009_s19, 1 }
  0x1b   : > { %v1130_v30 = vor.u32 %v1129_v23, %v1125_v22  ;;  %7159 = vmatpush3.bf16.msra.mxu1 %v7791_v7  ;;  %v379_v58 = vmax.f32 %v347_v50, 0.0  ;;  %v380_v59 = vmax.f32 %v348_v51, 0.0  ;;  %429 = vst [vmem:[#allocation2 + $0x18] sm:$0x1] %v428_v56  ;;  %v478_v60 = vsel %vm8023_vm7, 0, %v477_v46  ;;  %s235_s14 = scalar_lea.vmem %s9937_s5, %s6227_s11 }
  0x1c   : > { %7319 = vmatpush3.bf16.msra.mxu0 %v7792_v8  ;;  %v1121_v37 = vrot.slane %v1120_v29, 4  ;;  %7192 = vmatprep.subr.bf16.mxu1 %v8037_v24  ;;  %v6808_v61 = vunpack.c.l.bf16 %v6943_v47  ;;  %v349_v63 = vadd.f32 %v8049_v34, %v310_v54  ;;  %v350_v0 = vadd.f32 %v8049_v34, %v311_v55  ;;  %479 = vst [vmem:[#allocation2 + $0x20] sm:$0x1] %v478_v60 }
  0x1d   : > { %v1131_v38 = vrot.slane %v1130_v30, 4  ;;  %7352 = vmatprep.subr.bf16.mxu0 %v8061_v41  ;;  %v6809_v1 = vunpack.c.h.bf16 %v6943_v47  ;;  %v431_v2 = vsel %vm8011_vm5, 0, %v430_v52  ;;  %v6734_v3 = vpack.c.bf16 %v379_v58, %v379_v58  ;;  %v433_v52 = vld [vmem:[#allocation2 + $0x30] sm:$0x1] }
  0x1e   : > { %v1126_v48 = vsel %vm8042_vm8, %v1121_v37, %v1125_v22  ;;  %v6735_v4 = vpack.c.bf16 %v380_v59, %v380_v59  ;;  %v312_v5 = vmul.f32 %v6808_v61, %v8019_v18  ;;  %432 = vst [vmem:[#allocation2 + $0x24] sm:$0x1] %v431_v2  ;;  %v481_v6 = vsel %vm8023_vm7, 0, %v480_v57  ;;  %v942_v26 = vld [vmem:[#allocation2 + $0xc] sm:$0xf] }
  0x1f   : > { %v1136_v49 = vsel %vm8042_vm8, %v1131_v38, %v1135_v25  ;;  %v381_v7 = vmax.f32 %v349_v63, 0.0  ;;  %v382_v8 = vmax.f32 %v350_v0, 0.0  ;;  %v313_v9 = vmul.f32 %v6809_v1, %v8019_v18  ;;  %482 = vst [vmem:[#allocation2 + $0x2c] sm:$0x1] %v481_v6  ;;  %v946_v30 = vld [vmem:[#allocation2 + $0x14] sm:$0x1] }
  0x20   : > { %v6270_v53 = vcombine.low %v1126_v48, %v1136_v49  ;;  %v6812_v10 = vunpack.c.l.bf16 %v6944_v62  ;;  %v621_v11 = vshrl.u32 %v6734_v3, 16  ;;  %v624_v12 = vshll.u32 %v6734_v3, 16  ;;  %v483_v61 = vld [vmem:[#allocation2 + $0x38] sm:$0x1]  ;;  %v436_v3 = vld [vmem:[#allocation2 + $0x3c] sm:$0x1] }
  0x21   : > { %v629_v13 = vshrl.u32 %v6735_v4, 16  ;;  %v632_v14 = vshll.u32 %v6735_v4, 16  ;;  %v6736_v15 = vpack.c.bf16 %v381_v7, %v381_v7  ;;  %v6737_v17 = vpack.c.bf16 %v382_v8, %v382_v8  ;;  %v486_v4 = vld [vmem:[#allocation2 + $0x44] sm:$0x1] }
  0x22   : > { %7160 = vmatprep.mubr.msk.bf16.mxu1 %vm1578_vm10, %v6270_v53  ;;  %v351_v20 = vadd.f32 %v8049_v34, %v312_v5  ;;  %v352_v21 = vadd.f32 %v8049_v34, %v313_v9  ;;  %v623_v23 = vrot.slane %v621_v11, 7  ;;  %v6813_v27 = vunpack.c.h.bf16 %v6944_v62  ;;  %v949_v49 = vld [vmem:[#allocation2 + $0x18] sm:$0xf]  ;;  %v6945_v62 = vld [vmem:[%s8032_s16 + $0x20] sm:$0xff]  }
  0x23   : > { %v631_v25 = vrot.slane %v629_v13, 7  ;;  %v314_v28 = vmul.f32 %v6812_v10, %v8019_v18  ;;  %v638_v31 = vshrl.u32 %v6736_v15, 16  ;;  %v641_v32 = vshll.u32 %v6736_v15, 16  ;;  %v953_v50 = vld [vmem:[#allocation2 + $0x20] sm:$0x1] }
  0x24   : > { %v646_v35 = vshrl.u32 %v6737_v17, 16  ;;  %v649_v36 = vshll.u32 %v6737_v17, 16  ;;  %v626_v37 = vor.u32 %v624_v12, %v623_v23  ;;  %v627_v38 = vrot.slane %v623_v23, 4  ;;  %v8136_v23 = vld [vmem:[%s8032_s16 + $0x28] sm:$0xff]  }
  0x25   : > { %v634_v39 = vor.u32 %v632_v14, %v631_v25  ;;  %v636_v40 = vrot.slane %v631_v25, 4  ;;  %v640_v42 = vrot.slane %v638_v31, 7  ;;  %v383_v44 = vmax.f32 %v351_v20, 0.0 }
  0x26   : > { %v648_v43 = vrot.slane %v646_v35, 7  ;;  %v384_v45 = vmax.f32 %v352_v21, 0.0  ;;  %v943_v47 = vsel %vm8092_vm11, %v626_v37, %v942_v26  ;;  %v315_v51 = vmul.f32 %v6813_v27, %v8019_v18 }
  0x27   : > { %v635_v46 = vsel %vm8099_vm12, %v627_v38, %v634_v39  ;;  %v947_v48 = vsel %vm8011_vm5, %v636_v40, %v946_v30  ;;  %944 = vst [vmem:[#allocation2 + $0xc] sm:$0xf] %v943_v47  ;;  %v643_v53 = vor.u32 %v641_v32, %v640_v42  ;;  %v644_v54 = vrot.slane %v640_v42, 4 }
  0x28   : > { %945 = vst.msk [vmem:[#allocation2 + $0x10] sm:$0xf] %vm411_vm0, %v635_v46  ;;  %948 = vst [vmem:[#allocation2 + $0x14] sm:$0x1] %v947_v48  ;;  %v651_v55 = vor.u32 %v649_v36, %v648_v43  ;;  %v653_v56 = vrot.slane %v648_v43, 4  ;;  %v6738_v57 = vpack.c.bf16 %v383_v44, %v383_v44  ;;  %v6739_v58 = vpack.c.bf16 %v384_v45, %v384_v45 }
  0x29   : > { %v353_v59 = vadd.f32 %v8049_v34, %v314_v28  ;;  %v354_v60 = vadd.f32 %v8049_v34, %v315_v51  ;;  %v950_v0 = vsel %vm8092_vm11, %v643_v53, %v949_v49  ;;  %v434_v2 = vsel %vm8011_vm5, 0, %v433_v52 }
  0x2a   : > { %v652_v63 = vsel %vm8099_vm12, %v644_v54, %v651_v55  ;;  %v954_v1 = vsel %vm8011_vm5, %v653_v56, %v953_v50  ;;  %951 = vst [vmem:[#allocation2 + $0x18] sm:$0xf] %v950_v0  ;;  %v655_v5 = vshrl.u32 %v6738_v57, 16  ;;  %v658_v6 = vshll.u32 %v6738_v57, 16  ;;  %435 = vst [vmem:[#allocation2 + $0x30] sm:$0x1] %v434_v2 }
  0x2b   : > { %952 = vst.msk [vmem:[#allocation2 + $0x1c] sm:$0xf] %vm411_vm0, %v652_v63  ;;  %955 = vst [vmem:[#allocation2 + $0x20] sm:$0x1] %v954_v1  ;;  %v663_v7 = vshrl.u32 %v6739_v58, 16  ;;  %v666_v8 = vshll.u32 %v6739_v58, 16  ;;  %v6816_v12 = vunpack.c.l.bf16 %v6945_v62  ;;  %v6817_v15 = vunpack.c.h.bf16 %v6945_v62 }
  0x2c   : > { %v385_v9 = vmax.f32 %v353_v59, 0.0  ;;  %v386_v10 = vmax.f32 %v354_v60, 0.0  ;;  %v484_v11 = vsel %vm8023_vm7, 0, %v483_v61  ;;  %v8125_v13 = vrot.slane %v655_v5, 7 }
  0x2d   : > { %v8127_v14 = vrot.slane %v663_v7, 7  ;;  %485 = vst [vmem:[#allocation2 + $0x38] sm:$0x1] %v484_v11  ;;  %v437_v17 = vsel %vm8011_vm5, 0, %v436_v3  ;;  %v487_v21 = vsel %vm8023_vm7, 0, %v486_v4  ;;  %v8147_v32 = vmul.f32 %v6816_v12, %v8019_v18 }
  0x2e   : > { %v8131_v20 = vpack.c.bf16 %v385_v9, %v385_v9  ;;  %438 = vst [vmem:[#allocation2 + $0x3c] sm:$0x1] %v437_v17  ;;  %v1056_v25 = vld [vmem:[#allocation2 + $0xc] sm:$0xf]  ;;  %v8139_v28 = vor.u32 %v658_v6, %v8125_v13  ;;  %v8144_v31 = vpack.c.bf16 %v386_v10, %v386_v10  ;;  %488 = vst [vmem:[#allocation2 + $0x44] sm:$0x1] %v487_v21  ;;  %v6820_v45 = vunpack.c.l.bf16 %v8136_v23 }
  0x2f   : > { %v1057_v26 = vld [vmem:[#allocation2 + $0x10] sm:$0xf]  ;;  %v1095_v27 = vld [vmem:[#allocation2 + $0x14] sm:$0x1]  ;;  %v8142_v30 = vor.u32 %v666_v8, %v8127_v14  ;;  %v1138_v35 = vshrl.u32 %v1056_v25, 16  ;;  %v1141_v36 = vshll.u32 %v1056_v25, 16  ;;  %v8152_v44 = vmul.f32 %v6817_v15, %v8019_v18 }
  0x30   : > { %v1147_v37 = vshll.u32 %v1057_v26, 16  ;;  %v1151_v38 = vshrl.u32 %v1057_v26, 16  ;;  %v2972_v39 = vld [vmem:[#allocation2 + $0xc] sm:$0xf]  ;;  %v1157_v40 = vshll.u32 %v1095_v27, 16  ;;  %vm2150_vm14 = vcmask 1046532  }
  0x31   : > { %v8149_v42 = vld [vmem:[#allocation2 + $0x10] sm:$0xf]  ;;  %v3021_v43 = vshrl.u32 %v2972_v39, 16  ;;  %v1140_v46 = vrot.slane %v1138_v35, 4  ;;  %v1143_v47 = vrot.slane %v1141_v36, 5  ;;  %v3024_v53 = vshll.u32 %v2972_v39, 16  ;;  %vm8448_vm15 = vmor %vm2149_vm13, %vm2150_vm14 }
  0x32   : > { %v1149_v48 = vrot.slane %v1147_v37, 5  ;;  %v1153_v49 = vrot.slane %v1151_v38, 4  ;;  %v8155_v50 = vld [vmem:[#allocation2 + $0x14] sm:$0x1]  ;;  %v1159_v51 = vrot.slane %v1157_v40, 5  ;;  %v3030_v54 = vshll.u32 %v8149_v42, 16 }
  0x33   : > { %v3023_v52 = vrot.slane %v3021_v43, 4  ;;  %v1144_v55 = vor.u32 %v1143_v47, %v1140_v46  ;;  %v3034_v57 = vshrl.u32 %v8149_v42, 16  ;;  %v3040_v58 = vshll.u32 %v8155_v50, 16  ;;  %v2975_v59 = vld [vmem:[#allocation2 + $0x18] sm:$0xf]  ;;  %v7796_v35 = vld [vmem:[%s9935_s3 + $0x8] sm:$0xff]  }
  0x34   : > { %v1154_v56 = vor.u32 %v1153_v49, %v1149_v48  ;;  %v8160_v60 = vld [vmem:[#allocation2 + $0x1c] sm:$0xf]  ;;  %v3026_v61 = vrot.slane %v3024_v53, 5  ;;  %v3032_v62 = vrot.slane %v3030_v54, 5  ;;  %v3792_v63 = vrot.slane %v8149_v42, 5 }
  0x35   : > { %v3795_v0 = vrot.slane %v8155_v50, 5  ;;  %v1145_v1 = vrot.slane %v1144_v55, 4  ;;  %v3036_v3 = vrot.slane %v3034_v57, 4  ;;  %v3042_v4 = vrot.slane %v3040_v58, 5  ;;  %v8164_v6 = vld [vmem:[#allocation2 + $0x20] sm:$0x1] }
  0x36   : > { %v1155_v2 = vrot.slane %v1154_v56, 4  ;;  %v3027_v5 = vor.u32 %v3026_v61, %v3023_v52  ;;  %v3045_v7 = vshrl.u32 %v2975_v59, 16  ;;  %v3048_v8 = vshll.u32 %v2975_v59, 16  ;;  %v1058_v27 = vld [vmem:[#allocation2 + $0x18] sm:$0xf]  ;;  %v7799_v59 = vld [vmem:[%s9935_s3 + $0x10] sm:$0xff]  }
  0x37   : > { %v3054_v9 = vshll.u32 %v8160_v60, 16  ;;  %v1150_v10 = vsel %vm8042_vm8, %v1145_v1, %v1149_v48  ;;  %v3037_v12 = vor.u32 %v3036_v3, %v3032_v62  ;;  %v3058_v15 = vshrl.u32 %v8160_v60, 16  ;;  %v1059_v48 = vld [vmem:[#allocation2 + $0x1c] sm:$0xf]  ;;  %v1096_v53 = vld [vmem:[#allocation2 + $0x20] sm:$0x1] }
  0x38   : > { %v1160_v11 = vsel %vm8042_vm8, %v1155_v2, %v1159_v51  ;;  %v3028_v21 = vrot.slane %v3027_v5, 4  ;;  %v3047_v25 = vrot.slane %v3045_v7, 4  ;;  %v3050_v26 = vrot.slane %v3048_v8, 5  ;;  %v956_v2 = vld [vmem:[#allocation2 + $0x24] sm:$0xf] }
  0x39   : > { %v6271_v17 = vcombine.low %v1150_v10, %v1160_v11  ;;  %v3038_v36 = vrot.slane %v3037_v12, 4  ;;  %v3056_v37 = vrot.slane %v3054_v9, 5  ;;  %v3060_v38 = vrot.slane %v3058_v15, 4  ;;  %v960_v8 = vld [vmem:[#allocation2 + $0x2c] sm:$0x1] }
  0x3a   : > { %v3064_v39 = vshll.u32 %v8164_v6, 16  ;;  %v3033_v40 = vsel %vm8042_vm8, %v3028_v21, %v3032_v62  ;;  %v3051_v43 = vor.u32 %v3050_v26, %v3047_v25  ;;  %v3799_v46 = vrot.slane %v8160_v60, 5 }
  0x3b   : > { %7161 = vmatmul.mubr.msk.bf16.vlgmr.msra.gmra.mrb[0].mxu1 %vm1578_vm10, %v6271_v17  ;;  %v3802_v47 = vrot.slane %v8164_v6, 5  ;;  %v3043_v49 = vsel %vm8042_vm8, %v3038_v36, %v3042_v4  ;;  %v3061_v51 = vor.u32 %v3060_v38, %v3056_v37  ;;  %v1162_v54 = vshrl.u32 %v1058_v27, 16 }
  0x3c   : > { %7193 = vmatpush3.bf16.msra.mxu1 %v8037_v24  ;;  %v3066_v52 = vrot.slane %v3064_v39, 5  ;;  %v6454_v55 = vcombine.low %v3033_v40, %v3043_v49  ;;  %v3052_v56 = vrot.slane %v3051_v43, 4  ;;  %v8186_v57 = vrot.slane %v3799_v46, 4  ;;  %v7797_v39 = vld [vmem:[%s9935_s3 + $0xb0] sm:$0xff]  }
  0x3d   : > { %v1165_v58 = vshll.u32 %v1058_v27, 16  ;;  %7194 = vmatprep.subr.bf16.mxu1 %v7796_v35  ;;  %v3062_v61 = vrot.slane %v3061_v51, 4  ;;  %v1164_v62 = vrot.slane %v1162_v54, 4  ;;  %v1171_v1 = vshll.u32 %v1059_v48, 16  ;;  %v439_v51 = vld [vmem:[#allocation2 + $0x48] sm:$0x1] }
  0x3e   : > { %v1175_v24 = vshrl.u32 %v1059_v48, 16  ;;  %7320 = vmatprep.mubr.msk.bf16.mxu0 %vm1578_vm10, %v6454_v55  ;;  %v3057_v3 = vsel %vm8042_vm8, %v3052_v56, %v3056_v37  ;;  %v1181_v5 = vshll.u32 %v1096_v53, 16  ;;  %v661_v7 = vrot.slane %v8125_v13, 4  ;;  %v7795_v13 = vld [vmem:[%s9935_s3 + $0xa8] sm:$0xff]   ;;  %v967_v48 = vld [vmem:[#allocation2 + $0x38] sm:$0x1] }
  0x3f   : > { %v1167_v4 = vrot.slane %v1165_v58, 5  ;;  %v3067_v9 = vsel %vm8042_vm8, %v3062_v61, %v3066_v52  ;;  %v1173_v10 = vrot.slane %v1171_v1, 5  ;;  %v670_v12 = vrot.slane %v8127_v14, 4  ;;  %v8230_v54 = vld [vmem:[%s8032_s16 + $0x30] sm:$0xff]  }
  0x40   : > { %v1177_v11 = vrot.slane %v1175_v24, 4  ;;  %7195 = vmatpush3.bf16.msra.mxu1 %v7796_v35  ;;  %v6455_v15 = vcombine.low %v3057_v3, %v3067_v9  ;;  %v1183_v21 = vrot.slane %v1181_v5, 5  ;;  %v669_v25 = vsel %vm8099_vm12, %v661_v7, %v8142_v30  ;;  %v7798_v9 = vld [vmem:[%s9935_s3 + $0xb8] sm:$0xff]  }
  0x41   : > { %v1168_v17 = vor.u32 %v1167_v4, %v1164_v62  ;;  %7196 = vmatprep.subr.bf16.mxu1 %v7799_v59  ;;  %v957_v27 = vsel %vm8092_vm11, %v8139_v28, %v956_v2  ;;  %959 = vst.msk [vmem:[#allocation2 + $0x28] sm:$0xf] %vm411_vm0, %v669_v25  ;;  %v961_v14 = vsel %vm8011_vm5, %v670_v12, %v960_v8  ;;  %v672_v35 = vshrl.u32 %v8131_v20, 16  ;;  %v963_v28 = vld [vmem:[#allocation2 + $0x30] sm:$0xf] }
  0x42   : > { %v1178_v26 = vor.u32 %v1177_v11, %v1173_v10  ;;  %7321 = vmatmul.mubr.msk.bf16.vlgmr.msra.gmra.mrb[0].mxu0 %vm1578_vm10, %v6455_v15  ;;  %958 = vst [vmem:[#allocation2 + $0x24] sm:$0xf] %v957_v27  ;;  %962 = vst [vmem:[#allocation2 + $0x2c] sm:$0x1] %v961_v14  ;;  %v675_v36 = vshll.u32 %v8131_v20, 16  ;;  %v680_v37 = vshrl.u32 %v8144_v31, 16  ;;  %v355_v49 = vadd.f32 %v8049_v34, %v8147_v32 }
  0x43   : > { %v1169_v30 = vrot.slane %v1168_v17, 4  ;;  %v683_v38 = vshll.u32 %v8144_v31, 16  ;;  %7353 = vmatpush3.bf16.msra.mxu0 %v8061_v41  ;;  %v674_v43 = vrot.slane %v672_v35, 7  ;;  %v356_v20 = vadd.f32 %v8049_v34, %v8152_v44 }
  0x44   : > { %v1179_v40 = vrot.slane %v1178_v26, 4  ;;  %7197 = vmatpush3.bf16.msra.mxu1 %v7799_v59  ;;  %7354 = vmatprep.subr.bf16.mxu0 %v7795_v13  ;;  %v682_v52 = vrot.slane %v680_v37, 7  ;;  %v6821_v53 = vunpack.c.h.bf16 %v8136_v23  ;;  %v318_v41 = vmul.f32 %v6820_v45, %v8019_v18 }
  0x45   : > { %v1174_v31 = vsel %vm8042_vm8, %v1169_v30, %v1173_v10  ;;  %v677_v55 = vor.u32 %v675_v36, %v674_v43  ;;  %v678_v44 = vrot.slane %v674_v43, 4  ;;  %v387_v56 = vmax.f32 %v355_v49, 0.0  ;;  %v7800_v49 = vld [vmem:[%s9935_s3 + $0xc0] sm:$0xff]  }
  0x46   : > { %v1184_v32 = vsel %vm8042_vm8, %v1179_v40, %v1183_v21  ;;  %v685_v59 = vor.u32 %v683_v38, %v682_v52  ;;  %v687_v61 = vrot.slane %v682_v52, 4  ;;  %v388_v62 = vmax.f32 %v356_v20, 0.0 }
  0x47   : > { %v6272_v58 = vcombine.low %v1174_v31, %v1184_v32  ;;  %v964_v1 = vsel %vm8092_vm11, %v677_v55, %v963_v28  ;;  %7355 = vmatpush3.bf16.msra.mxu0 %v7795_v13  ;;  %v8236_v24 = vpack.c.bf16 %v387_v56, %v387_v56  ;;  %v319_v23 = vmul.f32 %v6821_v53, %v8019_v18  ;;  %v8265_v53 = vld [vmem:[%s8032_s16 + $0x38] sm:$0xff]  }
  0x48   : > { %v8240_v45 = vadd.f32 %v8049_v34, %v318_v41  ;;  %v1061_v2 = vld [vmem:[#allocation2 + $0x28] sm:$0xf]  ;;  %v686_v4 = vsel %vm8099_vm12, %v678_v44, %v685_v59  ;;  %965 = vst [vmem:[#allocation2 + $0x30] sm:$0xf] %v964_v1  ;;  %v968_v5 = vsel %vm8011_vm5, %v687_v61, %v967_v48  ;;  %v8247_v7 = vpack.c.bf16 %v388_v62, %v388_v62 }
  0x49   : > { %7164 = vmatprep.mubr.msk.bf16.mxu1 %vm1578_vm10, %v6272_v58  ;;  %v2979_v3 = vld [vmem:[#allocation2 + $0x28] sm:$0xf]  ;;  %7356 = vmatprep.subr.bf16.mxu0 %v7797_v39  ;;  %v440_v8 = vsel %vm8011_vm5, 0, %v439_v51  ;;  %v1060_v10 = vld [vmem:[#allocation2 + $0x24] sm:$0xf]  ;;  %v1195_v12 = vshll.u32 %v1061_v2, 16  ;;  %v8256_v17 = vadd.f32 %v8049_v34, %v319_v23  ;;  %v6824_v21 = vunpack.c.l.bf16 %v8230_v54 }
  0x4a   : > { %v1097_v11 = vld [vmem:[#allocation2 + $0x2c] sm:$0x1]  ;;  %v1199_v15 = vshrl.u32 %v1061_v2, 16  ;;  %966 = vst.msk [vmem:[#allocation2 + $0x34] sm:$0xf] %vm411_vm0, %v686_v4  ;;  %v1186_v25 = vshrl.u32 %v1060_v10, 16  ;;  %v6825_v61 = vunpack.c.h.bf16 %v8230_v54 }
  0x4b   : > { %969 = vst [vmem:[#allocation2 + $0x38] sm:$0x1] %v968_v5  ;;  %441 = vst [vmem:[#allocation2 + $0x48] sm:$0x1] %v440_v8  ;;  %v1189_v13 = vshll.u32 %v1060_v10, 16  ;;  %v1205_v26 = vshll.u32 %v1097_v11, 16  ;;  %7357 = vmatpush3.bf16.msra.mxu0 %v7797_v39  ;;  %v8272_v2 = vmul.f32 %v6824_v21, %v8019_v18 }
  0x4c   : > { %v2978_v27 = vld [vmem:[#allocation2 + $0x24] sm:$0xf]  ;;  %v3078_v14 = vshll.u32 %v2979_v3, 16  ;;  %v1197_v35 = vrot.slane %v1195_v12, 5  ;;  %v1201_v30 = vrot.slane %v1199_v15, 4  ;;  %v1188_v28 = vrot.slane %v1186_v25, 4  ;;  %7358 = vmatprep.subr.bf16.mxu0 %v7798_v9 }
  0x4d   : > { %v8259_v36 = vld [vmem:[#allocation2 + $0x2c] sm:$0x1]  ;;  %v3069_v37 = vshrl.u32 %v2978_v27, 16  ;;  %v3072_v38 = vshll.u32 %v2978_v27, 16  ;;  %v1191_v40 = vrot.slane %v1189_v13, 5  ;;  %v1207_v43 = vrot.slane %v1205_v26, 5 }
  0x4e   : > { %v3080_v48 = vrot.slane %v3078_v14, 5  ;;  %v1202_v20 = vor.u32 %v1201_v30, %v1197_v35  ;;  %v3082_v52 = vshrl.u32 %v2979_v3, 16  ;;  %v3088_v32 = vshll.u32 %v8259_v36, 16 }
  0x4f   : > { %v3071_v51 = vrot.slane %v3069_v37, 4  ;;  %v3074_v31 = vrot.slane %v3072_v38, 5  ;;  %v1192_v41 = vor.u32 %v1191_v40, %v1188_v28  ;;  %v689_v39 = vshrl.u32 %v8236_v24, 16  ;;  %v2981_v59 = vld [vmem:[#allocation2 + $0x30] sm:$0xf]  ;;  %7359 = vmatpush3.bf16.msra.mxu0 %v7798_v9 }
  0x50   : > { %v692_v55 = vshll.u32 %v8236_v24, 16  ;;  %v1203_v44 = vrot.slane %v1202_v20, 4  ;;  %v3084_v58 = vrot.slane %v3082_v52, 4  ;;  %v3090_v1 = vrot.slane %v3088_v32, 5  ;;  %7392 = vmatprep.subr.bf16.mxu0 %v7800_v49  ;;  %v1062_v11 = vld [vmem:[#allocation2 + $0x30] sm:$0xf] }
  0x51   : > { %v3075_v56 = vor.u32 %v3074_v31, %v3071_v51  ;;  %v1193_v62 = vrot.slane %v1192_v41, 4  ;;  %v2982_v23 = vld [vmem:[#allocation2 + $0x34] sm:$0xf]  ;;  %v6828_v3 = vunpack.c.l.bf16 %v8265_v53  ;;  %v3093_v10 = vshrl.u32 %v2981_v59, 16 }
  0x52   : > { %v1208_v4 = vsel %vm8042_vm8, %v1203_v44, %v1207_v43  ;;  %v3085_v5 = vor.u32 %v3084_v58, %v3080_v48  ;;  %v2983_v8 = vld [vmem:[#allocation2 + $0x38] sm:$0x1]  ;;  %v3096_v12 = vshll.u32 %v2981_v59, 16  ;;  %v3102_v15 = vshll.u32 %v2982_v23, 16  ;;  %v1063_v13 = vld [vmem:[#allocation2 + $0x34] sm:$0xf] }
  0x53   : > { %v3076_v24 = vrot.slane %v3075_v56, 4  ;;  %v1198_v9 = vsel %vm8042_vm8, %v1193_v62, %v1197_v35  ;;  %v3106_v25 = vshrl.u32 %v2982_v23, 16  ;;  %v3095_v14 = vrot.slane %v3093_v10, 4  ;;  %v1098_v35 = vld [vmem:[#allocation2 + $0x38] sm:$0x1] }
  0x54   : > { %v6273_v21 = vcombine.low %v1198_v9, %v1208_v4  ;;  %v3086_v27 = vrot.slane %v3085_v5, 4  ;;  %v3098_v30 = vrot.slane %v3096_v12, 5  ;;  %v3104_v37 = vrot.slane %v3102_v15, 5  ;;  %v489_v4 = vld [vmem:[#allocation2 + $0x50] sm:$0x1] }
  0x55   : > { %v3081_v26 = vsel %vm8042_vm8, %v3076_v24, %v3080_v48  ;;  %v3108_v38 = vrot.slane %v3106_v25, 4  ;;  %v3112_v28 = vshll.u32 %v2983_v8, 16  ;;  %v1210_v43 = vshrl.u32 %v1062_v11, 16  ;;  %v970_v10 = vld [vmem:[#allocation2 + $0x3c] sm:$0xf] }
  0x56   : > { %7165 = vmatmul.mubr.msk.bf16.gmra.mrb[4].mxu1 %vm1578_vm10, %v6273_v21  ;;  %v3091_v40 = vsel %vm8042_vm8, %v3086_v27, %v3090_v1  ;;  %v1213_v49 = vshll.u32 %v1062_v11, 16  ;;  %v1219_v20 = vshll.u32 %v1063_v13, 16  ;;  %v3099_v31 = vor.u32 %v3098_v30, %v3095_v14  ;;  %v442_v25 = vld [vmem:[#allocation2 + $0x54] sm:$0x1]  ;;  %v974_v27 = vld [vmem:[#allocation2 + $0x44] sm:$0x1] }
  0x57   : > { %v6456_v51 = vcombine.low %v3081_v26, %v3091_v40  ;;  %v3109_v52 = vor.u32 %v3108_v38, %v3104_v37  ;;  %v3114_v41 = vrot.slane %v3112_v28, 5  ;;  %v1212_v48 = vrot.slane %v1210_v43, 4  ;;  %v7801_v14 = vld [vmem:[%s9935_s3 + $0x18] sm:$0xff]  }
  0x58   : > { %v1215_v32 = vrot.slane %v1213_v49, 5  ;;  %v1221_v44 = vrot.slane %v1219_v20, 5  ;;  %v1223_v56 = vshrl.u32 %v1063_v13, 16  ;;  %v3100_v58 = vrot.slane %v3099_v31, 4  ;;  %v492_v43 = vld [vmem:[#allocation2 + $0x5c] sm:$0x1]  ;;  %7198 = vmatprep.subr.bf16.mxu1 %v7801_v14 }
  0x59   : > { %7324 = vmatprep.mubr.msk.bf16.mxu0 %vm1578_vm10, %v6456_v51  ;;  %v3110_v59 = vrot.slane %v3109_v52, 4  ;;  %v1229_v62 = vshll.u32 %v1098_v35, 16  ;;  %v691_v23 = vrot.slane %v689_v39, 7  ;;  %v697_v5 = vshrl.u32 %v8247_v7, 16  ;;  %v445_v51 = vld [vmem:[#allocation2 + $0x60] sm:$0x1]  ;;  %7199 = vmatpush3.bf16.msra.mxu1 %v7801_v14 }
  0x5a   : > { %v1216_v1 = vor.u32 %v1215_v32, %v1212_v48  ;;  %v1225_v24 = vrot.slane %v1223_v56, 4  ;;  %v700_v8 = vshll.u32 %v8247_v7, 16  ;;  %v3105_v11 = vsel %vm8042_vm8, %v3100_v58, %v3104_v37 }
  0x5b   : > { %v3115_v9 = vsel %vm8042_vm8, %v3110_v59, %v3114_v41  ;;  %v1231_v12 = vrot.slane %v1229_v62, 5  ;;  %v694_v15 = vor.u32 %v692_v55, %v691_v23  ;;  %v695_v26 = vrot.slane %v691_v23, 4  ;;  %v977_v59 = vld [vmem:[#allocation2 + $0x48] sm:$0xf] }
  0x5c   : > { %v6457_v13 = vcombine.low %v3105_v11, %v3115_v9  ;;  %v1217_v21 = vrot.slane %v1216_v1, 4  ;;  %v1226_v39 = vor.u32 %v1225_v24, %v1221_v44  ;;  %v699_v7 = vrot.slane %v697_v5, 7 }
  0x5d   : > { %v971_v30 = vsel %vm8092_vm11, %v694_v15, %v970_v10  ;;  %v389_v37 = vmax.f32 %v8240_v45, 0.0  ;;  %v390_v38 = vmax.f32 %v8256_v17, 0.0  ;;  %v490_v40 = vsel %vm8023_vm7, 0, %v489_v4 }
  0x5e   : > { %7325 = vmatmul.mubr.msk.bf16.gmra.mrb[4].mxu0 %vm1578_vm10, %v6457_v13  ;;  %v1222_v55 = vsel %vm8042_vm8, %v1217_v21, %v1221_v44  ;;  %v1227_v28 = vrot.slane %v1226_v39, 4  ;;  %972 = vst [vmem:[#allocation2 + $0x3c] sm:$0xf] %v971_v30  ;;  %v321_v35 = vmul.f32 %v6825_v61, %v8019_v18  ;;  %v702_v49 = vor.u32 %v700_v8, %v699_v7 }
  0x5f   : > { %v704_v45 = vrot.slane %v699_v7, 4  ;;  %491 = vst [vmem:[#allocation2 + $0x50] sm:$0x1] %v490_v40  ;;  %v6744_v17 = vpack.c.bf16 %v389_v37, %v389_v37  ;;  %v6745_v20 = vpack.c.bf16 %v390_v38, %v390_v38  ;;  %v359_v52 = vadd.f32 %v8049_v34, %v8272_v2 }
  0x60   : > { %v1232_v31 = vsel %vm8042_vm8, %v1227_v28, %v1231_v12  ;;  %v360_v41 = vadd.f32 %v8049_v34, %v321_v35  ;;  %v443_v54 = vsel %vm8011_vm5, 0, %v442_v25  ;;  %v703_v48 = vsel %vm8099_vm12, %v695_v26, %v702_v49 }
  0x61   : > { %v6274_v61 = vcombine.low %v1222_v55, %v1232_v31  ;;  %v975_v32 = vsel %vm8011_vm5, %v704_v45, %v974_v27  ;;  %v706_v44 = vshrl.u32 %v6744_v17, 16  ;;  %444 = vst [vmem:[#allocation2 + $0x54] sm:$0x1] %v443_v54  ;;  %973 = vst.msk [vmem:[#allocation2 + $0x40] sm:$0xf] %vm411_vm0, %v703_v48  ;;  %v709_v56 = vshll.u32 %v6744_v17, 16 }
  0x62   : > { %976 = vst [vmem:[#allocation2 + $0x44] sm:$0x1] %v975_v32  ;;  %v714_v58 = vshrl.u32 %v6745_v20, 16  ;;  %v717_v2 = vshll.u32 %v6745_v20, 16  ;;  %v391_v62 = vmax.f32 %v359_v52, 0.0  ;;  %v392_v4 = vmax.f32 %v360_v41, 0.0 }
  0x63   : > { %7168 = vmatprep.mubr.msk.bf16.mxu1 %vm1578_vm10, %v6274_v61  ;;  %v708_v23 = vrot.slane %v706_v44, 7  ;;  %v493_v1 = vsel %vm8023_vm7, 0, %v492_v43  ;;  %v6829_v24 = vunpack.c.h.bf16 %v8265_v53  ;;  %v322_v10 = vmul.f32 %v6828_v3, %v8019_v18 }
  0x64   : > { %v716_v5 = vrot.slane %v714_v58, 7  ;;  %494 = vst [vmem:[#allocation2 + $0x5c] sm:$0x1] %v493_v1  ;;  %v8322_v8 = vpack.c.bf16 %v391_v62, %v391_v62  ;;  %v446_v11 = vsel %vm8011_vm5, 0, %v445_v51  ;;  %v8329_v13 = vpack.c.bf16 %v392_v4, %v392_v4  ;;  %v8347_v62 = vld [vmem:[%s8032_s16 + $0x40] sm:$0xff]  }
  0x65   : > { %v1064_v9 = vld [vmem:[#allocation2 + $0x3c] sm:$0xf]  ;;  %v711_v15 = vor.u32 %v709_v56, %v708_v23  ;;  %v712_v25 = vrot.slane %v708_v23, 4  ;;  %v323_v21 = vmul.f32 %v6829_v24, %v8019_v18  ;;  %447 = vst [vmem:[#allocation2 + $0x60] sm:$0x1] %v446_v11  ;;  %v8340_v17 = vadd.f32 %v8049_v34, %v322_v10 }
  0x66   : > { %v2984_v12 = vld [vmem:[#allocation2 + $0x3c] sm:$0xf]  ;;  %v1234_v39 = vshrl.u32 %v1064_v9, 16  ;;  %v1237_v26 = vshll.u32 %v1064_v9, 16  ;;  %v981_v7 = vld [vmem:[#allocation2 + $0x50] sm:$0x1]  ;;  %v719_v30 = vor.u32 %v717_v2, %v716_v5 }
  0x67   : > { %v3117_v27 = vshrl.u32 %v2984_v12, 16  ;;  %v3120_v14 = vshll.u32 %v2984_v12, 16  ;;  %v721_v53 = vrot.slane %v716_v5, 4  ;;  %v978_v3 = vsel %vm8092_vm11, %v711_v15, %v977_v59 }
  0x68   : > { %v723_v37 = vshrl.u32 %v8322_v8, 16  ;;  %v1236_v38 = vrot.slane %v1234_v39, 4  ;;  %v1239_v55 = vrot.slane %v1237_v26, 5  ;;  %979 = vst [vmem:[#allocation2 + $0x48] sm:$0xf] %v978_v3  ;;  %v720_v49 = vsel %vm8099_vm12, %v712_v25, %v719_v30 }
  0x69   : > { %v3119_v28 = vrot.slane %v3117_v27, 4  ;;  %v3122_v40 = vrot.slane %v3120_v14, 5  ;;  %v1065_v35 = vld [vmem:[#allocation2 + $0x40] sm:$0xf]  ;;  %v1099_v18 = vld [vmem:[#allocation2 + $0x44] sm:$0x1]  ;;  %v982_v45 = vsel %vm8011_vm5, %v721_v53, %v981_v7  ;;  %v8343_v20 = vadd.f32 %v8049_v34, %v323_v21 }
  0x6a   : > { %v2985_v43 = vld [vmem:[#allocation2 + $0x40] sm:$0xf]  ;;  %v1240_v51 = vor.u32 %v1239_v55, %v1236_v38  ;;  %v1243_v31 = vshll.u32 %v1065_v35, 16  ;;  %v1247_v52 = vshrl.u32 %v1065_v35, 16  ;;  %v1253_v41 = vshll.u32 %v1099_v18, 16 }
  0x6b   : > { %v2986_v54 = vld [vmem:[#allocation2 + $0x44] sm:$0x1]  ;;  %980 = vst.msk [vmem:[#allocation2 + $0x4c] sm:$0xf] %vm411_vm0, %v720_v49  ;;  %983 = vst [vmem:[#allocation2 + $0x50] sm:$0x1] %v982_v45  ;;  %v3123_v61 = vor.u32 %v3122_v40, %v3119_v28  ;;  %v6832_v38 = vunpack.c.l.bf16 %v8347_v62 }
  0x6c   : > { %v3126_v48 = vshll.u32 %v2985_v43, 16  ;;  %v3130_v32 = vshrl.u32 %v2985_v43, 16  ;;  %v3136_v44 = vshll.u32 %v2986_v54, 16  ;;  %v1241_v56 = vrot.slane %v1240_v51, 4 }
  0x6d   : > { %v1245_v58 = vrot.slane %v1243_v31, 5  ;;  %v1249_v2 = vrot.slane %v1247_v52, 4  ;;  %v1255_v59 = vrot.slane %v1253_v41, 5  ;;  %v3124_v34 = vrot.slane %v3123_v61, 4 }
  0x6e   : > { %v3128_v23 = vrot.slane %v3126_v48, 5  ;;  %v3132_v4 = vrot.slane %v3130_v32, 4  ;;  %v3138_v1 = vrot.slane %v3136_v44, 5  ;;  %v8351_v10 = vrot.slane %v723_v37, 7 }
  0x6f   : > { %v1246_v24 = vsel %vm8042_vm8, %v1241_v56, %v1245_v58  ;;  %v1250_v5 = vor.u32 %v1249_v2, %v1245_v58  ;;  %v726_v11 = vshll.u32 %v8322_v8, 16  ;;  %v2987_v15 = vld [vmem:[#allocation2 + $0x48] sm:$0xf]  ;;  %v731_v21 = vshrl.u32 %v8329_v13, 16  ;;  %v984_v56 = vld [vmem:[#allocation2 + $0x54] sm:$0xf] }
  0x70   : > { %v3129_v9 = vsel %vm8042_vm8, %v3124_v34, %v3128_v23  ;;  %v3133_v12 = vor.u32 %v3132_v4, %v3128_v23  ;;  %v1066_v25 = vld [vmem:[#allocation2 + $0x48] sm:$0xf]  ;;  %v734_v39 = vshll.u32 %v8329_v13, 16  ;;  %v3141_v27 = vshrl.u32 %v2987_v15, 16  ;;  %v988_v4 = vld [vmem:[#allocation2 + $0x5c] sm:$0x1] }
  0x71   : > { %v1251_v26 = vrot.slane %v1250_v5, 4  ;;  %v3144_v14 = vshll.u32 %v2987_v15, 16  ;;  %v1258_v7 = vshrl.u32 %v1066_v25, 16  ;;  %v1261_v8 = vshll.u32 %v1066_v25, 16  ;;  %v495_v58 = vld [vmem:[#allocation2 + $0x68] sm:$0x1] }
  0x72   : > { %v3134_v30 = vrot.slane %v3133_v12, 4  ;;  %v8358_v53 = vld [vmem:[#allocation2 + $0x4c] sm:$0xf]  ;;  %v8360_v3 = vld [vmem:[#allocation2 + $0x50] sm:$0x1]  ;;  %v728_v37 = vor.u32 %v726_v11, %v8351_v10  ;;  %v3143_v28 = vrot.slane %v3141_v27, 4 }
  0x73   : > { %v1256_v55 = vsel %vm8042_vm8, %v1251_v26, %v1255_v59  ;;  %v3146_v40 = vrot.slane %v3144_v14, 5  ;;  %v3150_v13 = vshll.u32 %v8358_v53, 16  ;;  %v1067_v35 = vld [vmem:[#allocation2 + $0x4c] sm:$0xf]  ;;  %v3154_v49 = vshrl.u32 %v8358_v53, 16 }
  0x74   : > { %v6275_v18 = vcombine.low %v1246_v24, %v1256_v55  ;;  %v3139_v43 = vsel %vm8042_vm8, %v3134_v30, %v3138_v1  ;;  %v3160_v45 = vshll.u32 %v8360_v3, 16  ;;  %v1100_v51 = vld [vmem:[#allocation2 + $0x50] sm:$0x1]  ;;  %v1260_v54 = vrot.slane %v1258_v7, 4  ;;  %v448_v26 = vld [vmem:[#allocation2 + $0x6c] sm:$0x1] }
  0x75   : > { %v6458_v31 = vcombine.low %v3129_v9, %v3139_v43  ;;  %v3147_v52 = vor.u32 %v3146_v40, %v3143_v28  ;;  %v3152_v41 = vrot.slane %v3150_v13, 5  ;;  %v3156_v61 = vrot.slane %v3154_v49, 4  ;;  %v498_v27 = vld [vmem:[#allocation2 + $0x74] sm:$0x1]  ;;  %v8395_v49 = vld [vmem:[%s9933_s1] ss:$0 sm:$0xff] }
  0x76   : > { %7169 = vmatmul.mubr.msk.bf16.gmra.mrb[8].mxu1 %vm1578_vm10, %v6275_v18  ;;  %v3162_v48 = vrot.slane %v3160_v45, 5  ;;  %v1263_v32 = vrot.slane %v1261_v8, 5  ;;  %v1267_v44 = vshll.u32 %v1067_v35, 16  ;;  %v1271_v59 = vshrl.u32 %v1067_v35, 16  ;;  %v7876_v22 = vld [vmem:[#allocation2 + $0x48] sm:$0xf] }
  0x77   : > { %7328 = vmatprep.mubr.msk.bf16.mxu0 %vm1578_vm10, %v6458_v31  ;;  %v3148_v2 = vrot.slane %v3147_v52, 4  ;;  %v1277_v34 = vshll.u32 %v1100_v51, 16  ;;  %v729_v23 = vrot.slane %v8351_v10, 4  ;;  %v3157_v1 = vor.u32 %v3156_v61, %v3152_v41  ;;  %v8403_v52 = vld [vmem:[%s8032_s16 + $0x48] sm:$0xff]  }
  0x78   : > { %v1264_v24 = vor.u32 %v1263_v32, %v1260_v54  ;;  %v1269_v5 = vrot.slane %v1267_v44, 5  ;;  %v733_v11 = vrot.slane %v731_v21, 7  ;;  %v1273_v12 = vrot.slane %v1271_v59, 4 }
  0x79   : > { %v3153_v9 = vsel %vm8042_vm8, %v3148_v2, %v3152_v41  ;;  %v1279_v15 = vrot.slane %v1277_v34, 5  ;;  %v985_v25 = vsel %vm8092_vm11, %v728_v37, %v984_v56  ;;  %v3158_v14 = vrot.slane %v3157_v1, 4  ;;  %v7803_v41 = vld [vmem:[%s9935_s3 + $0x40] sm:$0xff]  }
  0x7a   : > { %v1265_v7 = vrot.slane %v1264_v24, 4  ;;  %v736_v30 = vor.u32 %v734_v39, %v733_v11  ;;  %v738_v8 = vrot.slane %v733_v11, 4  ;;  %986 = vst [vmem:[#allocation2 + $0x54] sm:$0xf] %v985_v25  ;;  %v1274_v10 = vor.u32 %v1273_v12, %v1269_v5  ;;  %v8415_v56 = vld [vmem:[%s9934_s2] ss:$0 sm:$0xff]  ;;  %7232 = vmatprep.subr.bf16.mxu1 %v7803_v41 }
  0x7b   : > { %v393_v55 = vmax.f32 %v8340_v17, 0.0  ;;  %v394_v21 = vmax.f32 %v8343_v20, 0.0  ;;  %v496_v28 = vsel %vm8023_vm7, 0, %v495_v58  ;;  %v3163_v40 = vsel %vm8042_vm8, %v3158_v14, %v3162_v48 }
  0x7c   : > { %v1270_v37 = vsel %vm8042_vm8, %v1265_v7, %v1269_v5  ;;  %v737_v39 = vsel %vm8099_vm12, %v729_v23, %v736_v30  ;;  %v989_v13 = vsel %vm8011_vm5, %v738_v8, %v988_v4  ;;  %497 = vst [vmem:[#allocation2 + $0x68] sm:$0x1] %v496_v28  ;;  %v6459_v17 = vcombine.low %v3153_v9, %v3163_v40  ;;  %v991_v8 = vld [vmem:[#allocation2 + $0x60] sm:$0xf] }
  0x7d   : > { %v1275_v35 = vrot.slane %v1274_v10, 4  ;;  %987 = vst.msk [vmem:[#allocation2 + $0x58] sm:$0xf] %vm411_vm0, %v737_v39  ;;  %990 = vst [vmem:[#allocation2 + $0x5c] sm:$0x1] %v989_v13  ;;  %v6748_v20 = vpack.c.bf16 %v393_v55, %v393_v55  ;;  %v6749_v18 = vpack.c.bf16 %v394_v21, %v394_v21  ;;  %v6833_v43 = vunpack.c.h.bf16 %v8347_v62 }
  0x7e   : > { %v324_v45 = vmul.f32 %v8395_v49, %v6832_v38  ;;  %v449_v51 = vsel %vm8011_vm5, 0, %v448_v26  ;;  %v499_v31 = vsel %vm8023_vm7, 0, %v498_v27  ;;  %7329 = vmatmul.mubr.msk.bf16.gmra.mrb[8].mxu0 %vm1578_vm10, %v6459_v17  ;;  %v6836_v4 = vunpack.c.l.bf16 %v8403_v52 }
  0x7f   : > { %v1280_v62 = vsel %vm8042_vm8, %v1275_v35, %v1279_v15  ;;  %v740_v54 = vshrl.u32 %v6748_v20, 16  ;;  %v743_v61 = vshll.u32 %v6748_v20, 16  ;;  %v748_v38 = vshrl.u32 %v6749_v18, 16  ;;  %450 = vst [vmem:[#allocation2 + $0x6c] sm:$0x1] %v449_v51 }
  0x80   : > { %500 = vst [vmem:[#allocation2 + $0x74] sm:$0x1] %v499_v31  ;;  %v6276_v48 = vcombine.low %v1270_v37, %v1280_v62  ;;  %v751_v32 = vshll.u32 %v6749_v18, 16  ;;  %v325_v44 = vmul.f32 %v8395_v49, %v6833_v43  ;;  %v8418_v58 = vadd.f32 %v8415_v56, %v324_v45 }
  0x81   : > { %v1068_v2 = vld [vmem:[#allocation2 + $0x54] sm:$0xf]  ;;  %v742_v34 = vrot.slane %v740_v54, 7  ;;  %v750_v23 = vrot.slane %v748_v38, 7  ;;  %v6837_v1 = vunpack.c.h.bf16 %v8403_v52  ;;  %v8425_v55 = vmul.f32 %v8395_v49, %v6836_v4 }
  0x82   : > { %v2990_v59 = vld [vmem:[#allocation2 + $0x54] sm:$0xf]  ;;  %7172 = vmatprep.mubr.msk.bf16.mxu1 %vm1578_vm10, %v6276_v48  ;;  %v1282_v24 = vshrl.u32 %v1068_v2, 16  ;;  %v1285_v5 = vshll.u32 %v1068_v2, 16  ;;  %v364_v10 = vadd.f32 %v8415_v56, %v325_v44  ;;  %v3726_v48 = vld [vmem:[#allocation2 + $0xc] sm:$0xe] }
  0x83   : > { %v3165_v11 = vshrl.u32 %v2990_v59, 16  ;;  %v3168_v9 = vshll.u32 %v2990_v59, 16  ;;  %v745_v12 = vor.u32 %v743_v61, %v742_v34  ;;  %v746_v15 = vrot.slane %v742_v34, 4  ;;  %v995_v41 = vld [vmem:[#allocation2 + $0x68] sm:$0x1] }
  0x84   : > { %v753_v25 = vor.u32 %v751_v32, %v750_v23  ;;  %v755_v26 = vrot.slane %v750_v23, 4  ;;  %v1069_v27 = vld [vmem:[#allocation2 + $0x58] sm:$0xf]  ;;  %v1101_v14 = vld [vmem:[#allocation2 + $0x5c] sm:$0x1]  ;;  %v1284_v7 = vrot.slane %v1282_v24, 4  ;;  %v327_v6 = vmul.f32 %v8395_v49, %v6837_v1 }
  0x85   : > { %v1287_v30 = vrot.slane %v1285_v5, 5  ;;  %v1291_v21 = vshll.u32 %v1069_v27, 16  ;;  %v1295_v28 = vshrl.u32 %v1069_v27, 16  ;;  %v1301_v40 = vshll.u32 %v1101_v14, 16  ;;  %v8427_v37 = vld [vmem:[#allocation2 + $0x58] sm:$0xf] }
  0x86   : > { %v3167_v39 = vrot.slane %v3165_v11, 4  ;;  %v8429_v17 = vld [vmem:[#allocation2 + $0x5c] sm:$0x1]  ;;  %v3170_v35 = vrot.slane %v3168_v9, 5  ;;  %v3174_v20 = vshll.u32 %v8427_v37, 16  ;;  %v3178_v18 = vshrl.u32 %v8427_v37, 16 }
  0x87   : > { %v1288_v13 = vor.u32 %v1287_v30, %v1284_v7  ;;  %v1293_v43 = vrot.slane %v1291_v21, 5  ;;  %v1297_v45 = vrot.slane %v1295_v28, 4  ;;  %v1303_v51 = vrot.slane %v1301_v40, 5  ;;  %v3727_v34 = vld [vmem:[#allocation2 + $0x18] sm:$0xe] }
  0x88   : > { %v3184_v31 = vshll.u32 %v8429_v17, 16  ;;  %v3171_v54 = vor.u32 %v3170_v35, %v3167_v39  ;;  %v3176_v61 = vrot.slane %v3174_v20, 5  ;;  %v3180_v38 = vrot.slane %v3178_v18, 4 }
  0x89   : > { %v1289_v62 = vrot.slane %v1288_v13, 4  ;;  %v1298_v32 = vor.u32 %v1297_v45, %v1293_v43  ;;  %v754_v2 = vsel %vm8099_vm12, %v746_v15, %v753_v25  ;;  %v992_v59 = vsel %vm8092_vm11, %v745_v12, %v991_v8 }
  0x8a   : > { %v3186_v44 = vrot.slane %v3184_v31, 5  ;;  %v3172_v4 = vrot.slane %v3171_v54, 4  ;;  %v3181_v24 = vor.u32 %v3180_v38, %v3176_v61  ;;  %993 = vst [vmem:[#allocation2 + $0x60] sm:$0xf] %v992_v59  ;;  %994 = vst.msk [vmem:[#allocation2 + $0x64] sm:$0xf] %vm411_vm0, %v754_v2  ;;  %v996_v5 = vsel %vm8011_vm5, %v755_v26, %v995_v41 }
  0x8b   : > { %v1294_v23 = vsel %vm8042_vm8, %v1289_v62, %v1293_v43  ;;  %v1299_v11 = vrot.slane %v1298_v32, 4  ;;  %997 = vst [vmem:[#allocation2 + $0x68] sm:$0x1] %v996_v5  ;;  %v395_v9 = vmax.f32 %v8418_v58, 0.0  ;;  %v396_v15 = vmax.f32 %v364_v10, 0.0  ;;  %v8483_v43 = vld [vmem:[%s8032_s16 + $0x50] sm:$0xff]  }
  0x8c   : > { %v3177_v12 = vsel %vm8042_vm8, %v3172_v4, %v3176_v61  ;;  %v3182_v25 = vrot.slane %v3181_v24, 4  ;;  %v6490_v27 = vrot.slane %v3726_v48, 9  ;;  %v3794_v58 = vrot.slane %v3792_v63, 4 }
  0x8d   : > { %v1304_v14 = vsel %vm8042_vm8, %v1299_v11, %v1303_v51  ;;  %v6750_v7 = vpack.c.bf16 %v395_v9, %v395_v9  ;;  %v6751_v30 = vpack.c.bf16 %v396_v15, %v396_v15  ;;  %v6491_v28 = vrot.slane %v3727_v34, 9 }
  0x8e   : > { %v6277_v8 = vcombine.low %v1294_v23, %v1304_v14  ;;  %v3187_v10 = vsel %vm8042_vm8, %v3182_v25, %v3186_v44  ;;  %v8460_v21 = vsel %vm8448_vm15, %v6490_v27, %v3792_v63  ;;  %v8467_v18 = vsel %vm8448_vm15, %v3794_v58, %v3795_v0 }
  0x8f   : > { %v6460_v40 = vcombine.low %v3177_v12, %v3187_v10  ;;  %v757_v39 = vshrl.u32 %v6750_v7, 16  ;;  %v760_v13 = vshll.u32 %v6750_v7, 16  ;;  %v765_v35 = vshrl.u32 %v6751_v30, 16 }
  0x90   : > { %7173 = vmatmul.mubr.msk.bf16.gmra.mrb[12].mxu1 %vm1578_vm10, %v6277_v8  ;;  %v768_v20 = vshll.u32 %v6751_v30, 16  ;;  %v8473_v42 = vsel %vm8448_vm15, %v6491_v28, %v3799_v46  ;;  %v8480_v63 = vsel %vm8448_vm15, %v8186_v57, %v3802_v47  ;;  %v6514_v60 = vcombine.low %v8460_v21, %v8467_v18  ;;  %v998_v8 = vld [vmem:[#allocation2 + $0x6c] sm:$0xf]  ;;  %v8538_v21 = vld [vmem:[#allocation2 + $0x30] sm:$0xe] }
  0x91   : > { %7332 = vmatprep.mubr.msk.bf16.mxu0 %vm1578_vm10, %v6460_v40  ;;  %v2993_v50 = vld [vmem:[#allocation2 + $0x60] sm:$0xf]  ;;  %v8486_v0 = vld [vmem:[#allocation2 + $0x64] sm:$0xf]  ;;  %v6515_v46 = vcombine.low %v8473_v42, %v8480_v63  ;;  %v8497_v47 = vadd.f32 %v8415_v56, %v8425_v55  ;;  %v366_v52 = vadd.f32 %v8415_v56, %v327_v6  ;;  %v6840_v1 = vunpack.c.l.bf16 %v8483_v43  ;;  %v1002_v6 = vld [vmem:[#allocation2 + $0x74] sm:$0x1] }
  0x92   : > { %v1070_v45 = vld [vmem:[#allocation2 + $0x60] sm:$0xf]  ;;  %v8499_v57 = vld [vmem:[#allocation2 + $0x68] sm:$0x1]  ;;  %v3189_v51 = vshrl.u32 %v2993_v50, 16  ;;  %v3192_v31 = vshll.u32 %v2993_v50, 16 }
  0x93   : > { %v3198_v41 = vshll.u32 %v8486_v0, 16  ;;  %v3202_v62 = vshrl.u32 %v8486_v0, 16  ;;  %v3208_v54 = vshll.u32 %v8499_v57, 16  ;;  %v1071_v61 = vld [vmem:[#allocation2 + $0x64] sm:$0xf]  ;;  %v1306_v48 = vshrl.u32 %v1070_v45, 16 }
  0x94   : > { %v1102_v38 = vld [vmem:[#allocation2 + $0x68] sm:$0x1]  ;;  %v3191_v32 = vrot.slane %v3189_v51, 4  ;;  %v3194_v55 = vrot.slane %v3192_v31, 5  ;;  %v1309_v23 = vshll.u32 %v1070_v45, 16  ;;  %v1315_v4 = vshll.u32 %v1071_v61, 16 }
  0x95   : > { %v3200_v44 = vrot.slane %v3198_v41, 5  ;;  %v3204_v2 = vrot.slane %v3202_v62, 4  ;;  %v3210_v59 = vrot.slane %v3208_v54, 5  ;;  %v1308_v34 = vrot.slane %v1306_v48, 4 }
  0x96   : > { %v3195_v24 = vor.u32 %v3194_v55, %v3191_v32  ;;  %v1319_v11 = vshrl.u32 %v1071_v61, 16  ;;  %v1325_v9 = vshll.u32 %v1102_v38, 16  ;;  %v1311_v15 = vrot.slane %v1309_v23, 5 }
  0x97   : > { %v3205_v5 = vor.u32 %v3204_v2, %v3200_v44  ;;  %v1317_v12 = vrot.slane %v1315_v4, 5  ;;  %v759_v25 = vrot.slane %v757_v39, 7  ;;  %v767_v27 = vrot.slane %v765_v35, 7  ;;  %v451_v39 = vld [vmem:[#allocation2 + $0x78] sm:$0x1] }
  0x98   : > { %v3196_v14 = vrot.slane %v3195_v24, 4  ;;  %v1321_v30 = vrot.slane %v1319_v11, 4  ;;  %v1327_v58 = vrot.slane %v1325_v9, 5  ;;  %v1312_v10 = vor.u32 %v1311_v15, %v1308_v34  ;;  %v501_v35 = vld [vmem:[#allocation2 + $0x80] sm:$0x1] }
  0x99   : > { %v3206_v7 = vrot.slane %v3205_v5, 4  ;;  %v762_v28 = vor.u32 %v760_v13, %v759_v25  ;;  %v763_v40 = vrot.slane %v759_v25, 4  ;;  %v770_v50 = vor.u32 %v768_v20, %v767_v27  ;;  %v454_v20 = vld [vmem:[#allocation2 + $0x84] sm:$0x1]  ;;  %v3728_v5 = vld [vmem:[#allocation2 + $0x24] sm:$0xe] }
  0x9a   : > { %v3201_v45 = vsel %vm8042_vm8, %v3196_v14, %v3200_v44  ;;  %v1322_v31 = vor.u32 %v1321_v30, %v1317_v12  ;;  %v772_v41 = vrot.slane %v767_v27, 4  ;;  %v1313_v54 = vrot.slane %v1312_v10, 4  ;;  %v504_v44 = vld [vmem:[#allocation2 + $0x8c] sm:$0x1]  ;;  %v8541_v27 = vld [vmem:[%s8032_s16 + $0x58] sm:$0xff]  }
  0x9b   : > { %v3211_v51 = vsel %vm8042_vm8, %v3206_v7, %v3210_v59  ;;  %v771_v61 = vsel %vm8099_vm12, %v763_v40, %v770_v50  ;;  %v999_v13 = vsel %vm8092_vm11, %v762_v28, %v998_v8  ;;  %v397_v32 = vmax.f32 %v8497_v47, 0.0  ;;  %v7855_v30 = vld [vmem:[#allocation2 + $0x28] sm:$0xf] }
  0x9c   : > { %v6461_v62 = vcombine.low %v3201_v45, %v3211_v51  ;;  %v1323_v38 = vrot.slane %v1322_v31, 4  ;;  %1000 = vst [vmem:[#allocation2 + $0x6c] sm:$0xf] %v999_v13  ;;  %1001 = vst.msk [vmem:[#allocation2 + $0x70] sm:$0xf] %vm411_vm0, %v771_v61  ;;  %v1003_v48 = vsel %vm8011_vm5, %v772_v41, %v1002_v6  ;;  %v398_v55 = vmax.f32 %v366_v52, 0.0 }
  0x9d   : > { %v1318_v2 = vsel %vm8042_vm8, %v1313_v54, %v1317_v12  ;;  %1004 = vst [vmem:[#allocation2 + $0x74] sm:$0x1] %v1003_v48  ;;  %v452_v59 = vsel %vm8011_vm5, 0, %v451_v39  ;;  %v502_v34 = vsel %vm8023_vm7, 0, %v501_v35  ;;  %v6841_v23 = vunpack.c.h.bf16 %v8483_v43  ;;  %v7802_v50 = vld [vmem:[%s9935_s3 + $0xc8] sm:$0xff]  }
  0x9e   : > { %7333 = vmatmul.mubr.msk.bf16.gmra.mrb[12].mxu0 %vm1578_vm10, %v6461_v62  ;;  %v1328_v4 = vsel %vm8042_vm8, %v1323_v38, %v1327_v58  ;;  %453 = vst [vmem:[#allocation2 + $0x78] sm:$0x1] %v452_v59  ;;  %503 = vst [vmem:[#allocation2 + $0x80] sm:$0x1] %v502_v34  ;;  %v6752_v47 = vpack.c.bf16 %v397_v32, %v397_v32  ;;  %v6753_v52 = vpack.c.bf16 %v398_v55, %v398_v55  ;;  %v7856_v34 = vld [vmem:[%s9935_s3 + $0xc0] sm:$0xff]  }
  0x9f   : > { %7360 = vmatprep.mubr.msk.bf16.mxu0 %vm1578_vm10, %v6514_v60  ;;  %v328_v24 = vmul.f32 %v8395_v49, %v6840_v1  ;;  %v6278_v11 = vcombine.low %v1318_v2, %v1328_v4  ;;  %v329_v9 = vmul.f32 %v8395_v49, %v6841_v23  ;;  %v455_v43 = vsel %vm8011_vm5, 0, %v454_v20 }
  0xa0   : > { %v505_v15 = vsel %vm8023_vm7, 0, %v504_v44  ;;  %v774_v18 = vshrl.u32 %v6752_v47, 16  ;;  %v777_v60 = vshll.u32 %v6752_v47, 16  ;;  %v782_v12 = vshrl.u32 %v6753_v52, 16  ;;  %456 = vst [vmem:[#allocation2 + $0x84] sm:$0x1] %v455_v43 }
  0xa1   : > { %v785_v25 = vshll.u32 %v6753_v52, 16  ;;  %506 = vst [vmem:[#allocation2 + $0x8c] sm:$0x1] %v505_v15  ;;  %7176 = vmatprep.mubr.msk.bf16.mxu1 %vm1578_vm10, %v6278_v11  ;;  %v367_v1 = vadd.f32 %v8415_v56, %v328_v24  ;;  %v368_v14 = vadd.f32 %v8415_v56, %v329_v9  ;;  %v6492_v7 = vrot.slane %v3728_v5, 9  ;;  %v7804_v47 = vld [vmem:[%s9935_s3 + $0xd0] sm:$0xff]  }
  0xa2   : > { %v3806_v58 = vrot.slane %v7855_v30, 5  ;;  %v776_v8 = vrot.slane %v774_v18, 7  ;;  %v784_v10 = vrot.slane %v782_v12, 7  ;;  %v3809_v28 = vrot.slane %v8259_v36, 5  ;;  %v7857_v15 = vld [vmem:[#allocation2 + $0x34] sm:$0xf] }
  0xa3   : > { %v6493_v40 = vrot.slane %v8538_v21, 9  ;;  %v1072_v6 = vld [vmem:[#allocation2 + $0x6c] sm:$0xf]  ;;  %v1073_v45 = vld [vmem:[#allocation2 + $0x70] sm:$0xf]  ;;  %v399_v51 = vmax.f32 %v367_v1, 0.0  ;;  %v6844_v39 = vunpack.c.l.bf16 %v8541_v27 }
  0xa4   : > { %v400_v31 = vmax.f32 %v368_v14, 0.0  ;;  %v8553_v41 = vsel %vm8448_vm15, %v6492_v7, %v3806_v58  ;;  %v1103_v35 = vld [vmem:[#allocation2 + $0x74] sm:$0x1]  ;;  %v1330_v62 = vshrl.u32 %v1072_v6, 16  ;;  %v1333_v54 = vshll.u32 %v1072_v6, 16 }
  0xa5   : > { %v1339_v36 = vshll.u32 %v1073_v45, 16  ;;  %v1343_v61 = vshrl.u32 %v1073_v45, 16  ;;  %v1349_v13 = vshll.u32 %v1103_v35, 16  ;;  %v779_v20 = vor.u32 %v777_v60, %v776_v8  ;;  %v1005_v32 = vld [vmem:[#allocation2 + $0x78] sm:$0xf] }
  0xa6   : > { %7361 = vmatmul.mubr.msk.bf16.vlgmr.msra.gmra.mrb[0].mxu0 %vm1578_vm10, %v6515_v46  ;;  %v780_v38 = vrot.slane %v776_v8, 4  ;;  %v787_v48 = vor.u32 %v785_v25, %v784_v10  ;;  %v1332_v55 = vrot.slane %v1330_v62, 4  ;;  %v1335_v44 = vrot.slane %v1333_v54, 5  ;;  %v1009_v23 = vld [vmem:[#allocation2 + $0x80] sm:$0x1]  ;;  %v7806_v25 = vld [vmem:[%s9935_s3 + $0xd8] sm:$0xff]  }
  0xa7   : > { %v1341_v2 = vrot.slane %v1339_v36, 5  ;;  %v1345_v59 = vrot.slane %v1343_v61, 4  ;;  %7393 = vmatpush3.bf16.msra.mxu0 %v7856_v34  ;;  %v1351_v4 = vrot.slane %v1349_v13, 5  ;;  %v789_v63 = vrot.slane %v784_v10, 4  ;;  %v7858_v18 = vld [vmem:[#allocation2 + $0x38] sm:$0x1] }
  0xa8   : > { %v788_v42 = vsel %vm8099_vm12, %v780_v38, %v787_v48  ;;  %v1006_v46 = vsel %vm8092_vm11, %v779_v20, %v1005_v32  ;;  %7394 = vmatprep.subr.bf16.mxu0 %v7802_v50  ;;  %v1336_v52 = vor.u32 %v1335_v44, %v1332_v55  ;;  %v6754_v5 = vpack.c.bf16 %v399_v51, %v399_v51  ;;  %v457_v12 = vld [vmem:[#allocation2 + $0x90] sm:$0x1]  ;;  %v1012_v13 = vld [vmem:[#allocation2 + $0x84] sm:$0xf]  ;;  %v1016_v20 = vld [vmem:[#allocation2 + $0x8c] sm:$0x1] }
  0xa9   : > { %v1346_v24 = vor.u32 %v1345_v59, %v1341_v2  ;;  %1007 = vst [vmem:[#allocation2 + $0x78] sm:$0xf] %v1006_v46  ;;  %1008 = vst.msk [vmem:[#allocation2 + $0x7c] sm:$0xf] %vm411_vm0, %v788_v42  ;;  %v6755_v11 = vpack.c.bf16 %v400_v31, %v400_v31  ;;  %v1010_v9 = vsel %vm8011_vm5, %v789_v63, %v1009_v23  ;;  %v3808_v43 = vrot.slane %v3806_v58, 4 }
  0xaa   : > { %v3813_v21 = vrot.slane %v7857_v15, 5  ;;  %v3816_v60 = vrot.slane %v7858_v18, 5  ;;  %v1337_v1 = vrot.slane %v1336_v52, 4  ;;  %1011 = vst [vmem:[#allocation2 + $0x80] sm:$0x1] %v1010_v9  ;;  %v791_v7 = vshrl.u32 %v6754_v5, 16 }
  0xab   : > { %v1347_v14 = vrot.slane %v1346_v24, 4  ;;  %v794_v30 = vshll.u32 %v6754_v5, 16  ;;  %7395 = vmatpush3.bf16.msra.mxu0 %v7802_v50  ;;  %v799_v8 = vshrl.u32 %v6755_v11, 16  ;;  %v802_v10 = vshll.u32 %v6755_v11, 16  ;;  %v6953_v24 = vld [vmem:[%s8032_s16 + $0x60] sm:$0xff]  }
  0xac   : > { %v3810_v58 = vsel %vm8448_vm15, %v3808_v43, %v3809_v28  ;;  %v3814_v6 = vsel %vm8448_vm15, %v6493_v40, %v3813_v21  ;;  %7396 = vmatprep.subr.bf16.mxu0 %v7804_v47  ;;  %v1342_v45 = vsel %vm8042_vm8, %v1337_v1, %v1341_v2  ;;  %v793_v31 = vrot.slane %v791_v7, 7  ;;  %v460_v5 = vld [vmem:[#allocation2 + $0x9c] sm:$0x1] }
  0xad   : > { %v1352_v51 = vsel %vm8042_vm8, %v1347_v14, %v1351_v4  ;;  %v6516_v35 = vcombine.low %v8553_v41, %v3810_v58  ;;  %v801_v50 = vrot.slane %v799_v8, 7  ;;  %v3815_v54 = vrot.slane %v3813_v21, 4  ;;  %v507_v4 = vld [vmem:[#allocation2 + $0x98] sm:$0x1]  ;;  %v510_v8 = vld [vmem:[#allocation2 + $0xa4] sm:$0x1] }
  0xae   : > { %v6279_v62 = vcombine.low %v1342_v45, %v1352_v51  ;;  %v6845_v36 = vunpack.c.h.bf16 %v8541_v27  ;;  %v796_v61 = vor.u32 %v794_v30, %v793_v31  ;;  %v797_v28 = vrot.slane %v793_v31, 4  ;;  %v7809_v27 = vld [vmem:[%s9935_s3 + $0xe0] sm:$0xff]   ;;  %v8614_v45 = vld [vmem:[#allocation2 + $0x3c] sm:$0xe] }
  0xaf   : > { %7364 = vmatprep.mubr.msk.bf16.mxu0 %vm1578_vm10, %v6516_v35  ;;  %v330_v40 = vmul.f32 %v8395_v49, %v6844_v39  ;;  %v458_v38 = vsel %vm8011_vm5, 0, %v457_v12  ;;  %7397 = vmatpush3.bf16.msra.mxu0 %v7804_v47  ;;  %v804_v32 = vor.u32 %v802_v10, %v801_v50  ;;  %v806_v55 = vrot.slane %v801_v50, 4  ;;  %v8619_v50 = vld [vmem:[%s8032_s16 + $0x68] sm:$0xff]  }
  0xb0   : > { %7177 = vmatmul.mubr.msk.bf16.gmra.mrb[16].mxu1 %vm1578_vm10, %v6279_v62  ;;  %v1074_v41 = vld [vmem:[#allocation2 + $0x78] sm:$0xf]  ;;  %v1075_v48 = vld [vmem:[#allocation2 + $0x7c] sm:$0xf]  ;;  %v3817_v44 = vsel %vm8448_vm15, %v3815_v54, %v3816_v60  ;;  %v331_v2 = vmul.f32 %v8395_v49, %v6845_v36  ;;  %459 = vst [vmem:[#allocation2 + $0x90] sm:$0x1] %v458_v38  ;;  %7398 = vmatprep.subr.bf16.mxu0 %v7806_v25  ;;  %v6848_v7 = vunpack.c.l.bf16 %v6953_v24  ;;  %v6849_v30 = vunpack.c.h.bf16 %v6953_v24 }
  0xb1   : > { %v1354_v39 = vshrl.u32 %v1074_v41, 16  ;;  %v1357_v59 = vshll.u32 %v1074_v41, 16  ;;  %v1363_v34 = vshll.u32 %v1075_v48, 16  ;;  %v1367_v23 = vshrl.u32 %v1075_v48, 16  ;;  %v1104_v42 = vld [vmem:[#allocation2 + $0x80] sm:$0x1] }
  0xb2   : > { %v805_v63 = vsel %vm8099_vm12, %v797_v28, %v804_v32  ;;  %v1013_v46 = vsel %vm8092_vm11, %v796_v61, %v1012_v13  ;;  %v1017_v47 = vsel %vm8011_vm5, %v806_v55, %v1016_v20  ;;  %v6517_v52 = vcombine.low %v3814_v6, %v3817_v44 }
  0xb3   : > { %v1356_v11 = vrot.slane %v1354_v39, 4  ;;  %v1359_v9 = vrot.slane %v1357_v59, 5  ;;  %v1365_v43 = vrot.slane %v1363_v34, 5  ;;  %v1369_v15 = vrot.slane %v1367_v23, 4  ;;  %1014 = vst [vmem:[#allocation2 + $0x84] sm:$0xf] %v1013_v46  ;;  %7399 = vmatpush3.bf16.msra.mxu0 %v7806_v25 }
  0xb4   : > { %1015 = vst.msk [vmem:[#allocation2 + $0x88] sm:$0xf] %vm411_vm0, %v805_v63  ;;  %1018 = vst [vmem:[#allocation2 + $0x8c] sm:$0x1] %v1017_v47  ;;  %v1373_v21 = vshll.u32 %v1104_v42, 16  ;;  %7365 = vmatmul.mubr.msk.bf16.gmra.mrb[4].mxu0 %vm1578_vm10, %v6517_v52  ;;  %v369_v18 = vadd.f32 %v8415_v56, %v330_v40  ;;  %v370_v60 = vadd.f32 %v8415_v56, %v331_v2  ;;  %v508_v12 = vsel %vm8023_vm7, 0, %v507_v4 }
  0xb5   : > { %7432 = vmatprep.subr.bf16.mxu0 %v7809_v27  ;;  %v1360_v1 = vor.u32 %v1359_v9, %v1356_v11  ;;  %v1370_v14 = vor.u32 %v1369_v15, %v1365_v43  ;;  %509 = vst [vmem:[#allocation2 + $0x98] sm:$0x1] %v508_v12  ;;  %v461_v6 = vsel %vm8011_vm5, 0, %v460_v5  ;;  %v332_v35 = vmul.f32 %v8395_v49, %v6848_v7 }
  0xb6   : > { %v1375_v10 = vrot.slane %v1373_v21, 5  ;;  %v401_v25 = vmax.f32 %v369_v18, 0.0  ;;  %v402_v58 = vmax.f32 %v370_v60, 0.0  ;;  %v333_v62 = vmul.f32 %v8395_v49, %v6849_v30  ;;  %462 = vst [vmem:[#allocation2 + $0x9c] sm:$0x1] %v461_v6 }
  0xb7   : > { %v1361_v51 = vrot.slane %v1360_v1, 4  ;;  %v1371_v31 = vrot.slane %v1370_v14, 4  ;;  %v511_v61 = vsel %vm8023_vm7, 0, %v510_v8  ;;  %v371_v20 = vadd.f32 %v8415_v56, %v332_v35  ;;  %v1019_v18 = vld [vmem:[#allocation2 + $0x90] sm:$0xf] }
  0xb8   : > { %v6756_v54 = vpack.c.bf16 %v401_v25, %v401_v25  ;;  %v6757_v36 = vpack.c.bf16 %v402_v58, %v402_v58  ;;  %512 = vst [vmem:[#allocation2 + $0xa4] sm:$0x1] %v511_v61  ;;  %v6494_v40 = vrot.slane %v8614_v45, 9  ;;  %v372_v55 = vadd.f32 %v8415_v56, %v333_v62  ;;  %v7859_v62 = vld [vmem:[#allocation2 + $0x40] sm:$0xf] }
  0xb9   : > { %v1366_v28 = vsel %vm8042_vm8, %v1361_v51, %v1365_v43  ;;  %v1376_v13 = vsel %vm8042_vm8, %v1371_v31, %v1375_v10  ;;  %v6852_v44 = vunpack.c.l.bf16 %v8619_v50  ;;  %v6853_v2 = vunpack.c.h.bf16 %v8619_v50  ;;  %v8642_v10 = vld [vmem:[%s8032_s16 + $0x70] sm:$0xff]  }
  0xba   : > { %v6280_v38 = vcombine.low %v1366_v28, %v1376_v13  ;;  %v8629_v41 = vld [vmem:[#allocation2 + $0x84] sm:$0xf]  ;;  %v808_v4 = vshrl.u32 %v6756_v54, 16  ;;  %v811_v42 = vshll.u32 %v6756_v54, 16  ;;  %v816_v63 = vshrl.u32 %v6757_v36, 16 }
  0xbb   : > { %v8631_v48 = vld [vmem:[#allocation2 + $0x88] sm:$0xf]  ;;  %v1105_v32 = vld [vmem:[#allocation2 + $0x8c] sm:$0x1]  ;;  %v1378_v27 = vshrl.u32 %v8629_v41, 16  ;;  %v1381_v39 = vshll.u32 %v8629_v41, 16 }
  0xbc   : > { %v1387_v59 = vshll.u32 %v8631_v48, 16  ;;  %v1391_v34 = vshrl.u32 %v8631_v48, 16  ;;  %7180 = vmatprep.mubr.msk.bf16.mxu1 %vm1578_vm10, %v6280_v38  ;;  %v1397_v23 = vshll.u32 %v1105_v32, 16  ;;  %v810_v11 = vrot.slane %v808_v4, 7  ;;  %v1023_v60 = vld [vmem:[#allocation2 + $0x98] sm:$0x1] }
  0xbd   : > { %v1380_v46 = vrot.slane %v1378_v27, 4  ;;  %v1383_v47 = vrot.slane %v1381_v39, 5  ;;  %v818_v9 = vrot.slane %v816_v63, 7  ;;  %v819_v43 = vshll.u32 %v6757_v36, 16  ;;  %v3731_v36 = vld [vmem:[#allocation2 + $0x48] sm:$0xe] }
  0xbe   : > { %v1389_v52 = vrot.slane %v1387_v59, 5  ;;  %v1393_v24 = vrot.slane %v1391_v34, 4  ;;  %v1399_v5 = vrot.slane %v1397_v23, 5  ;;  %v403_v12 = vmax.f32 %v371_v20, 0.0  ;;  %v7860_v23 = vld [vmem:[#allocation2 + $0x44] sm:$0x1] }
  0xbf   : > { %v1384_v15 = vor.u32 %v1383_v47, %v1380_v46  ;;  %v404_v1 = vmax.f32 %v372_v55, 0.0  ;;  %v813_v14 = vor.u32 %v811_v42, %v810_v11  ;;  %v814_v7 = vrot.slane %v810_v11, 4  ;;  %v1026_v63 = vld [vmem:[#allocation2 + $0x9c] sm:$0xf]  ;;  %v1030_v11 = vld [vmem:[#allocation2 + $0xa4] sm:$0x1] }
  0xc0   : > { %v1394_v21 = vor.u32 %v1393_v24, %v1389_v52  ;;  %v821_v30 = vor.u32 %v819_v43, %v818_v9  ;;  %v823_v8 = vrot.slane %v818_v9, 4  ;;  %v6758_v6 = vpack.c.bf16 %v403_v12, %v403_v12 }
  0xc1   : > { %v1385_v25 = vrot.slane %v1384_v15, 4  ;;  %v6759_v45 = vpack.c.bf16 %v404_v1, %v404_v1  ;;  %v1020_v31 = vsel %vm8092_vm11, %v813_v14, %v1019_v18  ;;  %v3820_v54 = vrot.slane %v7859_v62, 5  ;;  %v463_v1 = vld [vmem:[#allocation2 + $0xa8] sm:$0x1] }
  0xc2   : > { %v1395_v58 = vrot.slane %v1394_v21, 4  ;;  %v822_v51 = vsel %vm8099_vm12, %v814_v7, %v821_v30  ;;  %v1024_v35 = vsel %vm8011_vm5, %v823_v8, %v1023_v60  ;;  %1021 = vst [vmem:[#allocation2 + $0x90] sm:$0xf] %v1020_v31  ;;  %v825_v13 = vshrl.u32 %v6758_v6, 16 }
  0xc3   : > { %v1390_v61 = vsel %vm8042_vm8, %v1385_v25, %v1389_v52  ;;  %1022 = vst.msk [vmem:[#allocation2 + $0x94] sm:$0xf] %vm411_vm0, %v822_v51  ;;  %1025 = vst [vmem:[#allocation2 + $0x98] sm:$0x1] %v1024_v35  ;;  %v828_v20 = vshll.u32 %v6758_v6, 16  ;;  %v833_v32 = vshrl.u32 %v6759_v45, 16  ;;  %v6856_v27 = vunpack.c.l.bf16 %v8642_v10 }
  0xc4   : > { %v1400_v28 = vsel %vm8042_vm8, %v1395_v58, %v1399_v5  ;;  %v836_v55 = vshll.u32 %v6759_v45, 16  ;;  %v827_v39 = vrot.slane %v825_v13, 7  ;;  %v3821_v59 = vsel %vm8448_vm15, %v6494_v40, %v3820_v54  ;;  %v513_v51 = vld [vmem:[#allocation2 + $0xb0] sm:$0x1] }
  0xc5   : > { %v6281_v38 = vcombine.low %v1390_v61, %v1400_v28  ;;  %v3822_v34 = vrot.slane %v3820_v54, 4  ;;  %v3823_v4 = vrot.slane %v7860_v23, 5  ;;  %v835_v42 = vrot.slane %v833_v32, 7 }
  0xc6   : > { %v6495_v46 = vrot.slane %v3731_v36, 9  ;;  %v3827_v47 = vrot.slane %v8358_v53, 5  ;;  %v334_v52 = vmul.f32 %v8395_v49, %v6852_v44  ;;  %v830_v24 = vor.u32 %v828_v20, %v827_v39  ;;  %v466_v36 = vld [vmem:[#allocation2 + $0xb4] sm:$0x1]  ;;  %v516_v20 = vld [vmem:[#allocation2 + $0xbc] sm:$0x1] }
  0xc7   : > { %7181 = vmatmul.mubr.msk.bf16.gmra.mrb[20].mxu1 %vm1578_vm10, %v6281_v38  ;;  %v831_v5 = vrot.slane %v827_v39, 4  ;;  %v3824_v9 = vsel %vm8448_vm15, %v3822_v34, %v3823_v4  ;;  %v335_v40 = vmul.f32 %v8395_v49, %v6853_v2  ;;  %v838_v43 = vor.u32 %v836_v55, %v835_v42 }
  0xc8   : > { %v840_v15 = vrot.slane %v835_v42, 4  ;;  %v6518_v21 = vcombine.low %v3821_v59, %v3824_v9  ;;  %v3830_v18 = vrot.slane %v8360_v3, 5  ;;  %v1027_v53 = vsel %vm8092_vm11, %v830_v24, %v1026_v63 }
  0xc9   : > { %v3829_v60 = vrot.slane %v3827_v47, 4  ;;  %v373_v44 = vadd.f32 %v8415_v56, %v334_v52  ;;  %v374_v12 = vadd.f32 %v8415_v56, %v335_v40  ;;  %v8671_v14 = vld [vmem:[#allocation2 + $0x90] sm:$0xf]  ;;  %v839_v2 = vsel %vm8099_vm12, %v831_v5, %v838_v43  ;;  %1028 = vst [vmem:[#allocation2 + $0x9c] sm:$0xf] %v1027_v53 }
  0xca   : > { %v8673_v7 = vld [vmem:[#allocation2 + $0x94] sm:$0xf]  ;;  %v1106_v50 = vld [vmem:[#allocation2 + $0x98] sm:$0x1]  ;;  %v1031_v3 = vsel %vm8011_vm5, %v840_v15, %v1030_v11  ;;  %7368 = vmatprep.mubr.msk.bf16.mxu0 %vm1578_vm10, %v6518_v21  ;;  %v3828_v30 = vsel %vm8448_vm15, %v6495_v46, %v3827_v47  ;;  %v6857_v8 = vunpack.c.h.bf16 %v8642_v10  ;;  %v1402_v25 = vshrl.u32 %v8671_v14, 16 }
  0xcb   : > { %v1405_v58 = vshll.u32 %v8671_v14, 16  ;;  %v1411_v6 = vshll.u32 %v8673_v7, 16  ;;  %v1415_v45 = vshrl.u32 %v8673_v7, 16  ;;  %1029 = vst.msk [vmem:[#allocation2 + $0xa0] sm:$0xf] %vm411_vm0, %v839_v2  ;;  %v1421_v31 = vshll.u32 %v1106_v50, 16 }
  0xcc   : > { %1032 = vst [vmem:[#allocation2 + $0xa4] sm:$0x1] %v1031_v3  ;;  %v3831_v35 = vsel %vm8448_vm15, %v3829_v60, %v3830_v18  ;;  %v405_v62 = vmax.f32 %v373_v44, 0.0  ;;  %v406_v54 = vmax.f32 %v374_v12, 0.0  ;;  %v1404_v10 = vrot.slane %v1402_v25, 4 }
  0xcd   : > { %v1407_v61 = vrot.slane %v1405_v58, 5  ;;  %v1413_v28 = vrot.slane %v1411_v6, 5  ;;  %v1417_v13 = vrot.slane %v1415_v45, 4  ;;  %v6519_v38 = vcombine.low %v3828_v30, %v3831_v35  ;;  %v3732_v3 = vld [vmem:[#allocation2 + $0x54] sm:$0xe] }
  0xce   : > { %v464_v32 = vsel %vm8011_vm5, 0, %v463_v1  ;;  %v514_v55 = vsel %vm8023_vm7, 0, %v513_v51  ;;  %v336_v39 = vmul.f32 %v8395_v49, %v6856_v27  ;;  %v1423_v23 = vrot.slane %v1421_v31, 5 }
  0xcf   : > { %v1408_v59 = vor.u32 %v1407_v61, %v1404_v10  ;;  %v1418_v34 = vor.u32 %v1417_v13, %v1413_v28  ;;  %465 = vst [vmem:[#allocation2 + $0xa8] sm:$0x1] %v464_v32  ;;  %515 = vst [vmem:[#allocation2 + $0xb0] sm:$0x1] %v514_v55  ;;  %v6760_v4 = vpack.c.bf16 %v405_v62, %v405_v62  ;;  %7369 = vmatmul.mubr.msk.bf16.gmra.mrb[8].mxu0 %vm1578_vm10, %v6519_v38 }
  0xd0   : > { %v6761_v42 = vpack.c.bf16 %v406_v54, %v406_v54  ;;  %v337_v63 = vmul.f32 %v8395_v49, %v6857_v8  ;;  %v467_v46 = vsel %vm8011_vm5, 0, %v466_v36  ;;  %v517_v47 = vsel %vm8023_vm7, 0, %v516_v20  ;;  %v8701_v27 = vld [vmem:[#allocation2 + $0x9c] sm:$0xf] }
  0xd1   : > { %v1409_v52 = vrot.slane %v1408_v59, 4  ;;  %v1419_v24 = vrot.slane %v1418_v34, 4  ;;  %v842_v5 = vshrl.u32 %v6760_v4, 16  ;;  %v845_v11 = vshll.u32 %v6760_v4, 16  ;;  %468 = vst [vmem:[#allocation2 + $0xb4] sm:$0x1] %v467_v46 }
  0xd2   : > { %518 = vst [vmem:[#allocation2 + $0xbc] sm:$0x1] %v517_v47  ;;  %v8703_v9 = vld [vmem:[#allocation2 + $0xa0] sm:$0xf]  ;;  %v1426_v43 = vshrl.u32 %v8701_v27, 16  ;;  %v1429_v49 = vshll.u32 %v8701_v27, 16  ;;  %v375_v15 = vadd.f32 %v8415_v56, %v336_v39  ;;  %v376_v21 = vadd.f32 %v8415_v56, %v337_v63 }
  0xd3   : > { %v1107_v40 = vld [vmem:[#allocation2 + $0xa4] sm:$0x1]  ;;  %v1414_v18 = vsel %vm8042_vm8, %v1409_v52, %v1413_v28  ;;  %v1424_v53 = vsel %vm8042_vm8, %v1419_v24, %v1423_v23  ;;  %v1435_v60 = vshll.u32 %v8703_v9, 16  ;;  %v1439_v44 = vshrl.u32 %v8703_v9, 16  ;;  %v3733_v4 = vld [vmem:[#allocation2 + $0x60] sm:$0xe] }
  0xd4   : > { %v6282_v12 = vcombine.low %v1414_v18, %v1424_v53  ;;  %v1428_v1 = vrot.slane %v1426_v43, 4  ;;  %v1431_v50 = vrot.slane %v1429_v49, 5  ;;  %v1445_v2 = vshll.u32 %v1107_v40, 16  ;;  %v2997_v52 = vld [vmem:[#allocation2 + $0x70] sm:$0xf] }
  0xd5   : > { %v1437_v30 = vrot.slane %v1435_v60, 5  ;;  %v1441_v8 = vrot.slane %v1439_v44, 4  ;;  %v844_v25 = vrot.slane %v842_v5, 7  ;;  %v850_v58 = vshrl.u32 %v6761_v42, 16  ;;  %v3734_v40 = vld [vmem:[#allocation2 + $0x6c] sm:$0xe] }
  0xd6   : > { %7184 = vmatprep.mubr.msk.bf16.mxu1 %vm1578_vm10, %v6282_v12  ;;  %v1432_v56 = vor.u32 %v1431_v50, %v1428_v1  ;;  %v1447_v6 = vrot.slane %v1445_v2, 5  ;;  %v853_v45 = vshll.u32 %v6761_v42, 16  ;;  %v1033_v51 = vld [vmem:[#allocation2 + $0xa8] sm:$0xf]  ;;  %v1037_v10 = vld [vmem:[#allocation2 + $0xb0] sm:$0x1] }
  0xd7   : > { %v1442_v31 = vor.u32 %v1441_v8, %v1437_v30  ;;  %v847_v35 = vor.u32 %v845_v11, %v844_v25  ;;  %v848_v62 = vrot.slane %v844_v25, 4  ;;  %v852_v54 = vrot.slane %v850_v58, 7  ;;  %v2998_v60 = vld [vmem:[#allocation2 + $0x74] sm:$0x1] }
  0xd8   : > { %v1433_v36 = vrot.slane %v1432_v56, 4  ;;  %v407_v61 = vmax.f32 %v375_v15, 0.0  ;;  %v408_v28 = vmax.f32 %v376_v21, 0.0  ;;  %v6496_v13 = vrot.slane %v3732_v3, 9  ;;  %v1040_v44 = vld [vmem:[#allocation2 + $0xb4] sm:$0xf] }
  0xd9   : > { %v1443_v20 = vrot.slane %v1442_v31, 4  ;;  %v855_v38 = vor.u32 %v853_v45, %v852_v54  ;;  %v857_v32 = vrot.slane %v852_v54, 4  ;;  %v1034_v55 = vsel %vm8092_vm11, %v847_v35, %v1033_v51  ;;  %v1044_v58 = vld [vmem:[#allocation2 + $0xbc] sm:$0x1] }
  0xda   : > { %v1438_v39 = vsel %vm8042_vm8, %v1433_v36, %v1437_v30  ;;  %1035 = vst [vmem:[#allocation2 + $0xa8] sm:$0xf] %v1034_v55  ;;  %v6762_v59 = vpack.c.bf16 %v407_v61, %v407_v61  ;;  %v6763_v34 = vpack.c.bf16 %v408_v28, %v408_v28  ;;  %v3834_v23 = vrot.slane %v8427_v37, 5 }
  0xdb   : > { %v1448_v42 = vsel %vm8042_vm8, %v1443_v20, %v1447_v6  ;;  %v856_v63 = vsel %vm8099_vm12, %v848_v62, %v855_v38  ;;  %v1038_v46 = vsel %vm8011_vm5, %v857_v32, %v1037_v10  ;;  %v3837_v47 = vrot.slane %v8429_v17, 5  ;;  %v8756_v20 = vld [vmem:[#allocation2 + $0x7c] sm:$0xf] }
  0xdc   : > { %v6283_v24 = vcombine.low %v1438_v39, %v1448_v42  ;;  %1036 = vst.msk [vmem:[#allocation2 + $0xac] sm:$0xf] %vm411_vm0, %v856_v63  ;;  %1039 = vst [vmem:[#allocation2 + $0xb0] sm:$0x1] %v1038_v46  ;;  %v859_v5 = vshrl.u32 %v6762_v59, 16  ;;  %v862_v11 = vshll.u32 %v6762_v59, 16  ;;  %v3835_v53 = vsel %vm8448_vm15, %v6496_v13, %v3834_v23 }
  0xdd   : > { %v867_v37 = vshrl.u32 %v6763_v34, 16  ;;  %v870_v43 = vshll.u32 %v6763_v34, 16  ;;  %v3836_v49 = vrot.slane %v3834_v23, 4  ;;  %v6497_v15 = vrot.slane %v3733_v4, 9  ;;  %v3735_v59 = vld [vmem:[#allocation2 + $0x78] sm:$0xe] }
  0xde   : > { %7185 = vmatmul.mubr.msk.bf16.gmra.mrb[24].mxu1 %vm1578_vm10, %v6283_v24  ;;  %v861_v21 = vrot.slane %v859_v5, 7  ;;  %v3841_v17 = vrot.slane %v8486_v0, 5  ;;  %v3844_v1 = vrot.slane %v8499_v57, 5  ;;  %v6498_v50 = vrot.slane %v3734_v40, 9  ;;  %v8762_v42 = vld [vmem:[#allocation2 + $0x80] sm:$0x1] }
  0xdf   : > { %v869_v18 = vrot.slane %v867_v37, 7  ;;  %v3838_v12 = vsel %vm8448_vm15, %v3836_v49, %v3837_v47  ;;  %v3848_v2 = vrot.slane %v2997_v52, 5  ;;  %v3851_v51 = vrot.slane %v2998_v60, 5  ;;  %v3003_v60 = vld [vmem:[#allocation2 + $0x88] sm:$0xf] }
  0xe0   : > { %v864_v3 = vor.u32 %v862_v11, %v861_v21  ;;  %v865_v30 = vrot.slane %v861_v21, 4  ;;  %v6520_v6 = vcombine.low %v3835_v53, %v3838_v12  ;;  %v3842_v0 = vsel %vm8448_vm15, %v6497_v15, %v3841_v17  ;;  %v3736_v12 = vld [vmem:[#allocation2 + $0x84] sm:$0xe] }
  0xe1   : > { %v872_v8 = vor.u32 %v870_v43, %v869_v18  ;;  %v874_v25 = vrot.slane %v869_v18, 4  ;;  %v8736_v56 = vld [vmem:[#allocation2 + $0xa8] sm:$0xf]  ;;  %v3843_v45 = vrot.slane %v3841_v17, 4  ;;  %v3849_v28 = vsel %vm8448_vm15, %v6498_v50, %v3848_v2 }
  0xe2   : > { %v1450_v31 = vshrl.u32 %v8736_v56, 16  ;;  %v1453_v35 = vshll.u32 %v8736_v56, 16  ;;  %v1041_v62 = vsel %vm8092_vm11, %v864_v3, %v1040_v44  ;;  %7372 = vmatprep.mubr.msk.bf16.mxu0 %vm1578_vm10, %v6520_v6  ;;  %v3850_v13 = vrot.slane %v3848_v2, 4  ;;  %v3004_v44 = vld [vmem:[#allocation2 + $0x8c] sm:$0x1] }
  0xe3   : > { %v873_v57 = vsel %vm8099_vm12, %v865_v30, %v872_v8  ;;  %v8746_v54 = vld [vmem:[#allocation2 + $0xac] sm:$0xf]  ;;  %v1108_v36 = vld [vmem:[#allocation2 + $0xb0] sm:$0x1]  ;;  %1042 = vst [vmem:[#allocation2 + $0xb4] sm:$0xf] %v1041_v62  ;;  %v1045_v10 = vsel %vm8011_vm5, %v874_v25, %v1044_v58  ;;  %v3845_v61 = vsel %vm8448_vm15, %v3843_v45, %v3844_v1 }
  0xe4   : > { %1043 = vst.msk [vmem:[#allocation2 + $0xb8] sm:$0xf] %vm411_vm0, %v873_v57  ;;  %v1452_v38 = vrot.slane %v1450_v31, 4  ;;  %v1455_v32 = vrot.slane %v1453_v35, 5  ;;  %v1459_v55 = vshll.u32 %v8746_v54, 16  ;;  %v1463_v39 = vshrl.u32 %v8746_v54, 16 }
  0xe5   : > { %1046 = vst [vmem:[#allocation2 + $0xbc] sm:$0x1] %v1045_v10  ;;  %v1469_v34 = vshll.u32 %v1108_v36, 16  ;;  %v6521_v23 = vcombine.low %v3842_v0, %v3845_v61  ;;  %v3852_v4 = vsel %vm8448_vm15, %v3850_v13, %v3851_v51  ;;  %v6499_v5 = vrot.slane %v3735_v59, 9  ;;  %v3006_v6 = vld [vmem:[#allocation2 + $0x94] sm:$0xf] }
  0xe6   : > { %v1456_v63 = vor.u32 %v1455_v32, %v1452_v38  ;;  %v1461_v46 = vrot.slane %v1459_v55, 5  ;;  %v1465_v47 = vrot.slane %v1463_v39, 4  ;;  %v6522_v52 = vcombine.low %v3849_v28, %v3852_v4  ;;  %v3007_v0 = vld [vmem:[#allocation2 + $0x98] sm:$0x1]  ;;  %v3737_v57 = vld [vmem:[#allocation2 + $0x90] sm:$0xe] }
  0xe7   : > { %v1471_v24 = vrot.slane %v1469_v34, 5  ;;  %7373 = vmatmul.mubr.msk.bf16.gmra.mrb[12].mxu0 %vm1578_vm10, %v6521_v23  ;;  %v3855_v40 = vrot.slane %v8756_v20, 5  ;;  %v3858_v43 = vrot.slane %v8762_v42, 5  ;;  %v3009_v61 = vld [vmem:[#allocation2 + $0xa0] sm:$0xf]  ;;  %v6500_v13 = vrot.slane %v3736_v12, 9 }
  0xe8   : > { %v1457_v11 = vrot.slane %v1456_v63, 4  ;;  %v1466_v37 = vor.u32 %v1465_v47, %v1461_v46  ;;  %7376 = vmatprep.mubr.msk.bf16.mxu0 %vm1578_vm10, %v6522_v52  ;;  %v3862_v38 = vrot.slane %v3003_v60, 5  ;;  %v3865_v32 = vrot.slane %v3004_v44, 5  ;;  %v3738_v23 = vld [vmem:[#allocation2 + $0x9c] sm:$0xe] }
  0xe9   : > { %v3856_v53 = vsel %vm8448_vm15, %v6499_v5, %v3855_v40  ;;  %v3857_v17 = vrot.slane %v3855_v40, 4  ;;  %v6501_v39 = vrot.slane %v3737_v57, 9  ;;  %v3869_v59 = vrot.slane %v3006_v6, 5  ;;  %v3010_v47 = vld [vmem:[#allocation2 + $0xa4] sm:$0x1]  ;;  %v6956_v57 = vld [vmem:[%s8032_s16 + $0x78] sm:$0xff]  }
  0xea   : > { %v1462_v49 = vsel %vm8042_vm8, %v1457_v11, %v1461_v46  ;;  %v1467_v15 = vrot.slane %v1466_v37, 4  ;;  %v8770_v21 = vld [vmem:[#allocation2 + $0xb4] sm:$0xf]  ;;  %v3872_v34 = vrot.slane %v3007_v0, 5  ;;  %v3863_v63 = vsel %vm8448_vm15, %v6500_v13, %v3862_v38  ;;  %v8791_v5 = vld [vmem:[#allocation2 + $0x4] sm:$0xf] }
  0xeb   : > { %v8772_v18 = vld [vmem:[#allocation2 + $0xb8] sm:$0xf]  ;;  %v1474_v50 = vshrl.u32 %v8770_v21, 16  ;;  %v1477_v2 = vshll.u32 %v8770_v21, 16  ;;  %v3859_v58 = vsel %vm8448_vm15, %v3857_v17, %v3858_v43  ;;  %v3864_v46 = vrot.slane %v3862_v38, 4 }
  0xec   : > { %v8776_v1 = vld [vmem:[#allocation2 + $0xbc] sm:$0x1]  ;;  %v1483_v3 = vshll.u32 %v8772_v18, 16  ;;  %v1487_v30 = vshrl.u32 %v8772_v18, 16  ;;  %v1472_v8 = vsel %vm8042_vm8, %v1467_v15, %v1471_v24  ;;  %v6523_v10 = vcombine.low %v3856_v53, %v3859_v58  ;;  %v7861_v24 = vld [vmem:[#allocation2] sm:$0xf] }
  0xed   : > { %v1493_v25 = vshll.u32 %v8776_v1, 16  ;;  %v6284_v45 = vcombine.low %v1462_v49, %v1472_v8  ;;  %v1476_v51 = vrot.slane %v1474_v50, 4  ;;  %v1479_v31 = vrot.slane %v1477_v2, 5  ;;  %v3739_v43 = vld [vmem:[#allocation2 + $0xa8] sm:$0xe] }
  0xee   : > { %v1485_v35 = vrot.slane %v1483_v3, 5  ;;  %v1489_v62 = vrot.slane %v1487_v30, 4  ;;  %v6306_v11 = vcombine.low %v7861_v24, %v8791_v5  ;;  %v3870_v37 = vsel %vm8448_vm15, %v6501_v39, %v3869_v59  ;;  %v3012_v60 = vld [vmem:[#allocation2 + $0xac] sm:$0xf]  ;;  %v3013_v44 = vld [vmem:[#allocation2 + $0xb0] sm:$0x1] }
  0xef   : > { %v1495_v36 = vrot.slane %v1493_v25, 5  ;;  %7188 = vmatprep.mubr.msk.bf16.mxu1 %vm1578_vm10, %v6284_v45  ;;  %v1480_v28 = vor.u32 %v1479_v31, %v1476_v51  ;;  %7377 = vmatmul.mubr.msk.bf16.gmra.mrb[16].mxu0 %vm1578_vm10, %v6523_v10  ;;  %v3871_v40 = vrot.slane %v3869_v59, 4  ;;  %v3866_v15 = vsel %vm8448_vm15, %v3864_v46, %v3865_v32  ;;  %v3015_v30 = vld [vmem:[#allocation2 + $0xb8] sm:$0xf]  ;;  %v3740_v8 = vld [vmem:[#allocation2 + $0xb4] sm:$0xe] }
  0xf0   : > { %v1490_v55 = vor.u32 %v1489_v62, %v1485_v35  ;;  %v6502_v53 = vrot.slane %v3738_v23, 9  ;;  %v3876_v17 = vrot.slane %v3009_v61, 5  ;;  %v6524_v50 = vcombine.low %v3863_v63, %v3866_v15  ;;  %v3016_v45 = vld [vmem:[#allocation2 + $0xbc] sm:$0x1]  ;;  %v469_v61 = vld [vmem:[#allocation2 + $0xc0] sm:$0x1] }
  0xf1   : > { %v1481_v4 = vrot.slane %v1480_v28, 4  ;;  %v3873_v2 = vsel %vm8448_vm15, %v3871_v40, %v3872_v34  ;;  %v3879_v3 = vrot.slane %v3010_v47, 5  ;;  %v6503_v51 = vrot.slane %v3739_v43, 9  ;;  %v519_v28 = vld [vmem:[#allocation2 + $0xc8] sm:$0x1] }
  0xf2   : > { %v1491_v52 = vrot.slane %v1490_v55, 4  ;;  %v6525_v58 = vcombine.low %v3870_v37, %v3873_v2  ;;  %v3877_v6 = vsel %vm8448_vm15, %v6502_v53, %v3876_v17  ;;  %v3878_v0 = vrot.slane %v3876_v17, 4  ;;  %7380 = vmatprep.mubr.msk.bf16.mxu0 %vm1578_vm10, %v6524_v50  ;;  %v7863_v55 = vld [vmem:[#allocation2 + $0xc] sm:$0xf]  ;;  %v8813_v39 = vld [vmem:[#allocation2 + $0x10] sm:$0xf] }
  0xf3   : > { %v1486_v49 = vsel %vm8042_vm8, %v1481_v4, %v1485_v35  ;;  %v3883_v31 = vrot.slane %v3012_v60, 5  ;;  %v3886_v35 = vrot.slane %v3013_v44, 5  ;;  %v3890_v10 = vrot.slane %v3015_v30, 5  ;;  %v7865_v37 = vld [vmem:[%s9933_s1] ss:$0 sm:$0xff]  ;;  %v7805_v53 = vld [vmem:[%s9935_s3 + $0x48] sm:$0xff]  }
  0xf4   : > { %v1496_v12 = vsel %vm8042_vm8, %v1491_v52, %v1495_v36  ;;  %v3880_v62 = vsel %vm8448_vm15, %v3878_v0, %v3879_v3  ;;  %v6504_v36 = vrot.slane %v3740_v8, 9  ;;  %v3893_v32 = vrot.slane %v3016_v45, 5  ;;  %v8832_v15 = vld [vmem:[#allocation2 + $0x1c] sm:$0xf]  ;;  %v7868_v60 = vld [vmem:[%s9934_s2] ss:$0 sm:$0xff] }
  0xf5   : > { %v6285_v25 = vcombine.low %v1486_v49, %v1496_v12  ;;  %v6526_v13 = vcombine.low %v3877_v6, %v3880_v62  ;;  %v3885_v38 = vrot.slane %v3883_v31, 4  ;;  %v6307_v59 = vcombine.low %v7863_v55, %v8813_v39  ;;  %v7866_v49 = vld [vmem:[#allocation2 + $0x18] sm:$0xf]  ;;  %v7869_v30 = vld [vmem:[%s9935_s3 + $0x40] sm:$0xff]   ;;  %v8850_v6 = vld [vmem:[#allocation2 + $0x28] sm:$0xf] }
  0xf6   : > { %v3892_v34 = vrot.slane %v3890_v10, 4  ;;  %v6860_v23 = vunpack.c.l.bf16 %v6956_v57  ;;  %v6861_v4 = vunpack.c.h.bf16 %v6956_v57  ;;  %v3884_v63 = vsel %vm8448_vm15, %v6503_v51, %v3883_v31  ;;  %v7871_v0 = vld [vmem:[#allocation2 + $0x24] sm:$0xf]  ;;  %v7872_v62 = vld [vmem:[#allocation2 + $0x30] sm:$0xf] }
  0xf7   : > { %7189 = vmatmul.mubr.msk.bf16.gmra.mrb[28].mxu1 %vm1578_vm10, %v6285_v25  ;;  %7381 = vmatmul.mubr.msk.bf16.gmra.mrb[20].mxu0 %vm1578_vm10, %v6525_v58  ;;  %v3887_v46 = vsel %vm8448_vm15, %v3885_v38, %v3886_v35  ;;  %v470_v47 = vsel %vm8011_vm5, 0, %v469_v61  ;;  %v520_v52 = vsel %vm8023_vm7, 0, %v519_v28  ;;  %v3891_v24 = vsel %vm8448_vm15, %v6504_v36, %v3890_v10  ;;  %v7807_v58 = vld [vmem:[%s9935_s3 + $0x50] sm:$0xff]  }
  0xf8   : > { %7200 = vmatprep.mubr.msk.bf16.mxu1 %vm1578_vm10, %v6306_v11  ;;  %7384 = vmatprep.mubr.msk.bf16.mxu0 %vm1578_vm10, %v6526_v13  ;;  %v3894_v11 = vsel %vm8448_vm15, %v3892_v34, %v3893_v32  ;;  %v338_v40 = vmul.f32 %v7865_v37, %v6860_v23  ;;  %v339_v43 = vmul.f32 %v7865_v37, %v6861_v4  ;;  %v8854_v36 = vld [vmem:[#allocation2 + $0x34] sm:$0xf]  ;;  %v7813_v13 = vld [vmem:[%s9935_s3 + $0x58] sm:$0xff]   ;;  %v3246_v37 = vshll.u32 %v8756_v20, 16 }
  0xf9   : > { %471 = vst [vmem:[#allocation2 + $0xc0] sm:$0x1] %v470_v47  ;;  %521 = vst [vmem:[#allocation2 + $0xc8] sm:$0x1] %v520_v52  ;;  %v6308_v19 = vcombine.low %v7866_v49, %v8832_v15  ;;  %v6527_v17 = vcombine.low %v3884_v63, %v3887_v46  ;;  %v6528_v50 = vcombine.low %v3891_v24, %v3894_v11  ;;  %v8871_v47 = vld [vmem:[%s9935_s3 + $0x60] sm:$0xff]  }
  0xfa   : > { %v377_v44 = vadd.f32 %v7868_v60, %v338_v40  ;;  %v378_v12 = vadd.f32 %v7868_v60, %v339_v43  ;;  %v6309_v45 = vcombine.low %v7871_v0, %v8850_v6  ;;  %v6310_v10 = vcombine.low %v7872_v62, %v8854_v36  ;;  %v7874_v52 = vld [vmem:[#allocation2 + $0x3c] sm:$0xf]  ;;  %v8874_v24 = vld [vmem:[#allocation2 + $0x40] sm:$0xf]  ;;  %v8877_v11 = vld [vmem:[#allocation2 + $0x4c] sm:$0xf] }
  0xfb   : > { %v6311_v29 = vcombine.low %v7874_v52, %v8874_v24  ;;  %v6312_v16 = vcombine.low %v7876_v22, %v8877_v11  ;;  %v3250_v40 = vshrl.u32 %v8756_v20, 16 }
  0xfc   : > { %v409_v2 = vmax.f32 %v377_v44, 0.0  ;;  %v410_v3 = vmax.f32 %v378_v12, 0.0  ;;  %v7878_v44 = vld [vmem:[#allocation2 + $0x54] sm:$0xf]  ;;  %v8885_v12 = vld [vmem:[#allocation2 + $0x58] sm:$0xf] }
  0xfd   : > { %v3252_v0 = vrot.slane %v3250_v40, 4 }
  0xfe   : > { %v6764_v8 = vpack.c.bf16 %v409_v2, %v409_v2  ;;  %v6765_v25 = vpack.c.bf16 %v410_v3, %v410_v3 }
  0xff   : > { %7201 = vmatmul.mubr.msk.bf16.vlgmr.msra.gmra.mrb[0].mxu1 %vm1578_vm10, %v6307_v59  ;;  %7385 = vmatmul.mubr.msk.bf16.gmra.mrb[24].mxu0 %vm1578_vm10, %v6527_v17 }
 0x100   : > { %7233 = vmatpush3.bf16.msra.mxu1 %v7869_v30  ;;  %7204 = vmatprep.mubr.msk.bf16.mxu1 %vm1578_vm10, %v6308_v19  ;;  %v876_v51 = vshrl.u32 %v6764_v8, 16  ;;  %v879_v31 = vshll.u32 %v6764_v8, 16  ;;  %v884_v35 = vshrl.u32 %v6765_v25, 16  ;;  %v887_v57 = vshll.u32 %v6765_v25, 16  ;;  %v1047_v38 = vld [vmem:[#allocation2 + $0xc0] sm:$0xf] }
 0x101   : > { %7234 = vmatprep.subr.bf16.mxu1 %v7805_v53  ;;  %7388 = vmatprep.mubr.msk.bf16.mxu0 %vm1578_vm10, %v6528_v50  ;;  %v1051_v32 = vld [vmem:[#allocation2 + $0xc8] sm:$0x1]  ;;  %v6313_v50 = vcombine.low %v7878_v44, %v8885_v12  ;;  %v7880_v30 = vld [vmem:[#allocation2 + $0x60] sm:$0xf]  ;;  %v8890_v8 = vld [vmem:[#allocation2 + $0x64] sm:$0xf] }
 0x102   : > { %v878_v61 = vrot.slane %v876_v51, 7  ;;  %v886_v28 = vrot.slane %v884_v35, 7  ;;  %v6314_v20 = vcombine.low %v7880_v30, %v8890_v8  ;;  %v2161_v25 = vrot.slane %v8813_v39, 5  ;;  %v7808_v51 = vld [vmem:[#allocation2 + $0x18] sm:$0xff]   ;;  %v7883_v39 = vld [vmem:[#allocation2 + $0x14] sm:$0x1] }
 0x103   : > { %v2154_v35 = vrot.slane %v8791_v5, 5  ;;  %v7811_v44 = vld [vmem:[#allocation2 + $0x30] sm:$0xff]  }
 0x104   : > { %7235 = vmatpush3.bf16.msra.mxu1 %v7805_v53  ;;  %v881_v55 = vor.u32 %v879_v31, %v878_v61  ;;  %v882_v59 = vrot.slane %v878_v61, 4  ;;  %v889_v34 = vor.u32 %v887_v57, %v886_v28  ;;  %v891_v23 = vrot.slane %v886_v28, 4  ;;  %v2101_v31 = vld [vmem:[#allocation2] sm:$0xe]  ;;  %v2102_v57 = vld [vmem:[#allocation2 + $0xc] sm:$0xe] }
 0x105   : > { %7236 = vmatprep.subr.bf16.mxu1 %v7807_v58  ;;  %v2168_v61 = vrot.slane %v8832_v15, 5  ;;  %v7882_v28 = vld [vmem:[#allocation2 + $0x8] sm:$0x1]  ;;  %v6342_v5 = vrot.slane %v2101_v31, 9  ;;  %v7884_v15 = vld [vmem:[#allocation2 + $0x6c] sm:$0xf] }
 0x106   : > { %v890_v4 = vsel %vm8099_vm12, %v882_v59, %v889_v34  ;;  %v1048_v63 = vsel %vm8092_vm11, %v881_v55, %v1047_v38  ;;  %v1052_v46 = vsel %vm8011_vm5, %v891_v23, %v1051_v32  ;;  %v2164_v38 = vrot.slane %v7883_v39, 5  ;;  %v2105_v30 = vld [vmem:[#allocation2 + $0x30] sm:$0xe]  ;;  %v2106_v31 = vld [vmem:[#allocation2 + $0x3c] sm:$0xe] }
 0x107   : > { %7205 = vmatmul.mubr.msk.bf16.gmra.mrb[4].mxu1 %vm1578_vm10, %v6309_v45  ;;  %1049 = vst [vmem:[#allocation2 + $0xc0] sm:$0xf] %v1048_v63  ;;  %1050 = vst.msk [vmem:[#allocation2 + $0xc4] sm:$0xf] %vm411_vm0, %v890_v4  ;;  %v3256_v55 = vshll.u32 %v8762_v42, 16  ;;  %v2156_v59 = vrot.slane %v2154_v35, 4 }
 0x108   : > { %7208 = vmatprep.mubr.msk.bf16.mxu1 %vm1578_vm10, %v6310_v10  ;;  %7237 = vmatpush3.bf16.msra.mxu1 %v7807_v58  ;;  %1053 = vst [vmem:[#allocation2 + $0xc8] sm:$0x1] %v1052_v46  ;;  %v8894_v58 = vrot.slane %v3246_v37, 5  ;;  %v2103_v10 = vld [vmem:[#allocation2 + $0x18] sm:$0xe]  ;;  %v6343_v34 = vrot.slane %v2102_v57, 9  ;;  %v6318_v57 = vcombine.low %v8671_v14, %v8673_v7 }
 0x109   : > { %7238 = vmatprep.subr.bf16.mxu1 %v7813_v13  ;;  %v2163_v23 = vrot.slane %v2161_v25, 4  ;;  %v6344_v4 = vrot.slane %v2103_v10, 9  ;;  %v8906_v63 = vld [vmem:[#allocation2 + $0x70] sm:$0xf]  ;;  %v2170_v52 = vrot.slane %v2168_v61, 4  ;;  %v6320_v10 = vcombine.low %v8736_v56, %v8746_v54 }
 0x10a   : > { %9961 = vst [vmem:[#allocation3_spill] sm:$0xff] %v8894_v58  ;;  %v3253_v32 = vor.u32 %v3252_v0, %v8894_v58  ;;  %v6315_v46 = vcombine.low %v7884_v15, %v8906_v63  ;;  %v7887_v42 = vld [vmem:[#allocation2 + $0x78] sm:$0xf]  ;;  %v8910_v37 = vld [vmem:[#allocation2 + $0x7c] sm:$0xf]  ;;  %v2189_v15 = vrot.slane %v8874_v24, 5 }
 0x10b   : > { %v6316_v40 = vcombine.low %v7887_v42, %v8910_v37  ;;  %v7814_v24 = vld [vmem:[#allocation2 + $0x48] sm:$0xff]   ;;  %v7823_v7 = vld [vmem:[#allocation2 + $0x90] sm:$0xff]   ;;  %vm5969_vm0 = vcmask 1040384  }
 0x10c   : > { %7239 = vmatpush3.bf16.msra.mxu1 %v7813_v13  ;;  %v2157_v13 = vrot.slane %v7882_v28, 5  ;;  %v6321_v28 = vcombine.low %v8770_v21, %v8772_v18 }
 0x10d   : > { %7272 = vmatprep.subr.bf16.mxu1 %v8871_v47 }
 0x10e   : > { %v3018_v43 = vld [vmem:[#allocation2 + $0xc4] sm:$0xf]  ;;  %v3741_v19 = vld [vmem:[#allocation2 + $0xc0] sm:$0xe] }
 0x10f   : > { %7209 = vmatmul.mubr.msk.bf16.gmra.mrb[8].mxu1 %vm1578_vm10, %v6311_v29  ;;  %v3019_v49 = vld [vmem:[#allocation2 + $0xc8] sm:$0x1]  ;;  %v6505_v53 = vrot.slane %v3741_v19, 9  ;;  %v3897_v17 = vrot.slane %v3018_v43, 5  ;;  %v7886_v29 = vld [vmem:[#allocation2 + $0x20] sm:$0x1] }
 0x110   : > { %7212 = vmatprep.mubr.msk.bf16.mxu1 %vm1578_vm10, %v6312_v16  ;;  %v3900_v60 = vrot.slane %v3019_v49, 5  ;;  %v2171_v22 = vrot.slane %v7886_v29, 5  ;;  %v2175_v16 = vrot.slane %v8850_v6, 5  ;;  %v2104_v43 = vld [vmem:[#allocation2 + $0x24] sm:$0xe]  ;;  %v8913_v49 = vrot.slane %v3253_v32, 4 }
 0x111   : > { %v3898_v2 = vsel %vm8448_vm15, %v6505_v53, %v3897_v17  ;;  %v3899_v3 = vrot.slane %v3897_v17, 4  ;;  %v8915_v19 = vrot.slane %v3256_v55, 5  ;;  %v7810_v53 = vld [vmem:[#allocation2 + $0x24] sm:$0xff]   ;;  %v8919_v17 = vsel %vm8448_vm15, %v6342_v5, %v2154_v35  ;;  %v7816_v55 = vld [vmem:[#allocation2 + $0x54] sm:$0xff]  }
 0x112   : > { %9962 = vst [vmem:[#allocation4_spill] sm:$0xff] %v8913_v49  ;;  %v8924_v6 = vsel %vm8448_vm15, %v2156_v59, %v2157_v13  ;;  %v2177_v0 = vrot.slane %v2175_v16, 4  ;;  %v6317_v35 = vcombine.low %v8629_v41, %v8631_v48  ;;  %v6346_v13 = vrot.slane %v2105_v30, 9  ;;  %v4612_v41 = vld [vmem:[#allocation2 + $0x1c] sm:$0xf]  ;;  %v7891_v48 = vld [vmem:[%s9935_s3 + $0xe0] sm:$0xff]  }
 0x113   : > { %v3901_v45 = vsel %vm8448_vm15, %v3899_v3, %v3900_v60  ;;  %9963 = vst [vmem:[#allocation5_spill] sm:$0xff] %v8915_v19  ;;  %v2182_v60 = vrot.slane %v8854_v36, 5  ;;  %v8936_v3 = vsel %vm8448_vm15, %v6344_v4, %v2168_v61  ;;  %v7815_v36 = vld [vmem:[%s9935_s3 + $0xe8] sm:$0xff]   ;;  %v4611_v61 = vld [vmem:[#allocation2 + $0x18] sm:$0xf]  ;;  %v6366_v14 = vcombine.low %v8919_v17, %v8924_v6 }
 0x114   : > { %v6529_v62 = vcombine.low %v3898_v2, %v3901_v45  ;;  %v8932_v2 = vsel %vm8448_vm15, %v2163_v23, %v2164_v38  ;;  %v7889_v45 = vld [vmem:[#allocation2 + $0x2c] sm:$0x1]  ;;  %v7890_v38 = vld [vmem:[#allocation2 + $0x38] sm:$0x1]  ;;  %v6347_v5 = vrot.slane %v2106_v31, 9  ;;  %v4660_v29 = vshrl.u32 %v4611_v61, 16 }
 0x115   : > { %v2184_v39 = vrot.slane %v2182_v60, 4  ;;  %v2185_v32 = vrot.slane %v7890_v38, 5  ;;  %v2107_v59 = vld [vmem:[#allocation2 + $0x48] sm:$0xe]  ;;  %v4669_v42 = vshll.u32 %v4612_v41, 16  ;;  %v2203_v30 = vrot.slane %v8885_v12, 5 }
 0x116   : > { %7389 = vmatmul.mubr.msk.bf16.gmra.mrb[28].mxu0 %vm1578_vm10, %v6529_v62  ;;  %v6319_v62 = vcombine.low %v8701_v27, %v8703_v9  ;;  %v2210_v31 = vrot.slane %v8890_v8, 5  ;;  %v2191_v12 = vrot.slane %v2189_v15, 4  ;;  %v4614_v38 = vld [vmem:[#allocation2 + $0x24] sm:$0xf]  ;;  %v4626_v17 = vld [vmem:[#allocation2 + $0x54] sm:$0xf] }
 0x117   : > { %7213 = vmatmul.mubr.msk.bf16.gmra.mrb[12].mxu1 %vm1578_vm10, %v6313_v50  ;;  %7400 = vmatprep.mubr.msk.bf16.mxu0 %vm1578_vm10, %v7808_v51  ;;  %v8928_v50 = vsel %vm8448_vm15, %v6343_v34, %v2161_v25  ;;  %v6345_v25 = vrot.slane %v2104_v43, 9  ;;  %v2178_v51 = vrot.slane %v7889_v45, 5  ;;  %v7821_v34 = vld [vmem:[%s9935_s3 + $0xf0] sm:$0xff]   ;;  %v7812_v43 = vld [vmem:[#allocation2 + $0x3c] sm:$0xff]   ;;  %v7826_v19 = vld [vmem:[#allocation2 + $0xa8] sm:$0xff]  }
 0x118   : > { %7216 = vmatprep.mubr.msk.bf16.mxu1 %vm1578_vm10, %v6314_v20  ;;  %v8944_v20 = vsel %vm8448_vm15, %v2170_v52, %v2171_v22  ;;  %v2108_v52 = vld [vmem:[#allocation2 + $0x54] sm:$0xe]  ;;  %v4663_v22 = vshll.u32 %v4611_v61, 16  ;;  %v7893_v61 = vld [vmem:[#allocation2 + $0x50] sm:$0x1] }
 0x119   : > { %v8973_v23 = vsel %vm8448_vm15, %v6345_v25, %v2175_v16  ;;  %v8977_v4 = vsel %vm8448_vm15, %v2177_v0, %v2178_v51  ;;  %v8987_v16 = vsel %vm8448_vm15, %v2184_v39, %v2185_v32  ;;  %v8994_v25 = vsel %vm8448_vm15, %v6347_v5, %v2189_v15  ;;  %v7892_v0 = vld [vmem:[#allocation2 + $0x44] sm:$0x1]  ;;  %v2109_v51 = vld [vmem:[#allocation2 + $0x60] sm:$0xe]  ;;  %v7894_v15 = vld [vmem:[#allocation2 + $0x5c] sm:$0x1] }
 0x11a   : > { %v2192_v45 = vrot.slane %v7892_v0, 5  ;;  %v6349_v39 = vrot.slane %v2108_v52, 9  ;;  %v4662_v32 = vrot.slane %v4660_v29, 4  ;;  %v2206_v0 = vrot.slane %v7894_v15, 5  ;;  %v4613_v52 = vld [vmem:[#allocation2 + $0x20] sm:$0x1] }
 0x11b   : > { %v7895_v29 = vld [vmem:[#allocation2 + $0x68] sm:$0x1] }
 0x11e   : > { %7401 = vmatmul.mubr.msk.bf16.vlgmr.msra.gmra.mrb[0].mxu0 %vm1578_vm10, %v7810_v53  ;;  %v8983_v53 = vsel %vm8448_vm15, %v6346_v13, %v2182_v60  ;;  %v7827_v60 = vld [vmem:[%s9935_s3 + $0xf8] sm:$0xff]   ;;  %v2199_v13 = vrot.slane %v7893_v61, 5  ;;  %v6350_v61 = vrot.slane %v2109_v51, 9 }
 0x11f   : > { %7217 = vmatmul.mubr.msk.bf16.gmra.mrb[16].mxu1 %vm1578_vm10, %v6315_v46  ;;  %7433 = vmatpush3.bf16.msra.mxu0 %v7891_v48  ;;  %v2196_v46 = vrot.slane %v8877_v11, 5  ;;  %v9002_v48 = vrot.slane %v4669_v42, 5  ;;  %v2110_v42 = vld [vmem:[#allocation2 + $0x6c] sm:$0xe]  ;;  %v4684_v11 = vshrl.u32 %v4614_v38, 16 }
 0x120   : > { %7220 = vmatprep.mubr.msk.bf16.mxu1 %vm1578_vm10, %v6316_v40  ;;  %7404 = vmatprep.mubr.msk.bf16.mxu0 %vm1578_vm10, %v7811_v44  ;;  %v4673_v40 = vshrl.u32 %v4612_v41, 16  ;;  %v6348_v44 = vrot.slane %v2107_v59, 9  ;;  %v4665_v41 = vrot.slane %v4663_v22, 5  ;;  %v4615_v59 = vld [vmem:[#allocation2 + $0x28] sm:$0xf]  ;;  %v2213_v22 = vrot.slane %v7895_v29, 5 }
 0x121   : > { %7434 = vmatprep.subr.bf16.mxu0 %v7815_v36  ;;  %v4679_v29 = vshll.u32 %v4613_v52, 16  ;;  %v7899_v52 = vld [vmem:[#allocation2 + $0x8c] sm:$0x1] }
 0x122   : > { %v4675_v5 = vrot.slane %v4673_v40, 4  ;;  %v9007_v8 = vsel %vm8448_vm15, %v6348_v44, %v2196_v46  ;;  %v2217_v40 = vrot.slane %v8906_v63, 5  ;;  %v4687_v44 = vshll.u32 %v4614_v38, 16 }
 0x123   : > { %7435 = vmatpush3.bf16.msra.mxu0 %v7815_v36  ;;  %v2198_v36 = vrot.slane %v2196_v46, 4  ;;  %v9018_v46 = vld [vmem:[%s9935_s3 + $0x100] sm:$0xff]   ;;  %v4666_v15 = vor.u32 %v4665_v41, %v4662_v32  ;;  %v9035_v38 = vsel %vm8448_vm15, %v6350_v61, %v2210_v31  ;;  %v7896_v41 = vld [vmem:[#allocation2 + $0x74] sm:$0x1]  ;;  %v2224_v61 = vrot.slane %v8910_v37, 5  ;;  %v7820_v37 = vld [vmem:[#allocation2 + $0x78] sm:$0xff]  }
 0x124   : > { %7436 = vmatprep.subr.bf16.mxu0 %v7821_v34  ;;  %v4676_v63 = vor.u32 %v4675_v5, %v9002_v48  ;;  %v2219_v32 = vrot.slane %v2217_v40, 4  ;;  %v2220_v5 = vrot.slane %v7896_v41, 5 }
 0x125   : > { %v9022_v51 = vsel %vm8448_vm15, %v2198_v36, %v2199_v13  ;;  %v7817_v36 = vld [vmem:[#allocation2 + $0x60] sm:$0xff]   ;;  %v4667_v27 = vrot.slane %v4666_v15, 4 }
 0x126   : > { %7405 = vmatmul.mubr.msk.bf16.gmra.mrb[4].mxu0 %vm1578_vm10, %v7812_v43  ;;  %v9013_v43 = vsel %vm8448_vm15, %v2191_v12, %v2192_v45  ;;  %v9027_v45 = vsel %vm8448_vm15, %v6349_v39, %v2203_v30  ;;  %v4686_v39 = vrot.slane %v4684_v11, 4  ;;  %v4677_v9 = vrot.slane %v4676_v63, 4  ;;  %v7822_v11 = vld [vmem:[#allocation2 + $0x84] sm:$0xff]  }
 0x127   : > { %7221 = vmatmul.mubr.msk.bf16.gmra.mrb[20].mxu1 %vm1578_vm10, %v6317_v35  ;;  %v2205_v35 = vrot.slane %v2203_v30, 4  ;;  %7408 = vmatprep.mubr.msk.bf16.mxu0 %vm1578_vm10, %v7814_v24  ;;  %v4693_v24 = vshll.u32 %v4615_v59, 16  ;;  %v4616_v30 = vld [vmem:[#allocation2 + $0x2c] sm:$0x1]  ;;  %v2226_v63 = vrot.slane %v2224_v61, 4 }
 0x128   : > { %7224 = vmatprep.mubr.msk.bf16.mxu1 %vm1578_vm10, %v6318_v57  ;;  %7437 = vmatpush3.bf16.msra.mxu0 %v7821_v34  ;;  %v2212_v57 = vrot.slane %v2210_v31, 4  ;;  %v4697_v34 = vshrl.u32 %v4615_v59, 16  ;;  %v6351_v59 = vrot.slane %v2110_v42, 9  ;;  %v4689_v31 = vrot.slane %v4687_v44, 5 }
 0x129   : > { %7438 = vmatprep.subr.bf16.mxu0 %v7827_v60  ;;  %v9031_v12 = vsel %vm8448_vm15, %v2205_v35, %v2206_v0  ;;  %v9046_v35 = vrot.slane %v4693_v24, 5  ;;  %v2111_v0 = vld [vmem:[#allocation2 + $0x78] sm:$0xe]  ;;  %v4703_v56 = vshll.u32 %v4616_v30, 16  ;;  %v4618_v24 = vld [vmem:[#allocation2 + $0x34] sm:$0xf]  ;;  %v4672_v30 = vsel %vm8042_vm8, %v4667_v27, %v9002_v48 }
 0x12a   : > { %v9039_v13 = vsel %vm8448_vm15, %v2212_v57, %v2213_v22  ;;  %v4617_v22 = vld [vmem:[#allocation2 + $0x30] sm:$0xf]  ;;  %v9067_v42 = vsel %vm8448_vm15, %v6351_v59, %v2217_v40  ;;  %v6352_v44 = vrot.slane %v2111_v0, 9  ;;  %v4620_v0 = vld [vmem:[#allocation2 + $0x3c] sm:$0xf] }
 0x12b   : > { %v4708_v59 = vshrl.u32 %v4617_v22, 16  ;;  %v7898_v48 = vld [vmem:[#allocation2 + $0x88] sm:$0xf]  ;;  %v4735_v21 = vshll.u32 %v4620_v0, 16 }
 0x12c   : > { %7439 = vmatpush3.bf16.msra.mxu0 %v7827_v60  ;;  %v4699_v60 = vrot.slane %v4697_v34, 4  ;;  %v4690_v34 = vor.u32 %v4689_v31, %v4686_v39  ;;  %v4705_v39 = vrot.slane %v4703_v56, 5  ;;  %v4717_v31 = vshll.u32 %v4618_v24, 16 }
 0x12d   : > { %7472 = vmatprep.subr.bf16.mxu0 %v9018_v46  ;;  %v2231_v27 = vrot.slane %v7898_v48, 5  ;;  %v9099_v48 = vld [vmem:[#allocation2 + $0x4c] sm:$0xf] }
 0x12e   : > { %7409 = vmatmul.mubr.msk.bf16.gmra.mrb[8].mxu0 %vm1578_vm10, %v7816_v55  ;;  %v9071_v55 = vsel %vm8448_vm15, %v2219_v32, %v2220_v5  ;;  %v4700_v15 = vor.u32 %v4699_v60, %v9046_v35  ;;  %v7818_v32 = vld [vmem:[#allocation2 + $0x6c] sm:$0xff]   ;;  %v4721_v60 = vshrl.u32 %v4618_v24, 16  ;;  %9964 = vst [vmem:[#allocation6_spill] sm:$0xff] %v9099_v48 }
 0x12f   : > { %7225 = vmatmul.mubr.msk.bf16.gmra.mrb[24].mxu1 %vm1578_vm10, %v6319_v62  ;;  %v4681_v62 = vrot.slane %v4679_v29, 5  ;;  %7412 = vmatprep.mubr.msk.bf16.mxu0 %vm1578_vm10, %v7817_v36  ;;  %v7897_v29 = vld [vmem:[#allocation2 + $0x80] sm:$0x1]  ;;  %v2112_v36 = vld [vmem:[#allocation2 + $0x84] sm:$0xe]  ;;  %v2233_v6 = vrot.slane %v2231_v27, 4 }
 0x130   : > { %7228 = vmatprep.mubr.msk.bf16.mxu1 %vm1578_vm10, %v6320_v10  ;;  %v2227_v41 = vrot.slane %v7897_v29, 5  ;;  %v4711_v10 = vshll.u32 %v4617_v22, 16  ;;  %v9083_v29 = vsel %vm8448_vm15, %v6352_v44, %v2224_v61  ;;  %v6353_v57 = vrot.slane %v2112_v36, 9  ;;  %v4623_v61 = vld [vmem:[#allocation2 + $0x48] sm:$0xf] }
 0x131   : > { %v4682_v40 = vsel %vm8042_vm8, %v4677_v9, %v4681_v62  ;;  %v2234_v9 = vrot.slane %v7899_v52, 5  ;;  %v4621_v62 = vld [vmem:[#allocation2 + $0x40] sm:$0xf]  ;;  %v4691_v22 = vrot.slane %v4690_v34, 4  ;;  %v4701_v24 = vrot.slane %v4700_v15, 4 }
 0x132   : > { %v9089_v56 = vcombine.low %v4672_v30, %v4682_v40  ;;  %v9093_v5 = vsel %vm8448_vm15, %v2226_v63, %v2227_v41  ;;  %v4710_v52 = vrot.slane %v4708_v59, 4  ;;  %v4713_v44 = vrot.slane %v4711_v10, 5 }
 0x133   : > { %v4732_v36 = vshrl.u32 %v4620_v0, 16  ;;  %v9104_v34 = vrot.slane %v4717_v31, 5  ;;  %v4723_v15 = vrot.slane %v4721_v60, 4  ;;  %v4741_v63 = vshll.u32 %v4621_v62, 16 }
 0x134   : > { %v4745_v41 = vshrl.u32 %v4621_v62, 16  ;;  %v4756_v10 = vshrl.u32 %v4623_v61, 16  ;;  %v4759_v30 = vshll.u32 %v4623_v61, 16  ;;  %v4696_v40 = vsel %vm8042_vm8, %v4691_v22, %v9046_v35  ;;  %v7825_v61 = vld [vmem:[%s9935_s3 + $0x68] sm:$0xff]  }
 0x135   : > { %v4706_v59 = vsel %vm8042_vm8, %v4701_v24, %v4705_v39  ;;  %v4769_v31 = vshrl.u32 %v9099_v48, 16  ;;  %v4714_v60 = vor.u32 %v4713_v44, %v4710_v52  ;;  %v4734_v0 = vrot.slane %v4732_v36, 4  ;;  %v9129_v44 = vld [vmem:[#allocation2 + $0x50] sm:$0x1] }
 0x136   : > { %7413 = vmatmul.mubr.msk.bf16.gmra.mrb[12].mxu0 %vm1578_vm10, %v7818_v32  ;;  %v4765_v32 = vshll.u32 %v9099_v48, 16  ;;  %v4737_v62 = vrot.slane %v4735_v21, 5  ;;  %v4724_v35 = vor.u32 %v4723_v15, %v9104_v34  ;;  %v9121_v22 = vrot.slane %v4741_v63, 5  ;;  %9966 = vst [vmem:[#allocation8_spill] sm:$0xff] %v9129_v44 }
 0x137   : > { %7229 = vmatmul.mubr.msk.bf16.gmra.mrb[28].mxu1 %vm1578_vm10, %v6321_v28  ;;  %v9102_v28 = vld [vmem:[#allocation2 + $0x38] sm:$0x1]  ;;  %7416 = vmatprep.mubr.msk.bf16.mxu0 %vm1578_vm10, %v7820_v37  ;;  %v4747_v39 = vrot.slane %v4745_v41, 4  ;;  %v9123_v58 = vcombine.low %v4696_v40, %v4706_v59  ;;  %v9127_v52 = vsel %vm8448_vm15, %v6353_v57, %v2231_v27  ;;  %v4758_v36 = vrot.slane %v4756_v10, 4  ;;  %v2113_v10 = vld [vmem:[#allocation2 + $0x90] sm:$0xe] }
 0x138   : > { %7240 = vmatprep.mubr.msk.bf16.mxu1 %vm1578_vm10, %v6366_v14  ;;  %9965 = vst [vmem:[#allocation7_spill] sm:$0xff] %v9102_v28  ;;  %v4622_v14 = vld [vmem:[#allocation2 + $0x44] sm:$0x1]  ;;  %v4727_v37 = vshll.u32 %v9102_v28, 16  ;;  %v4761_v21 = vrot.slane %v4759_v30, 5  ;;  %v9967_v28 = vcombine.low %v8928_v50, %v8932_v2  ;;  %v9135_v15 = vrot.slane %v4765_v32, 5 }
 0x139   : > { %v4751_v24 = vshll.u32 %v4622_v14, 16  ;;  %v4771_v63 = vrot.slane %v4769_v31, 4  ;;  %v9137_v41 = vld [vmem:[#allocation2 + $0x58] sm:$0xf]  ;;  %v4780_v14 = vshrl.u32 %v4626_v17, 16  ;;  %v4783_v40 = vshll.u32 %v4626_v17, 16 }
 0x13a   : > { %9968 = vst [vmem:[#allocation9_spill] sm:$0xff] %v9137_v41  ;;  %v9969_v57 = vcombine.low %v8936_v3, %v8944_v20  ;;  %v9146_v27 = vsel %vm8448_vm15, %v2233_v6, %v2234_v9  ;;  %v9148_v50 = vrot.slane %v4714_v60, 4  ;;  %v9150_v2 = vrot.slane %v4727_v37, 5  ;;  %v7900_v9 = vld [vmem:[#allocation2 + $0x94] sm:$0xf] }
 0x13b   : > { %v9156_v3 = vrot.slane %v4724_v35, 4  ;;  %v4748_v20 = vor.u32 %v4747_v39, %v9121_v22  ;;  %v9159_v17 = vrot.slane %v4751_v24, 5  ;;  %v2238_v6 = vrot.slane %v7900_v9, 5  ;;  %v2114_v30 = vld [vmem:[#allocation2 + $0x9c] sm:$0xe] }
 0x13c   : > { %v7901_v59 = vld [vmem:[#allocation2 + $0xa0] sm:$0xf]  ;;  %v4789_v31 = vshll.u32 %v9137_v41, 16  ;;  %v4793_v60 = vshrl.u32 %v9137_v41, 16  ;;  %v4762_v37 = vor.u32 %v4761_v21, %v4758_v36  ;;  %v4785_v35 = vrot.slane %v4783_v40, 5 }
 0x13d   : > { %v2245_v32 = vrot.slane %v7901_v59, 5  ;;  %v7824_v39 = vld [vmem:[#allocation2 + $0x9c] sm:$0xff]   ;;  %v7902_v9 = vld [vmem:[#allocation2 + $0x98] sm:$0x1]  ;;  %v4720_v59 = vsel %vm8042_vm8, %v9148_v50, %v9104_v34  ;;  %v4730_v36 = vsel %vm8042_vm8, %v9156_v3, %v9150_v2  ;;  %v4749_v21 = vrot.slane %v4748_v20, 4 }
 0x13e   : > { %7417 = vmatmul.mubr.msk.bf16.gmra.mrb[16].mxu0 %vm1578_vm10, %v7822_v11  ;;  %v4775_v11 = vshll.u32 %v9129_v44, 16  ;;  %v2241_v49 = vrot.slane %v7902_v9, 5  ;;  %v4795_v9 = vrot.slane %v4793_v60, 4  ;;  %v2115_v34 = vld [vmem:[#allocation2 + $0xa8] sm:$0xe]  ;;  %v9970_v50 = vcombine.low %v8973_v23, %v8977_v4 }
 0x13f   : > { %7241 = vmatmul.mubr.msk.bf16.vlgmr.msra.gmra.mrb[0].mxu1 %vm1578_vm10, %v9967_v28  ;;  %v4738_v28 = vor.u32 %v4737_v62, %v4734_v0  ;;  %7420 = vmatprep.mubr.msk.bf16.mxu0 %vm1578_vm10, %v7823_v7  ;;  %v4772_v0 = vor.u32 %v4771_v63, %v9135_v15  ;;  %v4782_v62 = vrot.slane %v4780_v14, 4  ;;  %v6355_v7 = vrot.slane %v2114_v30, 9  ;;  %v9177_v14 = vld [vmem:[#allocation2 + $0x5c] sm:$0x1]  ;;  %v2116_v44 = vld [vmem:[#allocation2 + $0xb4] sm:$0xe] }
 0x140   : > { %7273 = vmatpush3.bf16.msra.mxu1 %v8871_v47  ;;  %7244 = vmatprep.mubr.msk.bf16.mxu1 %vm1578_vm10, %v9969_v57  ;;  %v7831_v47 = vld [vmem:[%s9935_s3 + $0x70] sm:$0xff]   ;;  %v6354_v57 = vrot.slane %v2113_v10, 9  ;;  %v2240_v63 = vrot.slane %v2238_v6, 4  ;;  %v2247_v40 = vrot.slane %v2245_v32, 4  ;;  %v9179_v30 = vrot.slane %v4789_v31, 5 }
 0x141   : > { %7274 = vmatprep.subr.bf16.mxu1 %v7825_v61  ;;  %v4739_v24 = vrot.slane %v4738_v28, 4  ;;  %v7903_v28 = vld [vmem:[#allocation2 + $0xa4] sm:$0x1]  ;;  %v4763_v2 = vrot.slane %v4762_v37, 4  ;;  %v4773_v3 = vrot.slane %v4772_v0, 4  ;;  %v4777_v20 = vrot.slane %v4775_v11, 5 }
 0x142   : > { %v2248_v10 = vrot.slane %v7903_v28, 5  ;;  %v4786_v41 = vor.u32 %v4785_v35, %v4782_v62  ;;  %v9971_v48 = vcombine.low %v8983_v53, %v8987_v16  ;;  %v9194_v23 = vsel %vm8448_vm15, %v6354_v57, %v2238_v6  ;;  %v4629_v35 = vld [vmem:[#allocation2 + $0x60] sm:$0xf]  ;;  %v9298_v0 = vld [vmem:[#allocation2 + $0x88] sm:$0xf] }
 0x143   : > { %v4744_v31 = vsel %vm8042_vm8, %v4739_v24, %v9121_v22  ;;  %v9198_v4 = vsel %vm8448_vm15, %v6355_v7, %v2245_v32  ;;  %v2252_v11 = vrot.slane %v8746_v54, 5  ;;  %v4754_v53 = vsel %vm8042_vm8, %v4749_v21, %v9159_v17  ;;  %v7828_v24 = vld [vmem:[#allocation2 + $0xb4] sm:$0xff]   ;;  %v9247_v21 = vld [vmem:[%s9935_s3 + $0x80] sm:$0xff]   ;;  %9978 = vst [vmem:[#allocation14_spill] sm:$0xff] %v9298_v0 }
 0x144   : > { %7275 = vmatpush3.bf16.msra.mxu1 %v7825_v61  ;;  %v7833_v61 = vld [vmem:[%s9935_s3 + $0x78] sm:$0xff]   ;;  %v9207_v16 = vsel %vm8448_vm15, %v2240_v63, %v2241_v49  ;;  %v6356_v22 = vrot.slane %v2115_v34, 9  ;;  %v4796_v54 = vor.u32 %v4795_v9, %v9179_v30  ;;  %v6357_v6 = vrot.slane %v2116_v44, 9  ;;  %9973 = vst [vmem:[#allocation11_spill] sm:$0xff] %v9247_v21  ;;  %v7829_v63 = vld [vmem:[#allocation2 + $0xc0] sm:$0xff]  }
 0x145   : > { %7276 = vmatprep.subr.bf16.mxu1 %v7831_v47  ;;  %v2259_v32 = vrot.slane %v8772_v18, 5  ;;  %v4768_v49 = vsel %vm8042_vm8, %v4763_v2, %v9135_v15  ;;  %v4778_v60 = vsel %vm8042_vm8, %v4773_v3, %v4777_v20  ;;  %v9226_v37 = vcombine.low %v4720_v59, %v4730_v36  ;;  %v7904_v18 = vld [vmem:[#allocation2 + $0xb0] sm:$0x1]  ;;  %v4632_v59 = vld [vmem:[#allocation2 + $0x6c] sm:$0xf] }
 0x146   : > { %7421 = vmatmul.mubr.msk.bf16.gmra.mrb[20].mxu0 %vm1578_vm10, %v7824_v39  ;;  %v2254_v44 = vrot.slane %v2252_v11, 4  ;;  %v2255_v62 = vrot.slane %v7904_v18, 5  ;;  %v9230_v39 = vld [vmem:[#allocation2 + $0x64] sm:$0xf]  ;;  %v9232_v57 = vcombine.low %v4744_v31, %v4754_v53  ;;  %v9240_v7 = vsel %vm8448_vm15, %v6356_v22, %v2252_v11  ;;  %v9242_v36 = vld [vmem:[#allocation2 + $0x70] sm:$0xf] }
 0x147   : > { %7245 = vmatmul.mubr.msk.bf16.gmra.mrb[4].mxu1 %vm1578_vm10, %v9970_v50  ;;  %7424 = vmatprep.mubr.msk.bf16.mxu0 %vm1578_vm10, %v7826_v19  ;;  %v9224_v19 = vrot.slane %v4786_v41, 4  ;;  %9972 = vst [vmem:[#allocation10_spill] sm:$0xff] %v9242_v36  ;;  %v9256_v28 = vsel %vm8448_vm15, %v6357_v6, %v2259_v32  ;;  %v4635_v9 = vld [vmem:[#allocation2 + $0x78] sm:$0xf]  ;;  %v9974_v34 = vcombine.low %v8994_v25, %v9013_v43  ;;  %v4804_v2 = vshrl.u32 %v4629_v35, 16 }
 0x148   : > { %7248 = vmatprep.mubr.msk.bf16.mxu1 %vm1578_vm10, %v9971_v48  ;;  %7277 = vmatpush3.bf16.msra.mxu1 %v7831_v47  ;;  %v4799_v48 = vshll.u32 %v9177_v14, 16  ;;  %v9213_v47 = vsel %vm8448_vm15, %v2247_v40, %v2248_v10  ;;  %v9252_v40 = vrot.slane %v4796_v54, 4  ;;  %v2261_v10 = vrot.slane %v2259_v32, 4  ;;  %v9267_v31 = vld [vmem:[#allocation2 + $0x7c] sm:$0xf] }
 0x149   : > { %7278 = vmatprep.subr.bf16.mxu1 %v7833_v61  ;;  %v4807_v3 = vshll.u32 %v4629_v35, 16  ;;  %v4813_v20 = vshll.u32 %v9230_v39, 16  ;;  %9975 = vst [vmem:[#allocation12_spill] sm:$0xff] %v9267_v31  ;;  %v9976_v11 = vcombine.low %v9007_v8, %v9022_v51  ;;  %v9275_v25 = vsel %vm8448_vm15, %v2254_v44, %v2255_v62  ;;  %v9279_v22 = vld [vmem:[#allocation2 + $0x68] sm:$0x1]  ;;  %v7830_v62 = vld [vmem:[#allocation2 + $0xcc] sm:$0xff]  }
 0x14a   : > { %v9236_v41 = vrot.slane %v4799_v48, 5  ;;  %v4817_v43 = vshrl.u32 %v9230_v39, 16  ;;  %v4828_v53 = vshrl.u32 %v4632_v59, 16  ;;  %v4831_v48 = vshll.u32 %v4632_v59, 16 }
 0x14b   : > { %v4837_v54 = vshll.u32 %v9242_v36, 16  ;;  %v4841_v6 = vshrl.u32 %v9242_v36, 16  ;;  %v4852_v32 = vshrl.u32 %v4635_v9, 16  ;;  %v4855_v8 = vshll.u32 %v4635_v9, 16  ;;  %v4638_v9 = vld [vmem:[#allocation2 + $0x84] sm:$0xf] }
 0x14c   : > { %7279 = vmatpush3.bf16.msra.mxu1 %v7833_v61  ;;  %v9250_v61 = vcombine.low %v4768_v49, %v4778_v60  ;;  %v2262_v49 = vrot.slane %v8776_v1, 5  ;;  %v9289_v60 = vld [vmem:[#allocation2 + $0x74] sm:$0x1]  ;;  %v4861_v44 = vshll.u32 %v9267_v31, 16  ;;  %v4865_v18 = vshrl.u32 %v9267_v31, 16 }
 0x14d   : > { %7512 = vmatprep.subr.bf16.mxu1 %v9247_v21  ;;  %9977 = vst [vmem:[#allocation13_spill] sm:$0xff] %v9289_v60  ;;  %v4809_v59 = vrot.slane %v4807_v3, 5  ;;  %v4830_v15 = vrot.slane %v4828_v53, 4  ;;  %v4833_v1 = vrot.slane %v4831_v48, 5  ;;  %v9300_v17 = vrot.slane %v4837_v54, 5 }
 0x14e   : > { %7425 = vmatmul.mubr.msk.bf16.gmra.mrb[24].mxu0 %vm1578_vm10, %v7828_v24  ;;  %v4806_v24 = vrot.slane %v4804_v2, 4  ;;  %v4843_v50 = vrot.slane %v4841_v6, 4  ;;  %v4854_v51 = vrot.slane %v4852_v32, 4  ;;  %v4857_v21 = vrot.slane %v4855_v8, 5  ;;  %v4641_v31 = vld [vmem:[#allocation2 + $0x90] sm:$0xf] }
 0x14f   : > { %7249 = vmatmul.mubr.msk.bf16.gmra.mrb[8].mxu1 %vm1578_vm10, %v9974_v34  ;;  %7428 = vmatprep.mubr.msk.bf16.mxu0 %vm1578_vm10, %v7829_v63  ;;  %v9295_v63 = vrot.slane %v4813_v20, 5  ;;  %v4819_v34 = vrot.slane %v4817_v43, 4  ;;  %v9302_v36 = vld [vmem:[#allocation2 + $0x80] sm:$0x1]  ;;  %v9304_v2 = vrot.slane %v4861_v44, 5  ;;  %v4867_v3 = vrot.slane %v4865_v18, 4 }
 0x150   : > { %7252 = vmatprep.mubr.msk.bf16.mxu1 %vm1578_vm10, %v9976_v11  ;;  %v4823_v11 = vshll.u32 %v9279_v22, 16  ;;  %9979 = vst [vmem:[#allocation15_spill] sm:$0xff] %v9302_v36  ;;  %v4876_v20 = vshrl.u32 %v4638_v9, 16  ;;  %v4879_v35 = vshll.u32 %v4638_v9, 16  ;;  %v9980_v43 = vcombine.low %v9027_v45, %v9031_v12 }
 0x151   : > { %v4810_v53 = vor.u32 %v4809_v59, %v4806_v24  ;;  %v4847_v48 = vshll.u32 %v9289_v60, 16  ;;  %v4885_v54 = vshll.u32 %v9298_v0, 16  ;;  %v4889_v6 = vshrl.u32 %v9298_v0, 16 }
 0x152   : > { %v9981_v32 = vcombine.low %v9035_v38, %v9039_v13  ;;  %v9319_v8 = vsel %vm8448_vm15, %v2261_v10, %v2262_v49  ;;  %v9321_v44 = vrot.slane %v4823_v11, 5  ;;  %v4900_v45 = vshrl.u32 %v4641_v31, 16  ;;  %v9327_v38 = vld [vmem:[#allocation2 + $0x94] sm:$0xf]  ;;  %v9332_v49 = vld [vmem:[#allocation2 + $0x8c] sm:$0x1] }
 0x153   : > { %v4903_v12 = vshll.u32 %v4641_v31, 16  ;;  %v4820_v18 = vor.u32 %v4819_v34, %v9295_v63  ;;  %v4834_v24 = vor.u32 %v4833_v1, %v4830_v15  ;;  %v4844_v59 = vor.u32 %v4843_v50, %v9300_v17  ;;  %v4644_v50 = vld [vmem:[#allocation2 + $0x9c] sm:$0xf] }
 0x154   : > { %v4871_v9 = vshll.u32 %v9302_v36, 16  ;;  %v4858_v13 = vor.u32 %v4857_v21, %v4854_v51  ;;  %v4868_v10 = vor.u32 %v4867_v3, %v9304_v2  ;;  %v4878_v31 = vrot.slane %v4876_v20, 4 }
 0x155   : > { %v4881_v11 = vrot.slane %v4879_v35, 5  ;;  %v9334_v34 = vrot.slane %v4885_v54, 5  ;;  %v4891_v15 = vrot.slane %v4889_v6, 4  ;;  %v4902_v1 = vrot.slane %v4900_v45, 4  ;;  %v7834_v35 = vld [vmem:[%s9935_s3 + $0x108] sm:$0xff]  }
 0x156   : > { %7429 = vmatmul.mubr.msk.bf16.gmra.mrb[28].mxu0 %vm1578_vm10, %v7830_v62  ;;  %v4811_v62 = vrot.slane %v4810_v53, 4  ;;  %v4909_v0 = vshll.u32 %v9327_v38, 16  ;;  %v4913_v36 = vshrl.u32 %v9327_v38, 16  ;;  %v4821_v21 = vrot.slane %v4820_v18, 4  ;;  %v9348_v45 = vld [vmem:[#allocation2 + $0x98] sm:$0x1] }
 0x157   : > { %7253 = vmatmul.mubr.msk.bf16.gmra.mrb[12].mxu1 %vm1578_vm10, %v9980_v43  ;;  %7440 = vmatprep.mubr.msk.bf16.mxu0 %vm1578_vm10, %v9089_v56  ;;  %v4849_v43 = vrot.slane %v4847_v48, 5  ;;  %v9338_v56 = vld [vmem:[#allocation2 + $0xa0] sm:$0xf]  ;;  %v4835_v51 = vrot.slane %v4834_v24, 4  ;;  %v4845_v3 = vrot.slane %v4844_v59, 4  ;;  %v4873_v60 = vrot.slane %v4871_v9, 5 }
 0x158   : > { %7256 = vmatprep.mubr.msk.bf16.mxu1 %vm1578_vm10, %v9981_v32  ;;  %v4905_v32 = vrot.slane %v4903_v12, 5  ;;  %v4859_v20 = vrot.slane %v4858_v13, 4  ;;  %v4869_v53 = vrot.slane %v4868_v10, 4  ;;  %v4882_v48 = vor.u32 %v4881_v11, %v4878_v31 }
 0x159   : > { %v4895_v54 = vshll.u32 %v9332_v49, 16  ;;  %v9982_v6 = vcombine.low %v9067_v42, %v9071_v55  ;;  %v4924_v12 = vshrl.u32 %v4644_v50, 16  ;;  %v4927_v18 = vshll.u32 %v4644_v50, 16 }
 0x15a   : > { %v4933_v24 = vshll.u32 %v9338_v56, 16  ;;  %v4937_v59 = vshrl.u32 %v9338_v56, 16  ;;  %v9983_v9 = vcombine.low %v9083_v29, %v9093_v5  ;;  %v4892_v13 = vor.u32 %v4891_v15, %v9334_v34 }
 0x15b   : > { %v4906_v10 = vor.u32 %v4905_v32, %v4902_v1  ;;  %v9357_v31 = vrot.slane %v4909_v0, 5  ;;  %v4915_v42 = vrot.slane %v4913_v36, 4  ;;  %v4816_v55 = vsel %vm8042_vm8, %v4811_v62, %v9295_v63 }
 0x15c   : > { %v4826_v11 = vsel %vm8042_vm8, %v4821_v21, %v9321_v44  ;;  %v4840_v5 = vsel %vm8042_vm8, %v4835_v51, %v9300_v17  ;;  %v4850_v29 = vsel %vm8042_vm8, %v4845_v3, %v4849_v43  ;;  %v4874_v0 = vsel %vm8042_vm8, %v4869_v53, %v4873_v60  ;;  %v9383_v17 = vld [vmem:[#allocation2 + $0xa4] sm:$0x1]  ;;  %v4647_v44 = vld [vmem:[#allocation2 + $0xa8] sm:$0xf] }
 0x15d   : > { %v9380_v36 = vrot.slane %v4882_v48, 4  ;;  %v4919_v63 = vshll.u32 %v9348_v45, 16  ;;  %v4929_v62 = vrot.slane %v4927_v18, 5  ;;  %v9388_v43 = vrot.slane %v4933_v24, 5  ;;  %v7842_v24 = vld [vmem:[%s9935_s3 + $0x118] sm:$0xff]  }
 0x15e   : > { %7441 = vmatmul.mubr.msk.bf16.vlgmr.msra.gmra.mrb[0].mxu0 %vm1578_vm10, %v9123_v58  ;;  %v4864_v58 = vsel %vm8042_vm8, %v4859_v20, %v9304_v2  ;;  %v4939_v2 = vrot.slane %v4937_v59, 4  ;;  %v9390_v15 = vrot.slane %v4892_v13, 4  ;;  %v9392_v60 = vrot.slane %v4895_v54, 5  ;;  %v9410_v20 = vld [vmem:[#allocation2 + $0xac] sm:$0xf] }
 0x15f   : > { %7257 = vmatmul.mubr.msk.bf16.gmra.mrb[16].mxu1 %vm1578_vm10, %v9982_v6  ;;  %7473 = vmatpush3.bf16.msra.mxu0 %v9018_v46  ;;  %v7837_v46 = vld [vmem:[%s9935_s3 + $0x110] sm:$0xff]   ;;  %v9394_v50 = vrot.slane %v4906_v10, 4  ;;  %v4916_v1 = vor.u32 %v4915_v42, %v9357_v31  ;;  %v9984_v32 = vsel %vm8042_vm8, %v9252_v40, %v9236_v41  ;;  %v9985_v21 = vsel %vm8042_vm8, %v9224_v19, %v9179_v30  ;;  %v5369_v59 = vld [vmem:[#allocation2 + $0x48] sm:$0xe]  ;;  %v9564_v13 = vld [vmem:[#allocation2 + $0xc4] sm:$0xf] }
 0x160   : > { %7260 = vmatprep.mubr.msk.bf16.mxu1 %vm1578_vm10, %v9983_v9  ;;  %7444 = vmatprep.mubr.msk.bf16.mxu0 %vm1578_vm10, %v9226_v37  ;;  %v4926_v37 = vrot.slane %v4924_v12, 4  ;;  %v9407_v51 = vcombine.low %v9985_v21, %v9984_v32  ;;  %v4943_v3 = vshll.u32 %v9383_v17, 16  ;;  %v4948_v53 = vshrl.u32 %v4647_v44, 16  ;;  %v5370_v9 = vld [vmem:[#allocation2 + $0x54] sm:$0xe]  ;;  %v9990_v32 = vld [vmem:[#allocation9_spill] sm:$0xff] }
 0x161   : > { %7474 = vmatprep.subr.bf16.mxu0 %v7834_v35  ;;  %v4951_v48 = vshll.u32 %v4647_v44, 16  ;;  %v6381_v54 = vcombine.low %v9256_v28, %v9319_v8  ;;  %v9414_v6 = vcombine.low %v4816_v55, %v4826_v11  ;;  %v9416_v41 = vcombine.low %v4840_v5, %v4850_v29  ;;  %v9448_v42 = vld [vmem:[#allocation2 + $0xb0] sm:$0x1]  ;;  %v9573_v28 = vld [vmem:[#allocation2 + $0xbc] sm:$0x1] }
 0x162   : > { %v9418_v40 = vcombine.low %v4864_v58, %v4874_v0  ;;  %v9986_v30 = vcombine.low %v9127_v52, %v9146_v27  ;;  %v4888_v19 = vsel %vm8042_vm8, %v9380_v36, %v9334_v34  ;;  %v4930_v12 = vor.u32 %v4929_v62, %v4926_v37  ;;  %v9988_v58 = vld [vmem:[#allocation6_spill] sm:$0xff]  ;;  %v5371_v62 = vld [vmem:[#allocation2 + $0x60] sm:$0xe]  ;;  %v4656_v36 = vld [vmem:[#allocation2 + $0xcc] sm:$0xf] }
 0x163   : > { %7475 = vmatpush3.bf16.msra.mxu0 %v7834_v35  ;;  %v9428_v35 = vrot.slane %v4919_v63, 5  ;;  %v4940_v18 = vor.u32 %v4939_v2, %v9388_v43  ;;  %v9987_v52 = vcombine.low %v9194_v23, %v9207_v16  ;;  %v4898_v27 = vsel %vm8042_vm8, %v9390_v15, %v9392_v60  ;;  %v9989_v63 = vld [vmem:[#allocation8_spill] sm:$0xff] }
 0x164   : > { %7476 = vmatprep.subr.bf16.mxu0 %v7837_v46  ;;  %v9446_v10 = vrot.slane %v4916_v1, 4  ;;  %v4957_v55 = vshll.u32 %v9410_v20, 16  ;;  %v9453_v23 = vrot.slane %v4943_v3, 5  ;;  %v4950_v16 = vrot.slane %v4948_v53, 4 }
 0x165   : > { %v4953_v11 = vrot.slane %v4951_v48, 5  ;;  %v4961_v5 = vshrl.u32 %v9410_v20, 16  ;;  %v6642_v29 = vrot.slane %v5369_v59, 9  ;;  %v5459_v0 = vrot.slane %v9988_v58, 5  ;;  %v5372_v48 = vld [vmem:[#allocation2 + $0x6c] sm:$0xe] }
 0x166   : > { %7445 = vmatmul.mubr.msk.bf16.gmra.mrb[4].mxu0 %vm1578_vm10, %v9232_v57  ;;  %v5462_v44 = vrot.slane %v9989_v63, 5  ;;  %v6643_v37 = vrot.slane %v5370_v9, 9  ;;  %v9460_v2 = vrot.slane %v4930_v12, 4  ;;  %v9462_v57 = vrot.slane %v4940_v18, 4  ;;  %v9992_v58 = vld [vmem:[#allocation10_spill] sm:$0xff] }
 0x167   : > { %7261 = vmatmul.mubr.msk.bf16.gmra.mrb[20].mxu1 %vm1578_vm10, %v9986_v30  ;;  %7448 = vmatprep.mubr.msk.bf16.mxu0 %vm1578_vm10, %v9250_v61  ;;  %v4967_v1 = vshll.u32 %v9448_v42, 16  ;;  %v5466_v21 = vrot.slane %v9990_v32, 5  ;;  %v9466_v3 = vrot.slane %v4957_v55, 5  ;;  %v9470_v61 = vsel %vm8448_vm15, %v6642_v29, %v5459_v0 }
 0x168   : > { %7264 = vmatprep.mubr.msk.bf16.mxu1 %vm1578_vm10, %v9987_v52  ;;  %7477 = vmatpush3.bf16.msra.mxu0 %v7837_v46  ;;  %v5461_v46 = vrot.slane %v5459_v0, 4  ;;  %v5469_v53 = vrot.slane %v9177_v14, 5  ;;  %v4954_v30 = vor.u32 %v4953_v11, %v4950_v16  ;;  %v6644_v59 = vrot.slane %v5371_v62, 9  ;;  %v4650_v52 = vld [vmem:[#allocation2 + $0xb4] sm:$0xf] }
 0x169   : > { %7478 = vmatprep.subr.bf16.mxu0 %v7842_v24  ;;  %v9475_v12 = vsel %vm8448_vm15, %v6643_v37, %v5466_v21  ;;  %v5468_v18 = vrot.slane %v5466_v21, 4  ;;  %v9477_v9 = vrot.slane %v4961_v5, 4  ;;  %v5473_v29 = vrot.slane %v9230_v39, 5 }
 0x16a   : > { %v9481_v55 = vsel %vm8448_vm15, %v5461_v46, %v5462_v44  ;;  %v5476_v14 = vrot.slane %v9279_v22, 5  ;;  %v9991_v16 = vcombine.low %v9198_v4, %v9213_v47  ;;  %v5480_v0 = vrot.slane %v9992_v58, 5  ;;  %v9500_v22 = vld [vmem:[#allocation2 + $0xb8] sm:$0xf]  ;;  %v9994_v44 = vld [vmem:[#allocation13_spill] sm:$0xff] }
 0x16b   : > { %v9493_v5 = vsel %vm8448_vm15, %v5468_v18, %v5469_v53  ;;  %v9993_v39 = vcombine.low %v9240_v7, %v9275_v25  ;;  %v9506_v47 = vsel %vm8448_vm15, %v6644_v59, %v5473_v29  ;;  %v5475_v63 = vrot.slane %v5473_v29, 4  ;;  %v7835_v18 = vld [vmem:[#allocation2 + $0xc] sm:$0xff]   ;;  %v9998_v29 = vld [vmem:[#allocation15_spill] sm:$0xff] }
 0x16c   : > { %7479 = vmatpush3.bf16.msra.mxu0 %v7842_v24  ;;  %v6645_v24 = vrot.slane %v5372_v48, 9  ;;  %v5483_v37 = vrot.slane %v9994_v44, 5  ;;  %v4922_v7 = vsel %vm8042_vm8, %v9446_v10, %v9428_v35  ;;  %v4972_v25 = vshrl.u32 %v4650_v52, 16  ;;  %v2999_v48 = vld [vmem:[#allocation2 + $0x78] sm:$0xf] }
 0x16d   : > { %v5482_v32 = vrot.slane %v5480_v0, 4  ;;  %v4936_v21 = vsel %vm8042_vm8, %v9460_v2, %v9388_v43  ;;  %v4975_v46 = vshll.u32 %v4650_v52, 16  ;;  %v9529_v53 = vsel %vm8448_vm15, %v5475_v63, %v5476_v14  ;;  %v5373_v2 = vld [vmem:[#allocation2 + $0x78] sm:$0xe]  ;;  %v9996_v63 = vld [vmem:[#allocation4_spill] sm:$0xff] }
 0x16e   : > { %7449 = vmatmul.mubr.msk.bf16.gmra.mrb[8].mxu0 %vm1578_vm10, %v9407_v51  ;;  %v9517_v62 = vsel %vm8448_vm15, %v6645_v24, %v5480_v0  ;;  %v9525_v51 = vrot.slane %v4967_v1, 5  ;;  %v4946_v59 = vsel %vm8042_vm8, %v9462_v57, %v9453_v23  ;;  %v9542_v1 = vrot.slane %v4954_v30, 4  ;;  %v5374_v57 = vld [vmem:[#allocation2 + $0x84] sm:$0xe]  ;;  %v9632_v10 = vld [vmem:[#allocation2 + $0xc8] sm:$0x1] }
 0x16f   : > { %7265 = vmatmul.mubr.msk.bf16.gmra.mrb[24].mxu1 %vm1578_vm10, %v9991_v16  ;;  %7452 = vmatprep.mubr.msk.bf16.mxu0 %vm1578_vm10, %v9414_v6  ;;  %v4981_v6 = vshll.u32 %v9500_v22, 16  ;;  %v9540_v43 = vsel %vm8448_vm15, %v5482_v32, %v5483_v37  ;;  %v4964_v52 = vor.u32 %v9477_v9, %v9466_v3  ;;  %v4985_v14 = vshrl.u32 %v9500_v22, 16  ;;  %v4653_v16 = vld [vmem:[#allocation2 + $0xc0] sm:$0xf] }
 0x170   : > { %7268 = vmatprep.mubr.msk.bf16.mxu1 %vm1578_vm10, %v9993_v39  ;;  %v9549_v24 = vrot.slane %v4972_v25, 4  ;;  %v3237_v58 = vshrl.u32 %v2999_v48, 16  ;;  %v3240_v0 = vshll.u32 %v2999_v48, 16  ;;  %v9995_v39 = vld [vmem:[#allocation5_spill] sm:$0xff]  ;;  %v9555_v44 = vrot.slane %v4975_v46, 5  ;;  %v9997_v9 = vld [vmem:[#allocation12_spill] sm:$0xff] }
 0x171   : > { %v3259_v30 = vsel %vm8042_vm8, %v9996_v63, %v9995_v39  ;;  %v6646_v37 = vrot.slane %v5373_v2, 9  ;;  %v5487_v32 = vrot.slane %v9997_v9, 5  ;;  %v5490_v4 = vrot.slane %v9998_v29, 5  ;;  %v9999_v29 = vld [vmem:[#allocation14_spill] sm:$0xff] }
 0x172   : > { %v4996_v25 = vshrl.u32 %v4653_v16, 16  ;;  %v3239_v23 = vrot.slane %v3237_v58, 4  ;;  %v3242_v48 = vrot.slane %v3240_v0, 5  ;;  %v6647_v11 = vrot.slane %v5374_v57, 9 }
 0x173   : > { %v4999_v46 = vshll.u32 %v4653_v16, 16  ;;  %v9568_v2 = vsel %vm8448_vm15, %v6646_v37, %v5487_v32  ;;  %v5489_v39 = vrot.slane %v5487_v32, 4  ;;  %v5494_v63 = vrot.slane %v9999_v29, 5  ;;  %v7836_v37 = vld [vmem:[#allocation2 + $0x18] sm:$0xff]  }
 0x174   : > { %v9575_v8 = vrot.slane %v4981_v6, 5  ;;  %v3243_v57 = vor.u32 %v3242_v48, %v3239_v23  ;;  %v4965_v16 = vrot.slane %v4964_v52, 4  ;;  %v5005_v6 = vshll.u32 %v9564_v13, 16  ;;  %v10000_v48 = vld [vmem:[#allocation3_spill] sm:$0xff] }
 0x175   : > { %v9582_v58 = vsel %vm8448_vm15, %v5489_v39, %v5490_v4  ;;  %v9586_v0 = vsel %vm8448_vm15, %v6647_v11, %v5494_v63  ;;  %v4991_v52 = vshll.u32 %v9573_v28, 16  ;;  %v4998_v9 = vrot.slane %v4996_v25, 4 }
 0x176   : > { %7453 = vmatmul.mubr.msk.bf16.gmra.mrb[12].mxu0 %vm1578_vm10, %v9416_v41  ;;  %v5496_v41 = vrot.slane %v5494_v63, 4  ;;  %v3244_v23 = vrot.slane %v3243_v57, 4  ;;  %v5001_v4 = vrot.slane %v4999_v46, 5  ;;  %v6611_v11 = vcombine.low %v4888_v19, %v4898_v27  ;;  %v5375_v27 = vld [vmem:[#allocation2 + $0x90] sm:$0xe] }
 0x177   : > { %7269 = vmatmul.mubr.msk.bf16.gmra.mrb[28].mxu1 %vm1578_vm10, %v6381_v54  ;;  %v4987_v54 = vrot.slane %v4985_v14, 4  ;;  %7456 = vmatprep.mubr.msk.bf16.mxu0 %vm1578_vm10, %v9418_v40  ;;  %v5009_v14 = vshrl.u32 %v9564_v13, 16  ;;  %v7838_v40 = vld [vmem:[#allocation2 + $0x24] sm:$0xff]   ;;  %v10001_v15 = vsel %vm8042_vm8, %v9394_v50, %v9357_v31  ;;  %v6613_v34 = vcombine.low %v4936_v21, %v4946_v59  ;;  %v10002_v21 = vld [vmem:[#allocation11_spill] sm:$0xff] }
 0x178   : > { %7280 = vmatprep.mubr.msk.bf16.mxu1 %vm1578_vm10, %v7835_v18  ;;  %v5497_v18 = vrot.slane %v9332_v49, 5  ;;  %v6670_v49 = vcombine.low %v9568_v2, %v9582_v58  ;;  %v3249_v25 = vsel %vm8042_vm8, %v3244_v23, %v10000_v48  ;;  %v6612_v60 = vcombine.low %v10001_v15, %v4922_v7  ;;  %v9636_v7 = vld [vmem:[#allocation2 + $0xd0] sm:$0xf] }
 0x179   : > { %v9622_v19 = vcombine.low %v3249_v25, %v3259_v30  ;;  %v4960_v39 = vsel %vm8042_vm8, %v9542_v1, %v9466_v3  ;;  %v4970_v35 = vsel %vm8042_vm8, %v4965_v16, %v9525_v51  ;;  %v9634_v31 = vrot.slane %v5005_v6, 5  ;;  %v7906_v51 = vld [vmem:[%s9935_s3 + $0x88] sm:$0xff]   ;;  %v5376_v16 = vld [vmem:[#allocation2 + $0x9c] sm:$0xe]  ;;  %v7907_v15 = vld [vmem:[%s9935_s3 + $0x90] sm:$0xff]  }
 0x17a   : > { %v9595_v32 = vsel %vm8448_vm15, %v5496_v41, %v5497_v18  ;;  %v5011_v50 = vrot.slane %v5009_v14, 4  ;;  %v4978_v59 = vor.u32 %v9555_v44, %v9549_v24  ;;  %v4988_v3 = vor.u32 %v4987_v54, %v9575_v8 }
 0x17b   : > { %v6671_v46 = vcombine.low %v9586_v0, %v9595_v32  ;;  %v9643_v1 = vrot.slane %v4991_v52, 5  ;;  %v5002_v30 = vor.u32 %v5001_v4, %v4998_v9  ;;  %v5020_v29 = vshrl.u32 %v4656_v36, 16 }
 0x17c   : > { %v5023_v63 = vshll.u32 %v4656_v36, 16  ;;  %v6648_v57 = vrot.slane %v5375_v27, 9  ;;  %v5501_v18 = vrot.slane %v9327_v38, 5  ;;  %v6614_v24 = vcombine.low %v4960_v39, %v4970_v35 }
 0x17d   : > { %v5015_v44 = vshll.u32 %v9632_v10, 16  ;;  %v5029_v54 = vshll.u32 %v9636_v7, 16  ;;  %v5033_v41 = vshrl.u32 %v9636_v7, 16  ;;  %v5012_v6 = vor.u32 %v5011_v50, %v9634_v31 }
 0x17e   : > { %7457 = vmatmul.mubr.msk.bf16.gmra.mrb[16].mxu0 %vm1578_vm10, %v6611_v11  ;;  %v9657_v14 = vsel %vm8448_vm15, %v6648_v57, %v5501_v18  ;;  %v5503_v23 = vrot.slane %v5501_v18, 4  ;;  %v5504_v38 = vrot.slane %v9348_v45, 5  ;;  %v4979_v52 = vrot.slane %v4978_v59, 4  ;;  %v9668_v45 = vld [vmem:[#allocation2 + $0xd4] sm:$0x1] }
 0x17f   : > { %7281 = vmatmul.mubr.msk.bf16.vlgmr.msra.gmra.mrb[0].mxu1 %vm1578_vm10, %v7836_v37  ;;  %7460 = vmatprep.mubr.msk.bf16.mxu0 %vm1578_vm10, %v6612_v60  ;;  %v7839_v37 = vld [vmem:[#allocation2 + $0x30] sm:$0xff]   ;;  %v4989_v9 = vrot.slane %v4988_v3, 4  ;;  %v5003_v4 = vrot.slane %v5002_v30, 4  ;;  %v6649_v11 = vrot.slane %v5376_v16, 9  ;;  %v5022_v48 = vrot.slane %v5020_v29, 4 }
 0x180   : > { %7516 = vmatpush3.bf16.msra.mxu1 %v10002_v21  ;;  %7284 = vmatprep.mubr.msk.bf16.mxu1 %vm1578_vm10, %v7838_v40  ;;  %v7840_v40 = vld [vmem:[#allocation2 + $0x3c] sm:$0xff]   ;;  %v5025_v25 = vrot.slane %v5023_v63, 5  ;;  %v9665_v60 = vsel %vm8448_vm15, %v5503_v23, %v5504_v38  ;;  %v5508_v36 = vrot.slane %v9338_v56, 5  ;;  %v9670_v27 = vrot.slane %v5029_v54, 5  ;;  %v5365_v57 = vld [vmem:[#allocation2 + $0x18] sm:$0xe] }
 0x181   : > { %7513 = vmatprep.subr.bf16.mxu1 %v7906_v51  ;;  %v5035_v39 = vrot.slane %v5033_v41, 4  ;;  %v6672_v35 = vcombine.low %v9657_v14, %v9665_v60  ;;  %v5511_v50 = vrot.slane %v9383_v17, 5  ;;  %v5013_v21 = vrot.slane %v5012_v6, 4  ;;  %v5377_v16 = vld [vmem:[#allocation2 + $0xa8] sm:$0xe]  ;;  %v7843_v6 = vld [vmem:[#allocation2 + $0x54] sm:$0xff]  }
 0x182   : > { %v5017_v59 = vrot.slane %v5015_v44, 5  ;;  %v9678_v3 = vsel %vm8448_vm15, %v6649_v11, %v5508_v36  ;;  %v5510_v30 = vrot.slane %v5508_v36, 4  ;;  %v4984_v56 = vsel %vm8042_vm8, %v4979_v52, %v9575_v8  ;;  %v7841_v44 = vld [vmem:[#allocation2 + $0x48] sm:$0xff]   ;;  %v7909_v41 = vld [vmem:[#allocation2 + $0x1c] sm:$0xf] }
 0x183   : > { %v5039_v17 = vshll.u32 %v9668_v45, 16  ;;  %v5026_v63 = vor.u32 %v5025_v25, %v5022_v48  ;;  %v5036_v8 = vor.u32 %v5035_v39, %v9670_v27  ;;  %v5008_v54 = vsel %vm8042_vm8, %v5003_v4, %v9634_v31  ;;  %v7910_v4 = vld [vmem:[#allocation2 + $0x20] sm:$0x1] }
 0x184   : > { %7517 = vmatpush3.bf16.msra.mxu1 %v7906_v51  ;;  %v7908_v51 = vld [vmem:[%s9935_s3 + $0x98] sm:$0xff]   ;;  %v9691_v29 = vsel %vm8448_vm15, %v5510_v30, %v5511_v50  ;;  %v6650_v52 = vrot.slane %v5377_v16, 9  ;;  %v5515_v25 = vrot.slane %v9410_v20, 5  ;;  %v5518_v36 = vrot.slane %v9448_v42, 5  ;;  %v7911_v30 = vld [vmem:[#allocation2 + $0x28] sm:$0xf] }
 0x185   : > { %7514 = vmatprep.subr.bf16.mxu1 %v7907_v15  ;;  %v6673_v18 = vcombine.low %v9678_v3, %v9691_v29  ;;  %v5041_v38 = vrot.slane %v5039_v17, 5  ;;  %v5027_v11 = vrot.slane %v5026_v63, 4  ;;  %v5037_v48 = vrot.slane %v5036_v8, 4  ;;  %v7912_v63 = vld [vmem:[#allocation2 + $0x34] sm:$0xf]  ;;  %v7844_v16 = vld [vmem:[#allocation2 + $0x60] sm:$0xff]  }
 0x186   : > { %7461 = vmatmul.mubr.msk.bf16.gmra.mrb[20].mxu0 %vm1578_vm10, %v6613_v34  ;;  %v4994_v34 = vsel %vm8042_vm8, %v4989_v9, %v9643_v1  ;;  %v5378_v1 = vld [vmem:[#allocation2 + $0xb4] sm:$0xe]  ;;  %v9711_v50 = vsel %vm8448_vm15, %v6650_v52, %v5515_v25  ;;  %v5522_v17 = vrot.slane %v9500_v22, 5  ;;  %v5525_v42 = vrot.slane %v9573_v28, 5 }
 0x187   : > { %7285 = vmatmul.mubr.msk.bf16.gmra.mrb[4].mxu1 %vm1578_vm10, %v7839_v37  ;;  %7464 = vmatprep.mubr.msk.bf16.mxu0 %vm1578_vm10, %v6614_v24  ;;  %v5018_v24 = vsel %vm8042_vm8, %v5013_v21, %v5017_v59  ;;  %v5431_v37 = vrot.slane %v7909_v41, 5  ;;  %v6615_v23 = vcombine.low %v4984_v56, %v4994_v34  ;;  %v6651_v39 = vrot.slane %v5378_v1, 9  ;;  %v5366_v59 = vld [vmem:[#allocation2 + $0x24] sm:$0xe]  ;;  %v5367_v41 = vld [vmem:[#allocation2 + $0x30] sm:$0xe] }
 0x188   : > { %7288 = vmatprep.mubr.msk.bf16.mxu1 %vm1578_vm10, %v7840_v40  ;;  %7518 = vmatpush3.bf16.msra.mxu1 %v7907_v15  ;;  %v6638_v40 = vrot.slane %v5365_v57, 9  ;;  %v6616_v9 = vcombine.low %v5008_v54, %v5018_v24  ;;  %v5434_v15 = vrot.slane %v7910_v4, 5  ;;  %v5517_v21 = vrot.slane %v5515_v25, 4  ;;  %v7845_v54 = vld [vmem:[#allocation2 + $0x6c] sm:$0xff]   ;;  %v10003_v25 = vld [vmem:[#allocation7_spill] sm:$0xff] }
 0x189   : > { %7515 = vmatprep.subr.bf16.mxu1 %v7908_v51  ;;  %v5433_v31 = vrot.slane %v5431_v37, 4  ;;  %v5438_v56 = vrot.slane %v7911_v30, 5  ;;  %v5042_v34 = vsel %vm8042_vm8, %v5037_v48, %v5041_v38  ;;  %v5445_v8 = vrot.slane %v7912_v63, 5  ;;  %v7913_v1 = vld [vmem:[#allocation2 + $0x2c] sm:$0x1] }
 0x18a   : > { %v5432_v20 = vsel %vm8448_vm15, %v6638_v40, %v5431_v37  ;;  %v9726_v57 = vsel %vm8448_vm15, %v5517_v21, %v5518_v36  ;;  %v6639_v24 = vrot.slane %v5366_v59, 9  ;;  %v5368_v4 = vld [vmem:[#allocation2 + $0x3c] sm:$0xe]  ;;  %v7914_v59 = vld [vmem:[#allocation2 + $0x40] sm:$0xf] }
 0x18b   : > { %v5435_v22 = vsel %vm8448_vm15, %v5433_v31, %v5434_v15  ;;  %v6674_v28 = vcombine.low %v9711_v50, %v9726_v57  ;;  %v5447_v48 = vrot.slane %v5445_v8, 4  ;;  %v5448_v31 = vrot.slane %v10003_v25, 5  ;;  %v5380_v15 = vld [vmem:[#allocation2 + $0xcc] sm:$0xe] }
 0x18c   : > { %7519 = vmatpush3.bf16.msra.mxu1 %v7908_v51  ;;  %v5032_v51 = vsel %vm8042_vm8, %v5027_v11, %v9670_v27  ;;  %v5524_v27 = vrot.slane %v5522_v17, 4  ;;  %v6662_v40 = vcombine.low %v5432_v20, %v5435_v22  ;;  %v6640_v11 = vrot.slane %v5367_v41, 9 }
 0x18d   : > { %v6617_v37 = vcombine.low %v5032_v51, %v5042_v34  ;;  %v5439_v36 = vsel %vm8448_vm15, %v6639_v24, %v5438_v56  ;;  %v6641_v20 = vrot.slane %v5368_v4, 9  ;;  %v5452_v30 = vrot.slane %v7914_v59, 5  ;;  %v7846_v51 = vld [vmem:[#allocation2 + $0x78] sm:$0xff]   ;;  %v7848_v59 = vld [vmem:[#allocation2 + $0x90] sm:$0xff]  }
 0x18e   : > { %7465 = vmatmul.mubr.msk.bf16.gmra.mrb[24].mxu0 %vm1578_vm10, %v6615_v23  ;;  %v5441_v23 = vrot.slane %v7913_v1, 5  ;;  %v9738_v38 = vsel %vm8448_vm15, %v5524_v27, %v5525_v42  ;;  %v5529_v42 = vrot.slane %v9564_v13, 5  ;;  %v5446_v34 = vsel %vm8448_vm15, %v6640_v11, %v5445_v8  ;;  %v7847_v27 = vld [vmem:[#allocation2 + $0x84] sm:$0xff]  }
 0x18f   : > { %7289 = vmatmul.mubr.msk.bf16.gmra.mrb[8].mxu1 %vm1578_vm10, %v7841_v44  ;;  %7468 = vmatprep.mubr.msk.bf16.mxu0 %vm1578_vm10, %v6616_v9  ;;  %v9734_v44 = vsel %vm8448_vm15, %v6651_v39, %v5522_v17  ;;  %v5379_v9 = vld [vmem:[#allocation2 + $0xc0] sm:$0xe]  ;;  %v2996_v17 = vld [vmem:[#allocation2 + $0x6c] sm:$0xf]  ;;  %v5449_v63 = vsel %vm8448_vm15, %v5447_v48, %v5448_v31  ;;  %v5536_v41 = vrot.slane %v9636_v7, 5  ;;  %v5539_v8 = vrot.slane %v9668_v45, 5 }
 0x190   : > { %7292 = vmatprep.mubr.msk.bf16.mxu1 %vm1578_vm10, %v7843_v6  ;;  %v5440_v6 = vrot.slane %v5438_v56, 4  ;;  %v6675_v52 = vcombine.low %v9734_v44, %v9738_v38  ;;  %v6652_v21 = vrot.slane %v5379_v9, 9  ;;  %v5532_v56 = vrot.slane %v9632_v10, 5  ;;  %v7915_v13 = vld [vmem:[#allocation2 + $0x44] sm:$0x1] }
 0x191   : > { %v5531_v24 = vrot.slane %v5529_v42, 4  ;;  %v3216_v1 = vshll.u32 %v2996_v17, 16  ;;  %v7916_v9 = vld [vmem:[#allocation2 + $0x70] sm:$0xf]  ;;  %v5538_v31 = vrot.slane %v5536_v41, 4 }
 0x192   : > { %v5442_v39 = vsel %vm8448_vm15, %v5440_v6, %v5441_v23  ;;  %v3213_v6 = vshrl.u32 %v2996_v17, 16  ;;  %v6664_v23 = vcombine.low %v5446_v34, %v5449_v63  ;;  %v3222_v10 = vshll.u32 %v7916_v9, 16  ;;  %v3002_v34 = vld [vmem:[#allocation2 + $0x84] sm:$0xf] }
 0x193   : > { %v6663_v22 = vcombine.low %v5439_v36, %v5442_v39  ;;  %v9765_v11 = vsel %vm8448_vm15, %v5531_v24, %v5532_v56  ;;  %v3226_v48 = vshrl.u32 %v7916_v9, 16  ;;  %v3218_v4 = vrot.slane %v3216_v1, 5 }
 0x194   : > { %v3215_v45 = vrot.slane %v3213_v6, 4  ;;  %v5453_v36 = vsel %vm8448_vm15, %v6641_v20, %v5452_v30  ;;  %v3224_v17 = vrot.slane %v3222_v10, 5  ;;  %v3261_v24 = vshrl.u32 %v3002_v34, 16  ;;  %v7918_v20 = vld [vmem:[#allocation2 + $0x88] sm:$0xf] }
 0x195   : > { %v3264_v26 = vshll.u32 %v3002_v34, 16  ;;  %v7850_v6 = vld [vmem:[#allocation2 + $0xa8] sm:$0xff]   ;;  %v10004_v1 = vcombine.low %v9470_v61, %v9481_v55  ;;  %v3008_v10 = vld [vmem:[#allocation2 + $0x9c] sm:$0xf] }
 0x196   : > { %7469 = vmatmul.mubr.msk.bf16.gmra.mrb[28].mxu0 %vm1578_vm10, %v6617_v37  ;;  %v5455_v37 = vrot.slane %v7915_v13, 5  ;;  %v3219_v56 = vor.u32 %v3218_v4, %v3215_v45  ;;  %v3005_v13 = vld [vmem:[#allocation2 + $0x90] sm:$0xf]  ;;  %v3309_v61 = vshrl.u32 %v3008_v10, 16  ;;  %v3312_v55 = vshll.u32 %v3008_v10, 16 }
 0x197   : > { %7293 = vmatmul.mubr.msk.bf16.gmra.mrb[12].mxu1 %vm1578_vm10, %v7844_v16  ;;  %7480 = vmatprep.mubr.msk.bf16.mxu0 %vm1578_vm10, %v6662_v40  ;;  %v6653_v16 = vrot.slane %v5380_v15, 9  ;;  %v5454_v40 = vrot.slane %v5452_v30, 4  ;;  %v9778_v15 = vsel %vm8448_vm15, %v5538_v31, %v5539_v8  ;;  %v3270_v30 = vshll.u32 %v7918_v20, 16 }
 0x198   : > { %7296 = vmatprep.mubr.msk.bf16.mxu1 %vm1578_vm10, %v7845_v54  ;;  %v9759_v54 = vsel %vm8448_vm15, %v6652_v21, %v5529_v42  ;;  %v3228_v42 = vrot.slane %v3226_v48, 4  ;;  %v3285_v9 = vshrl.u32 %v3005_v13, 16  ;;  %v7851_v48 = vld [vmem:[#allocation2 + $0xb4] sm:$0xff]   ;;  %v3266_v31 = vrot.slane %v3264_v26, 5 }
 0x199   : > { %v6676_v7 = vcombine.low %v9759_v54, %v9765_v11  ;;  %v9772_v25 = vsel %vm8448_vm15, %v6653_v16, %v5536_v41  ;;  %v5456_v39 = vsel %vm8448_vm15, %v5454_v40, %v5455_v37  ;;  %v3274_v41 = vshrl.u32 %v7918_v20, 16 }
 0x19a   : > { %v6677_v21 = vcombine.low %v9772_v25, %v9778_v15  ;;  %v6665_v63 = vcombine.low %v5453_v36, %v5456_v39  ;;  %v3229_v16 = vor.u32 %v3228_v42, %v3224_v17  ;;  %v3220_v37 = vrot.slane %v3219_v56, 4 }
 0x19b   : > { %v3263_v40 = vrot.slane %v3261_v24, 4  ;;  %v9794_v45 = vrot.slane %v3270_v30, 5  ;;  %v3276_v4 = vrot.slane %v3274_v41, 4  ;;  %v3288_v36 = vshll.u32 %v3005_v13, 16 }
 0x19c   : > { %v3230_v8 = vrot.slane %v3229_v16, 4  ;;  %v3225_v39 = vsel %vm8042_vm8, %v3220_v37, %v3224_v17  ;;  %v7921_v16 = vld [vmem:[#allocation2 + $0xa0] sm:$0xf]  ;;  %v3287_v26 = vrot.slane %v3285_v9, 4  ;;  %v10005_v30 = vcombine.low %v9475_v12, %v9493_v5 }
 0x19d   : > { %v3267_v24 = vor.u32 %v3266_v31, %v3263_v40  ;;  %v3277_v17 = vor.u32 %v3276_v4, %v9794_v45  ;;  %v3290_v20 = vrot.slane %v3288_v36, 5  ;;  %v10006_v41 = vcombine.low %v9506_v47, %v9529_v53  ;;  %v7922_v4 = vld [vmem:[#allocation2 + $0x98] sm:$0x1] }
 0x19e   : > { %7481 = vmatmul.mubr.msk.bf16.vlgmr.msra.gmra.mrb[0].mxu0 %vm1578_vm10, %v6663_v22  ;;  %v7917_v22 = vld [vmem:[#allocation2 + $0x74] sm:$0x1]  ;;  %v3304_v36 = vshll.u32 %v7922_v4, 16  ;;  %v3017_v4 = vld [vmem:[#allocation2 + $0xc0] sm:$0xf] }
 0x19f   : > { %7297 = vmatmul.mubr.msk.bf16.gmra.mrb[16].mxu1 %vm1578_vm10, %v7846_v51  ;;  %7484 = vmatprep.mubr.msk.bf16.mxu0 %vm1578_vm10, %v6664_v23  ;;  %v7849_v51 = vld [vmem:[#allocation2 + $0x9c] sm:$0xff]   ;;  %v3268_v12 = vrot.slane %v3267_v24, 4  ;;  %v3278_v5 = vrot.slane %v3277_v17, 4  ;;  %v3291_v31 = vor.u32 %v3290_v20, %v3287_v26  ;;  %v10007_v17 = vcombine.low %v9517_v62, %v9540_v43 }
 0x1a0   : > { %7300 = vmatprep.mubr.msk.bf16.mxu1 %vm1578_vm10, %v7847_v27  ;;  %v3232_v27 = vshll.u32 %v7917_v22, 16  ;;  %v3318_v22 = vshll.u32 %v7921_v16, 16  ;;  %v3306_v24 = vrot.slane %v3304_v36, 5 }
 0x1a2   : > { %v3234_v23 = vrot.slane %v3232_v27, 5  ;;  %v3322_v27 = vshrl.u32 %v7921_v16, 16  ;;  %v9813_v9 = vrot.slane %v3318_v22, 5  ;;  %v3273_v16 = vsel %vm8042_vm8, %v3268_v12, %v9794_v45 }
 0x1a4   : > { %v3235_v34 = vsel %vm8042_vm8, %v3230_v8, %v3234_v23  ;;  %v7852_v8 = vld [vmem:[#allocation2 + $0xc0] sm:$0xff]   ;;  %v3324_v10 = vrot.slane %v3322_v27, 4  ;;  %v3292_v27 = vrot.slane %v3291_v31, 4 }
 0x1a5   : > { %v6462_v23 = vcombine.low %v3225_v39, %v3235_v34  ;;  %v7924_v34 = vld [vmem:[#allocation2 + $0xac] sm:$0xf] }
 0x1a6   : > { %7485 = vmatmul.mubr.msk.bf16.gmra.mrb[4].mxu0 %vm1578_vm10, %v6665_v63  ;;  %v7920_v63 = vld [vmem:[#allocation2 + $0x8c] sm:$0x1]  ;;  %v3325_v39 = vor.u32 %v3324_v10, %v9813_v9 }
 0x1a7   : > { %7301 = vmatmul.mubr.msk.bf16.gmra.mrb[20].mxu1 %vm1578_vm10, %v7848_v59  ;;  %7488 = vmatprep.mubr.msk.bf16.mxu0 %vm1578_vm10, %v10004_v1  ;;  %v7919_v59 = vld [vmem:[#allocation2 + $0x94] sm:$0xf]  ;;  %v3280_v56 = vshll.u32 %v7920_v63, 16  ;;  %v3314_v1 = vrot.slane %v3312_v55, 5  ;;  %v3342_v63 = vshll.u32 %v7924_v34, 16 }
 0x1a8   : > { %7304 = vmatprep.mubr.msk.bf16.mxu1 %vm1578_vm10, %v7849_v51  ;;  %v3294_v42 = vshll.u32 %v7919_v59, 16  ;;  %v3298_v51 = vshrl.u32 %v7919_v59, 16  ;;  %v7923_v59 = vld [vmem:[#allocation2 + $0xa4] sm:$0x1] }
 0x1a9   : > { %v3282_v40 = vrot.slane %v3280_v56, 5  ;;  %v3346_v56 = vshrl.u32 %v7924_v34, 16  ;;  %v3344_v10 = vrot.slane %v3342_v63, 5 }
 0x1aa   : > { %v9811_v13 = vrot.slane %v3294_v42, 5  ;;  %v3300_v37 = vrot.slane %v3298_v51, 4  ;;  %v3328_v42 = vshll.u32 %v7923_v59, 16 }
 0x1ab   : > { %v3283_v22 = vsel %vm8042_vm8, %v3278_v5, %v3282_v40  ;;  %v3348_v62 = vrot.slane %v3346_v56, 4 }
 0x1ac   : > { %v3301_v47 = vor.u32 %v3300_v37, %v9811_v13  ;;  %v6464_v43 = vcombine.low %v3273_v16, %v3283_v22  ;;  %v3297_v2 = vsel %vm8042_vm8, %v3292_v27, %v9811_v13  ;;  %v3381_v13 = vshrl.u32 %v3017_v4, 16 }
 0x1ae   : > { %7489 = vmatmul.mubr.msk.bf16.gmra.mrb[8].mxu0 %vm1578_vm10, %v10005_v30  ;;  %v7925_v30 = vld [vmem:[#allocation2 + $0xb8] sm:$0xf]  ;;  %v3302_v45 = vrot.slane %v3301_v47, 4 }
 0x1af   : > { %7305 = vmatmul.mubr.msk.bf16.gmra.mrb[24].mxu1 %vm1578_vm10, %v7850_v6  ;;  %7492 = vmatprep.mubr.msk.bf16.mxu0 %vm1578_vm10, %v10006_v41  ;;  %v3311_v6 = vrot.slane %v3309_v61, 4  ;;  %v3014_v61 = vld [vmem:[#allocation2 + $0xb4] sm:$0xf]  ;;  %v3366_v41 = vshll.u32 %v7925_v30, 16  ;;  %v3370_v37 = vshrl.u32 %v7925_v30, 16 }
 0x1b0   : > { %7308 = vmatprep.mubr.msk.bf16.mxu1 %vm1578_vm10, %v7851_v48  ;;  %v3011_v48 = vld [vmem:[#allocation2 + $0xa8] sm:$0xf]  ;;  %v3357_v26 = vshrl.u32 %v3014_v61, 16  ;;  %v3360_v20 = vshll.u32 %v3014_v61, 16  ;;  %v3307_v58 = vsel %vm8042_vm8, %v3302_v45, %v3306_v24  ;;  %v7927_v61 = vld [vmem:[#allocation2 + $0xc4] sm:$0xf] }
 0x1b1   : > { %v3315_v53 = vor.u32 %v3314_v1, %v3311_v6  ;;  %v3333_v51 = vshrl.u32 %v3011_v48, 16  ;;  %v3336_v55 = vshll.u32 %v3011_v48, 16  ;;  %v3330_v1 = vrot.slane %v3328_v42, 5 }
 0x1b2   : > { %v3359_v48 = vrot.slane %v3357_v26, 4  ;;  %v3362_v12 = vrot.slane %v3360_v20, 5  ;;  %v3368_v5 = vrot.slane %v3366_v41, 5  ;;  %v3372_v31 = vrot.slane %v3370_v37, 4  ;;  %v7929_v37 = vld [vmem:[#allocation2 + $0xc8] sm:$0x1] }
 0x1b3   : > { %v3316_v6 = vrot.slane %v3315_v53, 4  ;;  %v3338_v40 = vrot.slane %v3336_v55, 5  ;;  %v3349_v42 = vor.u32 %v3348_v62, %v3344_v10  ;;  %v3394_v55 = vshrl.u32 %v7927_v61, 16 }
 0x1b4   : > { %v3373_v34 = vor.u32 %v3372_v31, %v3368_v5  ;;  %v6465_v56 = vcombine.low %v3297_v2, %v3307_v58  ;;  %v3400_v45 = vshll.u32 %v7929_v37, 16 }
 0x1b5   : > { %v3321_v47 = vsel %vm8042_vm8, %v3316_v6, %v9813_v9  ;;  %v7928_v9 = vld [vmem:[#allocation2 + $0xbc] sm:$0x1]  ;;  %v3350_v27 = vrot.slane %v3349_v42, 4  ;;  %v3396_v0 = vrot.slane %v3394_v55, 4 }
 0x1b6   : > { %7493 = vmatmul.mubr.msk.bf16.gmra.mrb[12].mxu0 %vm1578_vm10, %v10007_v17  ;;  %v3376_v63 = vshll.u32 %v7928_v9, 16  ;;  %v3383_v17 = vrot.slane %v3381_v13, 4  ;;  %v3402_v62 = vrot.slane %v3400_v45, 5 }
 0x1b7   : > { %7309 = vmatmul.mubr.msk.bf16.gmra.mrb[28].mxu1 %vm1578_vm10, %v7852_v8  ;;  %7496 = vmatprep.mubr.msk.bf16.mxu0 %vm1578_vm10, %v6670_v49  ;;  %v3335_v8 = vrot.slane %v3333_v51, 4  ;;  %v7926_v49 = vld [vmem:[#allocation2 + $0xb0] sm:$0x1]  ;;  %v3384_v51 = vshll.u32 %v3017_v4, 16 }
 0x1b8   : > { %7336 = vmatprep.mubr.msk.bf16.mxu1 %vm1578_vm10, %v6462_v23  ;;  %v3326_v23 = vrot.slane %v3325_v39, 4  ;;  %v3352_v36 = vshll.u32 %v7926_v49, 16  ;;  %v3390_v39 = vshll.u32 %v7927_v61, 16  ;;  %v3378_v30 = vrot.slane %v3376_v63, 5 }
 0x1b9   : > { %v3339_v59 = vor.u32 %v3338_v40, %v3335_v8  ;;  %v3386_v26 = vrot.slane %v3384_v51, 5 }
 0x1ba   : > { %v3331_v53 = vsel %vm8042_vm8, %v3326_v23, %v3330_v1  ;;  %v3354_v24 = vrot.slane %v3352_v36, 5  ;;  %v3392_v20 = vrot.slane %v3390_v39, 5 }
 0x1bb   : > { %v6466_v16 = vcombine.low %v3321_v47, %v3331_v53  ;;  %v3340_v22 = vrot.slane %v3339_v59, 4  ;;  %v3387_v60 = vor.u32 %v3386_v26, %v3383_v17 }
 0x1bc   : > { %v3355_v14 = vsel %vm8042_vm8, %v3350_v27, %v3354_v24 }
 0x1bd   : > { %v3345_v41 = vsel %vm8042_vm8, %v3340_v22, %v3344_v10  ;;  %v3388_v40 = vrot.slane %v3387_v60, 4 }
 0x1be   : > { %7497 = vmatmul.mubr.msk.bf16.gmra.mrb[16].mxu0 %vm1578_vm10, %v6671_v46  ;;  %v3374_v46 = vrot.slane %v3373_v34, 4  ;;  %v6467_v8 = vcombine.low %v3345_v41, %v3355_v14 }
 0x1bf   : > { %7337 = vmatmul.mubr.msk.bf16.vlgmr.msra.gmra.mrb[16].mxu1 %vm1578_vm10, %v9622_v19  ;;  %v3363_v19 = vor.u32 %v3362_v12, %v3359_v48  ;;  %7500 = vmatprep.mubr.msk.bf16.mxu0 %vm1578_vm10, %v6672_v35  ;;  %v3397_v35 = vor.u32 %v3396_v0, %v3392_v20  ;;  %v3393_v3 = vsel %vm8042_vm8, %v3388_v40, %v3392_v20 }
 0x1c0   : > { %7340 = vmatprep.mubr.msk.bf16.mxu1 %vm1578_vm10, %v6464_v43  ;;  %v3379_v1 = vsel %vm8042_vm8, %v3374_v46, %v3378_v30 }
 0x1c1   : > { %v3364_v32 = vrot.slane %v3363_v19, 4  ;;  %v3398_v10 = vrot.slane %v3397_v35, 4 }
 0x1c3   : > { %v3369_v6 = vsel %vm8042_vm8, %v3364_v32, %v3368_v5  ;;  %v3403_v29 = vsel %vm8042_vm8, %v3398_v10, %v3402_v62 }
 0x1c4   : > { %v6468_v23 = vcombine.low %v3369_v6, %v3379_v1 }
 0x1c6   : > { %7501 = vmatmul.mubr.msk.bf16.gmra.mrb[20].mxu0 %vm1578_vm10, %v6673_v18  ;;  %v6469_v18 = vcombine.low %v3393_v3, %v3403_v29 }
 0x1c7   : > { %7341 = vmatmul.mubr.msk.bf16.gmra.mrb[20].mxu1 %vm1578_vm10, %v6465_v56  ;;  %7504 = vmatprep.mubr.msk.bf16.mxu0 %vm1578_vm10, %v6674_v28 }
 0x1c8   : > { %7344 = vmatprep.mubr.msk.bf16.mxu1 %vm1578_vm10, %v6466_v16 }
 0x1ce   : > { %7505 = vmatmul.mubr.msk.bf16.gmra.mrb[24].mxu0 %vm1578_vm10, %v6675_v52 }
 0x1cf   : > { %7345 = vmatmul.mubr.msk.bf16.gmra.mrb[24].mxu1 %vm1578_vm10, %v6467_v8  ;;  %7508 = vmatprep.mubr.msk.bf16.mxu0 %vm1578_vm10, %v6676_v7 }
 0x1d0   : > { %7348 = vmatprep.mubr.msk.bf16.mxu1 %vm1578_vm10, %v6468_v23 }
 0x1d6   : > { %7509 = vmatmul.mubr.msk.bf16.gmra.mrb[28].mxu0 %vm1578_vm10, %v6677_v21 }
 0x1d7   : > { %7349 = vmatmul.mubr.msk.bf16.gmra.mrb[28].mxu1 %vm1578_vm10, %v6469_v18 }
 0x252   : > { %v7282_v33 = vpop.f32.mrb[0].mxu1 }
 0x253   : > { %v2813_v50 = vpop.f32.mrb[1].mxu1 }
 0x254   : > { %v7283_v57 = vpop.f32.mrb[2].mxu1 }
 0x255   : > { %v2816_v28 = vpop.f32.mrb[3].mxu1 }
 0x25a   : > { %v7286_v44 = vpop.f32.mrb[4].mxu1 }
 0x25b   : > { %v2829_v38 = vpop.f32.mrb[5].mxu1 }
 0x25c   : > { %v7287_v52 = vpop.f32.mrb[6].mxu1 }
 0x25d   : > { %v2832_v43 = vpop.f32.mrb[7].mxu1 }
 0x262   : > { %v7290_v54 = vpop.f32.mrb[8].mxu1 }
 0x263   : > { %v2845_v11 = vpop.f32.mrb[9].mxu1 }
 0x264   : > { %v7291_v7 = vpop.f32.mrb[10].mxu1 }
 0x265   : > { %v2848_v48 = vpop.f32.mrb[11].mxu1 }
 0x26a   : > { %v9890_v12 = vpop.f32.mrb[12].mxu1 }
 0x26b   : > { %v9892_v5 = vpop.f32.mrb[13].mxu1 }
 0x26c   : > { %v9894_v25 = vpop.f32.mrb[14].mxu1 }
 0x26d   : > { %v9896_v15 = vpop.f32.mrb[15].mxu1 }
 0x271   : > { %v7482_v21 = vpop.f32.mrb[0].mxu0 }
 0x272   : > { %v7520_v31 = vadd.f32 %v7482_v21, %v7282_v33  ;;  %v5704_v4 = vpop.f32.mrb[1].mxu0 }
 0x273   : > { %v7521_v2 = vadd.f32 %v5704_v4, %v2813_v50  ;;  %v7483_v58 = vpop.f32.mrb[2].mxu0 }
 0x274   : > { %v7522_v49 = vadd.f32 %v7483_v58, %v7283_v57  ;;  %v5707_v36 = vpop.f32.mrb[3].mxu0  ;;  %v5902_v61 = vmul.f32 %v7520_v31, %v7520_v31 }
 0x275   : > { %v7523_v47 = vadd.f32 %v5707_v36, %v2816_v28  ;;  %v5900_v59 = vmul.f32 %v7521_v2, %v7521_v2 }
 0x276   : > { %v6870_v53 = vpack.c.bf16 %v7522_v49, %v7520_v31  ;;  %v5903_v63 = vmul.f32 %v7522_v49, %v7522_v49 }
 0x277   : > { %v5863_v42 = vadd.f32 %v7523_v47, %v7521_v2  ;;  %v5901_v13 = vmul.f32 %v7523_v47, %v7523_v47  ;;  %v6865_v51 = vpack.c.bf16 %v7523_v47, %v7521_v2 }
 0x278   : > { %6957 = vst [vmem:[%s9903_s10 + $0x8] sm:$0xff] %v6870_v53  }
 0x279   : > { %v5864_v39 = vadd.f32 %v7520_v31, %v5863_v42  ;;  %v5932_v55 = vadd.f32 %v5901_v13, %v5900_v59  ;;  %6866 = vst [vmem:[%s9903_s10] sm:$0xff] %v6865_v51   ;;  %v7486_v19 = vpop.f32.mrb[4].mxu0 }
 0x27a   : > { %v7524_v34 = vadd.f32 %v7486_v19, %v7286_v44  ;;  %v5720_v9 = vpop.f32.mrb[5].mxu0 }
 0x27b   : > { %v5933_v56 = vadd.f32 %v5932_v55, %v5902_v61  ;;  %v7525_v16 = vadd.f32 %v5720_v9, %v2829_v38  ;;  %v5865_v22 = vadd.f32 %v7522_v49, %v5864_v39  ;;  %v7487_v27 = vpop.f32.mrb[6].mxu0 }
 0x27c   : > { %v7526_v24 = vadd.f32 %v7487_v27, %v7287_v52  ;;  %v5723_v17 = vpop.f32.mrb[7].mxu0  ;;  %v5906_v35 = vmul.f32 %v7524_v34, %v7524_v34 }
 0x27d   : > { %v5866_v26 = vadd.f32 %v7525_v16, %v5865_v22  ;;  %v5904_v20 = vmul.f32 %v7525_v16, %v7525_v16  ;;  %v5934_v0 = vadd.f32 %v5933_v56, %v5903_v63  ;;  %v7527_v32 = vadd.f32 %v5723_v17, %v2832_v43 }
 0x27e   : > { %v6880_v46 = vpack.c.bf16 %v7526_v24, %v7524_v34  ;;  %v5907_v23 = vmul.f32 %v7526_v24, %v7526_v24 }
 0x27f   : > { %v5935_v30 = vadd.f32 %v5934_v0, %v5904_v20  ;;  %v5867_v41 = vadd.f32 %v7527_v32, %v5866_v26  ;;  %v5905_v14 = vmul.f32 %v7527_v32, %v7527_v32  ;;  %v6875_v60 = vpack.c.bf16 %v7527_v32, %v7525_v16 }
 0x280   : > { %6959 = vst [vmem:[%s9903_s10 + $0x18] sm:$0xff] %v6880_v46  }
 0x281   : > { %v5868_v37 = vadd.f32 %v7524_v34, %v5867_v41  ;;  %v5936_v45 = vadd.f32 %v5935_v30, %v5905_v14  ;;  %6958 = vst [vmem:[%s9903_s10 + $0x10] sm:$0xff] %v6875_v60   ;;  %v7490_v6 = vpop.f32.mrb[8].mxu0 }
 0x282   : > { %v7528_v1 = vadd.f32 %v7490_v6, %v7290_v54  ;;  %v5736_v8 = vpop.f32.mrb[9].mxu0 }
 0x283   : > { %v5937_v40 = vadd.f32 %v5936_v45, %v5906_v35  ;;  %v7529_v10 = vadd.f32 %v5736_v8, %v2845_v11  ;;  %v5869_v62 = vadd.f32 %v7526_v24, %v5868_v37  ;;  %v7491_v3 = vpop.f32.mrb[10].mxu0 }
 0x284   : > { %v7530_v29 = vadd.f32 %v7491_v3, %v7291_v7  ;;  %v5739_v18 = vpop.f32.mrb[11].mxu0  ;;  %v5910_v54 = vmul.f32 %v7528_v1, %v7528_v1 }
 0x285   : > { %v5870_v33 = vadd.f32 %v7529_v10, %v5869_v62  ;;  %v5908_v50 = vmul.f32 %v7529_v10, %v7529_v10  ;;  %v5938_v57 = vadd.f32 %v5937_v40, %v5907_v23  ;;  %v7531_v28 = vadd.f32 %v5739_v18, %v2848_v48 }
 0x286   : > { %v6890_v44 = vpack.c.bf16 %v7530_v29, %v7528_v1  ;;  %v5911_v7 = vmul.f32 %v7530_v29, %v7530_v29 }
 0x287   : > { %v5939_v38 = vadd.f32 %v5938_v57, %v5908_v50  ;;  %v5871_v52 = vadd.f32 %v7531_v28, %v5870_v33  ;;  %v5909_v43 = vmul.f32 %v7531_v28, %v7531_v28  ;;  %v6885_v21 = vpack.c.bf16 %v7531_v28, %v7529_v10 }
 0x288   : > { %6961 = vst [vmem:[%s9903_s10 + $0x28] sm:$0xff] %v6890_v44  }
 0x289   : > { %v5872_v31 = vadd.f32 %v7528_v1, %v5871_v52  ;;  %v5940_v4 = vadd.f32 %v5939_v38, %v5909_v43  ;;  %6960 = vst [vmem:[%s9903_s10 + $0x20] sm:$0xff] %v6885_v21   ;;  %v7494_v11 = vpop.f32.mrb[12].mxu0 }
 0x28a   : > { %v7532_v2 = vadd.f32 %v7494_v11, %v9890_v12  ;;  %v5752_v58 = vpop.f32.mrb[13].mxu0 }
 0x28b   : > { %v5941_v49 = vadd.f32 %v5940_v4, %v5910_v54  ;;  %v7533_v36 = vadd.f32 %v5752_v58, %v9892_v5  ;;  %v5873_v48 = vadd.f32 %v7530_v29, %v5872_v31  ;;  %v7495_v47 = vpop.f32.mrb[14].mxu0 }
 0x28c   : > { %v7534_v53 = vadd.f32 %v7495_v47, %v9894_v25  ;;  %v5755_v59 = vpop.f32.mrb[15].mxu0  ;;  %v5914_v5 = vmul.f32 %v7532_v2, %v7532_v2 }
 0x28d   : > { %v5874_v42 = vadd.f32 %v7533_v36, %v5873_v48  ;;  %v5912_v13 = vmul.f32 %v7533_v36, %v7533_v36  ;;  %v5942_v51 = vadd.f32 %v5941_v49, %v5911_v7  ;;  %v7535_v61 = vadd.f32 %v5755_v59, %v9896_v15 }
 0x28e   : > { %v6900_v39 = vpack.c.bf16 %v7534_v53, %v7532_v2  ;;  %v5915_v26 = vmul.f32 %v7534_v53, %v7534_v53 }
 0x28f   : > { %v5943_v55 = vadd.f32 %v5942_v51, %v5912_v13  ;;  %v5875_v12 = vadd.f32 %v7535_v61, %v5874_v42  ;;  %v5913_v19 = vmul.f32 %v7535_v61, %v7535_v61  ;;  %v6895_v34 = vpack.c.bf16 %v7535_v61, %v7533_v36 }
 0x290   : > { %6963 = vst [vmem:[%s9903_s10 + $0x38] sm:$0xff] %v6900_v39  }
 0x291   : > { %v5876_v56 = vadd.f32 %v7532_v2, %v5875_v12  ;;  %v5944_v16 = vadd.f32 %v5943_v55, %v5913_v19  ;;  %6962 = vst [vmem:[%s9903_s10 + $0x30] sm:$0xff] %v6895_v34   ;;  %v7498_v25 = vpop.f32.mrb[16].mxu0 }
 0x292   : > { %v7338_v9 = vpop.f32.mrb[16].mxu1  ;;  %v5768_v24 = vpop.f32.mrb[17].mxu0 }
 0x293   : > { %v3631_v63 = vpop.f32.mrb[17].mxu1  ;;  %v7536_v27 = vadd.f32 %v7498_v25, %v7338_v9  ;;  %v5945_v20 = vadd.f32 %v5944_v16, %v5914_v5  ;;  %v5877_v0 = vadd.f32 %v7534_v53, %v5876_v56  ;;  %v7499_v32 = vpop.f32.mrb[18].mxu0 }
 0x294   : > { %v7339_v22 = vpop.f32.mrb[18].mxu1  ;;  %v7537_v15 = vadd.f32 %v5768_v24, %v3631_v63  ;;  %v5771_v30 = vpop.f32.mrb[19].mxu0 }
 0x295   : > { %v3634_v17 = vpop.f32.mrb[19].mxu1  ;;  %v7538_v46 = vadd.f32 %v7499_v32, %v7339_v22  ;;  %v5946_v60 = vadd.f32 %v5945_v20, %v5915_v26  ;;  %v5918_v10 = vmul.f32 %v7536_v27, %v7536_v27 }
 0x296   : > { %v5878_v41 = vadd.f32 %v7537_v15, %v5877_v0  ;;  %v5916_v14 = vmul.f32 %v7537_v15, %v7537_v15  ;;  %v7539_v35 = vadd.f32 %v5771_v30, %v3634_v17 }
 0x297   : > { %v6910_v37 = vpack.c.bf16 %v7538_v46, %v7536_v27  ;;  %v5919_v28 = vmul.f32 %v7538_v46, %v7538_v46 }
 0x298   : > { %v5947_v45 = vadd.f32 %v5946_v60, %v5916_v14  ;;  %v5879_v6 = vadd.f32 %v7539_v35, %v5878_v41  ;;  %v5917_v1 = vmul.f32 %v7539_v35, %v7539_v35  ;;  %v6905_v8 = vpack.c.bf16 %v7539_v35, %v7537_v15 }
 0x299   : > { %6965 = vst [vmem:[%s9903_s10 + $0x48] sm:$0xff] %v6910_v37   ;;  %v7502_v29 = vpop.f32.mrb[20].mxu0 }
 0x29a   : > { %v7342_v23 = vpop.f32.mrb[20].mxu1  ;;  %v5880_v62 = vadd.f32 %v7536_v27, %v5879_v6  ;;  %v5948_v3 = vadd.f32 %v5947_v45, %v5917_v1  ;;  %6964 = vst [vmem:[%s9903_s10 + $0x40] sm:$0xff] %v6905_v8   ;;  %v5784_v50 = vpop.f32.mrb[21].mxu0 }
 0x29b   : > { %v3647_v40 = vpop.f32.mrb[21].mxu1  ;;  %v7540_v33 = vadd.f32 %v7502_v29, %v7342_v23  ;;  %v7503_v43 = vpop.f32.mrb[22].mxu0 }
 0x29c   : > { %v7343_v18 = vpop.f32.mrb[22].mxu1  ;;  %v5949_v44 = vadd.f32 %v5948_v3, %v5918_v10  ;;  %v7541_v38 = vadd.f32 %v5784_v50, %v3647_v40  ;;  %v5881_v52 = vadd.f32 %v7538_v46, %v5880_v62  ;;  %v5787_v54 = vpop.f32.mrb[23].mxu0 }
 0x29d   : > { %v3650_v57 = vpop.f32.mrb[23].mxu1  ;;  %v7542_v21 = vadd.f32 %v7503_v43, %v7343_v18  ;;  %v5922_v59 = vmul.f32 %v7540_v33, %v7540_v33 }
 0x29e   : > { %v5882_v31 = vadd.f32 %v7541_v38, %v5881_v52  ;;  %v5920_v4 = vmul.f32 %v7541_v38, %v7541_v38  ;;  %v5950_v11 = vadd.f32 %v5949_v44, %v5919_v28  ;;  %v7543_v2 = vadd.f32 %v5787_v54, %v3650_v57 }
 0x29f   : > { %v6920_v58 = vpack.c.bf16 %v7542_v21, %v7540_v33  ;;  %v5923_v19 = vmul.f32 %v7542_v21, %v7542_v21 }
 0x2a0   : > { %v5951_v7 = vadd.f32 %v5950_v11, %v5920_v4  ;;  %v5883_v49 = vadd.f32 %v7543_v2, %v5882_v31  ;;  %v5921_v36 = vmul.f32 %v7543_v2, %v7543_v2  ;;  %v6915_v48 = vpack.c.bf16 %v7543_v2, %v7541_v38 }
 0x2a1   : > { %6967 = vst [vmem:[%s9903_s10 + $0x58] sm:$0xff] %v6920_v58   ;;  %v7506_v51 = vpop.f32.mrb[24].mxu0 }
 0x2a2   : > { %v7346_v47 = vpop.f32.mrb[24].mxu1  ;;  %v5884_v42 = vadd.f32 %v7540_v33, %v5883_v49  ;;  %v5952_v13 = vadd.f32 %v5951_v7, %v5921_v36  ;;  %6966 = vst [vmem:[%s9903_s10 + $0x50] sm:$0xff] %v6915_v48   ;;  %v5800_v55 = vpop.f32.mrb[25].mxu0 }
 0x2a3   : > { %v3663_v53 = vpop.f32.mrb[25].mxu1  ;;  %v7544_v39 = vadd.f32 %v7506_v51, %v7346_v47  ;;  %v7507_v5 = vpop.f32.mrb[26].mxu0 }
 0x2a4   : > { %v7347_v61 = vpop.f32.mrb[26].mxu1  ;;  %v5953_v34 = vadd.f32 %v5952_v13, %v5922_v59  ;;  %v7545_v9 = vadd.f32 %v5800_v55, %v3663_v53  ;;  %v5885_v63 = vadd.f32 %v7542_v21, %v5884_v42  ;;  %v5803_v16 = vpop.f32.mrb[27].mxu0 }
 0x2a5   : > { %v3666_v12 = vpop.f32.mrb[27].mxu1  ;;  %v7546_v56 = vadd.f32 %v7507_v5, %v7347_v61  ;;  %v5926_v30 = vmul.f32 %v7544_v39, %v7544_v39 }
 0x2a6   : > { %v5886_v25 = vadd.f32 %v7545_v9, %v5885_v63  ;;  %v5924_v22 = vmul.f32 %v7545_v9, %v7545_v9  ;;  %v5954_v27 = vadd.f32 %v5953_v34, %v5923_v19  ;;  %v7547_v24 = vadd.f32 %v5803_v16, %v3666_v12 }
 0x2a7   : > { %v6930_v17 = vpack.c.bf16 %v7546_v56, %v7544_v39  ;;  %v5927_v1 = vmul.f32 %v7546_v56, %v7546_v56 }
 0x2a8   : > { %v5955_v26 = vadd.f32 %v5954_v27, %v5924_v22  ;;  %v5887_v20 = vadd.f32 %v7547_v24, %v5886_v25  ;;  %v5925_v15 = vmul.f32 %v7547_v24, %v7547_v24  ;;  %v6925_v0 = vpack.c.bf16 %v7547_v24, %v7545_v9 }
 0x2a9   : > { %6969 = vst [vmem:[%s9903_s10 + $0x68] sm:$0xff] %v6930_v17   ;;  %v7510_v60 = vpop.f32.mrb[28].mxu0 }
 0x2aa   : > { %v7350_v32 = vpop.f32.mrb[28].mxu1  ;;  %v5888_v41 = vadd.f32 %v7544_v39, %v5887_v20  ;;  %v5956_v14 = vadd.f32 %v5955_v26, %v5925_v15  ;;  %6968 = vst [vmem:[%s9903_s10 + $0x60] sm:$0xff] %v6925_v0   ;;  %v5816_v45 = vpop.f32.mrb[29].mxu0 }
 0x2ab   : > { %v3679_v46 = vpop.f32.mrb[29].mxu1  ;;  %v7548_v37 = vadd.f32 %v7510_v60, %v7350_v32  ;;  %v7511_v10 = vpop.f32.mrb[30].mxu0 }
 0x2ac   : > { %v7351_v35 = vpop.f32.mrb[30].mxu1  ;;  %v5957_v8 = vadd.f32 %v5956_v14, %v5926_v30  ;;  %v7549_v23 = vadd.f32 %v5816_v45, %v3679_v46  ;;  %v5889_v40 = vadd.f32 %v7546_v56, %v5888_v41  ;;  %v5819_v3 = vpop.f32.mrb[31].mxu0 }
 0x2ad   : > { %v3682_v6 = vpop.f32.mrb[31].mxu1  ;;  %v7550_v62 = vadd.f32 %v7511_v10, %v7351_v35  ;;  %v5930_v43 = vmul.f32 %v7548_v37, %v7548_v37 }
 0x2ae   : > { %v5890_v29 = vadd.f32 %v7549_v23, %v5889_v40  ;;  %v5928_v18 = vmul.f32 %v7549_v23, %v7549_v23  ;;  %v5958_v33 = vadd.f32 %v5957_v8, %v5927_v1  ;;  %v7551_v50 = vadd.f32 %v5819_v3, %v3682_v6 }
 0x2af   : > { %v6940_v57 = vpack.c.bf16 %v7550_v62, %v7548_v37  ;;  %v5931_v31 = vmul.f32 %v7550_v62, %v7550_v62 }
 0x2b0   : > { %v5959_v28 = vadd.f32 %v5958_v33, %v5928_v18  ;;  %v5891_v44 = vadd.f32 %v7551_v50, %v5890_v29  ;;  %v5929_v38 = vmul.f32 %v7551_v50, %v7551_v50  ;;  %v6935_v52 = vpack.c.bf16 %v7551_v50, %v7549_v23 }
 0x2b1   : > { %6971 = vst [vmem:[%s9903_s10 + $0x78] sm:$0xff] %v6940_v57  }
 0x2b2   : > { %v5892_v21 = vadd.f32 %v7548_v37, %v5891_v44  ;;  %v5960_v54 = vadd.f32 %v5959_v28, %v5929_v38  ;;  %6970 = vst [vmem:[%s9903_s10 + $0x70] sm:$0xff] %v6935_v52  }
 0x2b4   : > { %v5893_v4 = vadd.f32 %v7550_v62, %v5892_v21  ;;  %v5961_v11 = vadd.f32 %v5960_v54, %v5930_v43 }
 0x2b6   : > { %v5894_v2 = vrot.slane %v5893_v4, 4  ;;  %v5962_v58 = vadd.f32 %v5961_v11, %v5931_v31 }
 0x2b8   : > { %v5895_v7 = vadd.f32 %v5894_v2, %v5893_v4  ;;  %v5963_v49 = vrot.slane %v5962_v58, 4 }
 0x2ba   : > { %v5896_v36 = vrot.slane %v5895_v7, 2  ;;  %v5964_v48 = vadd.f32 %v5963_v49, %v5962_v58 }
 0x2bc   : > { %v5897_v47 = vadd.f32 %v5896_v36, %v5895_v7  ;;  %v5965_v53 = vrot.slane %v5964_v48, 2 }
 0x2be   : > { %v5898_v59 = vrot.slane %v5897_v47, 1  ;;  %v5966_v42 = vadd.f32 %v5965_v53, %v5964_v48 }
 0x2c0   : > { %v5967_v13 = vrot.slane %v5966_v42, 1  ;;  %v5899_v51 = vadd.f32 %v5898_v59, %v5897_v47 }
 0x2c2   : > { %v5968_v61 = vadd.f32 %v5967_v13, %v5966_v42 }
 0x2c4   : > { %v5970_v39 = vsel %vm5969_vm0, %v5899_v51, %v5968_v61 }
 0x2c5   : > { %5971 = vst [vmem:[%s235_s14] sm:$0x3] %v5970_v39 }
 0x2c6 PF: > { %s16_s18 = sadd.s32 1, %s7936_s18  }
 0x2c7   : > { %p13_p4 = scmp.ge.s32.totalorder %s16_s18, 4  }
 0x2c9   :  { %15 = sbr.rel (!%p13_p4) target bundleno = 1 (0x1), region = 89 }

</bundles_post_ra>
